<compile_context>
chip_gen: v7x
topology: tpu7x:2x2x1
jax: 0.10.0
libtpu: 0.0.40
codegen_flags: <defaults>
</compile_context>

<pallas_src>
from functools import partial

import jax
import jax.numpy as jnp
from jax.experimental import pallas as pl
from jax.experimental.pallas import tpu as pltpu


# ----------------------------------------------------------------------------
# Fused kernel: all encoder layers (grid axis) + classifier on the last step.
# ----------------------------------------------------------------------------
def fused_encoder_kernel(x_ref,
                         wq_ref, bq_ref, wk_ref, bk_ref, wv_ref, bv_ref,
                         wo_ref, bo_ref, g1_ref, be1_ref,
                         w1_ref, b1_ref, w2_ref, b2_ref, g2_ref, be2_ref,
                         wc_ref, bc_ref,
                         o_ref, x_sc,
                         *, num_heads, d_k, d_v, s_actual, eps=1e-5):
    l = pl.program_id(0)
    n_layers = pl.num_programs(0)

    # --- init residual stream on first layer -------------------------------
    @pl.when(l == 0)
    def _():
        x_sc[...] = x_ref[...].astype(jnp.float32)

    x = x_sc[...]                                   # [S_pad, D] f32 residual
    S_pad, D = x.shape
    xb = x.astype(jnp.bfloat16)

    # --- multi-head self-attention ------------------------------------------
    q = jnp.dot(xb, wq_ref[...], preferred_element_type=jnp.float32) + bq_ref[...]
    k = jnp.dot(xb, wk_ref[...], preferred_element_type=jnp.float32) + bk_ref[...]
    v = jnp.dot(xb, wv_ref[...], preferred_element_type=jnp.float32) + bv_ref[...]

    scale = 1.0 / (float(d_k) ** 0.5)
    if s_actual < S_pad:                            # mask padded key rows
        key_idx = jax.lax.broadcasted_iota(jnp.int32, (S_pad, S_pad), 1)
        key_mask = key_idx < s_actual
    else:
        key_mask = None

    attn = jnp.zeros((S_pad, D), jnp.float32)
    for h in range(num_heads):                      # static unroll, bounded live
        qh = q[:, h * d_k:(h + 1) * d_k].astype(jnp.bfloat16)
        kh = k[:, h * d_k:(h + 1) * d_k].astype(jnp.bfloat16)
        vh = v[:, h * d_v:(h + 1) * d_v].astype(jnp.bfloat16)
        # q @ k^T without an explicit transpose (contract dim 1 with dim 1).
        s = jax.lax.dot_general(qh, kh, (((1,), (1,)), ((), ())),
                                preferred_element_type=jnp.float32) * scale
        if key_mask is not None:
            s = jnp.where(key_mask, s, -1e30)
        s = s - jnp.max(s, axis=-1, keepdims=True)
        p = jnp.exp(s)
        p = p * pl.reciprocal(jnp.sum(p, axis=-1, keepdims=True), approx=True)
        ctx = jnp.dot(p.astype(jnp.bfloat16), vh,
                      preferred_element_type=jnp.float32)          # [S, d_v]
        # accumulate the output projection per head (no concatenation).
        attn = attn + jnp.dot(ctx.astype(jnp.bfloat16),
                              wo_ref[h * d_v:(h + 1) * d_v, :],
                              preferred_element_type=jnp.float32)
    attn = attn + bo_ref[...]

    # --- residual + LayerNorm 1 ---------------------------------------------
    y = x + attn
    mu = jnp.mean(y, axis=-1, keepdims=True)
    var = jnp.mean((y - mu) ** 2, axis=-1, keepdims=True)
    y = (y - mu) * jax.lax.rsqrt(var + eps) * g1_ref[...] + be1_ref[...]

    # --- feed-forward + residual + LayerNorm 2 ------------------------------
    yb = y.astype(jnp.bfloat16)
    h1 = jnp.dot(yb, w1_ref[...], preferred_element_type=jnp.float32) + b1_ref[...]
    h1 = jnp.maximum(h1, 0.0)
    ff = jnp.dot(h1.astype(jnp.bfloat16), w2_ref[...],
                 preferred_element_type=jnp.float32) + b2_ref[...]
    z = y + ff
    mu2 = jnp.mean(z, axis=-1, keepdims=True)
    var2 = jnp.mean((z - mu2) ** 2, axis=-1, keepdims=True)
    z = (z - mu2) * jax.lax.rsqrt(var2 + eps) * g2_ref[...] + be2_ref[...]

    x_sc[...] = z                                   # carry residual stream

    # --- classifier (Tanh + Linear) fused into the last grid step -----------
    @pl.when(l == n_layers - 1)
    def _():
        t = jnp.tanh(x_sc[...]).astype(jnp.bfloat16)
        logits = jnp.dot(t, wc_ref[...], preferred_element_type=jnp.float32) \
                 + bc_ref[...]
        o_ref[...] = logits.astype(o_ref.dtype)


# ----------------------------------------------------------------------------
# pallas_call wrapper
# ----------------------------------------------------------------------------
def _stacked_spec(arr):
    """Per-layer stacked param [n_layers, ...]: squeeze layer dim, index by l."""
    nd = arr.ndim - 1
    return pl.BlockSpec((None,) + tuple(arr.shape[1:]),
                        lambda l, _nd=nd: (l,) + (0,) * _nd)


def run_fused_encoder(x, params, *, num_heads, d_k, d_v, s_actual):
    S_pad, D = x.shape
    n_layers = params["wq"].shape[0]

    # lane-dense classifier slab (pad class_num -> multiple of 128).
    C = params["wc"].shape[1]
    C_pad = max(128, pl.cdiv(C, 128) * 128)
    wc_p = jnp.zeros((D, C_pad), params["wc"].dtype).at[:, :C].set(params["wc"])
    bc_p = jnp.zeros((1, C_pad), jnp.float32).at[:, :C].set(params["bc"])

    stacked_names = ["wq", "bq", "wk", "bk", "wv", "bv", "wo", "bo",
                     "g1", "be1", "w1", "b1", "w2", "b2", "g2", "be2"]
    stacked = [params[n] for n in stacked_names]

    in_specs = [pl.BlockSpec((S_pad, D), lambda l: (0, 0))]
    in_specs += [_stacked_spec(a) for a in stacked]
    in_specs += [pl.BlockSpec((D, C_pad), lambda l: (0, 0)),
                 pl.BlockSpec((1, C_pad), lambda l: (0, 0))]

    kernel = partial(fused_encoder_kernel, num_heads=num_heads,
                     d_k=d_k, d_v=d_v, s_actual=s_actual)

    out = pl.pallas_call(
        kernel,
        out_shape=jax.ShapeDtypeStruct((S_pad, C_pad), jnp.float32),
        grid_spec=pltpu.PrefetchScalarGridSpec(
            num_scalar_prefetch=0,
            grid=(n_layers,),
            in_specs=in_specs,
            out_specs=pl.BlockSpec((S_pad, C_pad), lambda l: (0, 0)),
            scratch_shapes=[pltpu.VMEM((S_pad, D), jnp.float32)]),
        compiler_params=pltpu.CompilerParams(
            dimension_semantics=("arbitrary",)),
    )(x, *stacked, wc_p, bc_p)
    return out[:, :C]


# ----------------------------------------------------------------------------
# Parameter init (deterministic, synthetic — no checkpoint load).
# Weights bf16 (stacked per layer), biases/LN params fp32.
# ----------------------------------------------------------------------------
def init_params(key, *, n_layers, d_model, d_k, d_v, h, d_ff, class_num):
    def nrm(k, shape, scale=0.02):
        return (scale * jax.random.normal(k, shape, dtype=jnp.float32))

    key, kq, kk, kv, ko, k1, k2, kc = jax.random.split(key, 8)
    wdt = jnp.bfloat16
    params = {
        "wq": nrm(kq, (n_layers, d_model, h * d_k)).astype(wdt),
        "bq": jnp.zeros((n_layers, 1, h * d_k), jnp.float32),
        "wk": nrm(kk, (n_layers, d_model, h * d_k)).astype(wdt),
        "bk": jnp.zeros((n_layers, 1, h * d_k), jnp.float32),
        "wv": nrm(kv, (n_layers, d_model, h * d_v)).astype(wdt),
        "bv": jnp.zeros((n_layers, 1, h * d_v), jnp.float32),
        "wo": nrm(ko, (n_layers, h * d_v, d_model)).astype(wdt),
        "bo": jnp.zeros((n_layers, 1, d_model), jnp.float32),
        "g1": jnp.ones((n_layers, 1, d_model), jnp.float32),
        "be1": jnp.zeros((n_layers, 1, d_model), jnp.float32),
        "w1": nrm(k1, (n_layers, d_model, d_ff)).astype(wdt),
        "b1": jnp.zeros((n_layers, 1, d_ff), jnp.float32),
        "w2": nrm(k2, (n_layers, d_ff, d_model)).astype(wdt),
        "b2": jnp.zeros((n_layers, 1, d_model), jnp.float32),
        "g2": jnp.ones((n_layers, 1, d_model), jnp.float32),
        "be2": jnp.zeros((n_layers, 1, d_model), jnp.float32),
        "wc": nrm(kc, (d_model, class_num)).astype(wdt),
        "bc": jnp.zeros((1, class_num), jnp.float32),
    }
    return params


# ----------------------------------------------------------------------------
# Full forward (mirrors Xlnet_Encoder.forward, drop_prob = 0)
# ----------------------------------------------------------------------------
def xlnet_encoder_forward(embedding, sep_index, params, *, num_heads, d_k, d_v):
    # embedding: [B=1, L, D]  (stand-in for self.xlnet(sentence)[0])
    # torch: stack([embedding[:, i, :] for i in sep_index]).squeeze(0) -> with
    # B == 1 this is the sentence-vector sequence [S, D].
    sen_vec = embedding[0, sep_index, :]                       # [S, D]
    S, D = sen_vec.shape
    S_pad = int(-(-S // 8) * 8)                                # round up to 8 rows
    if S_pad != S:
        sen_vec = jnp.pad(sen_vec, ((0, S_pad - S), (0, 0)))
    # dropout(p=0) == identity
    out = run_fused_encoder(sen_vec, params, num_heads=num_heads,
                            d_k=d_k, d_v=d_v, s_actual=S)      # [S_pad, class_num]
    class_out = out[:S]
    if class_out.shape[0] == 1:                                # mirrors .squeeze(0)
        class_out = class_out[0]
    return class_out


# ----------------------------------------------------------------------------
if __name__ == "__main__":
    # Small shapes consistent with the module (scaled from 768/12 to 128/4).
    B, L, D = 1, 16, 128          # batch, xlnet seq len, hidden
    H, DK, DV = 4, 128, 128       # heads; per-head d_k = d_v = d_model (module convention)
    D_FF = 4 * D
    N_LAYERS = 2                  # module default is 12; scaled down
    CLASS_NUM = 2

    key = jax.random.PRNGKey(0)
    key, k_emb = jax.random.split(key)
    embedding = jax.random.normal(k_emb, (B, L, D), dtype=jnp.float32)   # xlnet(sentence)[0]
    sep_index = jnp.array([1, 3, 5, 7, 9, 11, 13, 15], dtype=jnp.int32)  # S = 8 sentence seps

    params = init_params(key, n_layers=N_LAYERS, d_model=D, d_k=DK, d_v=DV,
                         h=H, d_ff=D_FF, class_num=CLASS_NUM)

    out = xlnet_encoder_forward(embedding, sep_index, params,
                                num_heads=H, d_k=DK, d_v=DV)
    out = jax.block_until_ready(out)
    assert out.shape == (sep_index.shape[0], CLASS_NUM)
    assert jnp.all(jnp.isfinite(out))
    print("KERNEL_OK")
</pallas_src>

<mosaic_0001>
module attributes {stable_mosaic.version = 11 : i64} {
  func.func @fused_encoder_kernel(%arg0: i32, %arg1: memref<8x128xf32, #tpu.memory_space<vmem>>, %arg2: memref<1x128x512xbf16, #tpu.memory_space<vmem>>, %arg3: memref<1x1x512xf32, #tpu.memory_space<vmem>>, %arg4: memref<1x128x512xbf16, #tpu.memory_space<vmem>>, %arg5: memref<1x1x512xf32, #tpu.memory_space<vmem>>, %arg6: memref<1x128x512xbf16, #tpu.memory_space<vmem>>, %arg7: memref<1x1x512xf32, #tpu.memory_space<vmem>>, %arg8: memref<1x512x128xbf16, #tpu.memory_space<vmem>>, %arg9: memref<1x1x128xf32, #tpu.memory_space<vmem>>, %arg10: memref<1x1x128xf32, #tpu.memory_space<vmem>>, %arg11: memref<1x1x128xf32, #tpu.memory_space<vmem>>, %arg12: memref<1x128x512xbf16, #tpu.memory_space<vmem>>, %arg13: memref<1x1x512xf32, #tpu.memory_space<vmem>>, %arg14: memref<1x512x128xbf16, #tpu.memory_space<vmem>>, %arg15: memref<1x1x128xf32, #tpu.memory_space<vmem>>, %arg16: memref<1x1x128xf32, #tpu.memory_space<vmem>>, %arg17: memref<1x1x128xf32, #tpu.memory_space<vmem>>, %arg18: memref<128x128xbf16, #tpu.memory_space<vmem>>, %arg19: memref<1x128xf32, #tpu.memory_space<vmem>>, %arg20: memref<8x128xf32, #tpu.memory_space<vmem>>, %arg21: memref<8x128xf32, #tpu.memory_space<vmem>>) attributes {dimension_semantics = [#tpu.dimension_semantics<arbitrary>], iteration_bounds = array<i64: 2>, scalar_prefetch = 0 : i64, scratch_operands = 1 : i64, tpu.core_type = #tpu.core_type<tc>, window_params = [{pipeline_mode = #tpu.pipeline_mode<synchronous>, transform_indices = @transform_0, window_bounds = array<i64: 8, 128>}, {transform_indices = @transform_1, window_bounds = array<i64: 1, 128, 512>}, {transform_indices = @transform_2, window_bounds = array<i64: 1, 1, 512>}, {transform_indices = @transform_3, window_bounds = array<i64: 1, 128, 512>}, {transform_indices = @transform_4, window_bounds = array<i64: 1, 1, 512>}, {transform_indices = @transform_5, window_bounds = array<i64: 1, 128, 512>}, {transform_indices = @transform_6, window_bounds = array<i64: 1, 1, 512>}, {transform_indices = @transform_7, window_bounds = array<i64: 1, 512, 128>}, {transform_indices = @transform_8, window_bounds = array<i64: 1, 1, 128>}, {transform_indices = @transform_9, window_bounds = array<i64: 1, 1, 128>}, {transform_indices = @transform_10, window_bounds = array<i64: 1, 1, 128>}, {transform_indices = @transform_11, window_bounds = array<i64: 1, 128, 512>}, {transform_indices = @transform_12, window_bounds = array<i64: 1, 1, 512>}, {transform_indices = @transform_13, window_bounds = array<i64: 1, 512, 128>}, {transform_indices = @transform_14, window_bounds = array<i64: 1, 1, 128>}, {transform_indices = @transform_15, window_bounds = array<i64: 1, 1, 128>}, {transform_indices = @transform_16, window_bounds = array<i64: 1, 1, 128>}, {pipeline_mode = #tpu.pipeline_mode<synchronous>, transform_indices = @transform_17, window_bounds = array<i64: 128, 128>}, {pipeline_mode = #tpu.pipeline_mode<synchronous>, transform_indices = @transform_18, window_bounds = array<i64: 1, 128>}, {pipeline_mode = #tpu.pipeline_mode<synchronous>, transform_indices = @transform_19, window_bounds = array<i64: 8, 128>}]} {
    %c0_i32 = arith.constant 0 : i32
    %0 = arith.cmpi eq, %arg0, %c0_i32 : i32
    %1 = arith.extui %0 : i1 to i32
    %c0_i32_0 = arith.constant 0 : i32
    %2 = arith.cmpi ne, %1, %c0_i32_0 : i32
    scf.if %2 {
      %c0_99 = arith.constant 0 : index
      %c0_100 = arith.constant 0 : index
      %211 = vector.load %arg1[%c0_99, %c0_100] : memref<8x128xf32, #tpu.memory_space<vmem>>, vector<8x128xf32>
      %c0_101 = arith.constant 0 : index
      %c0_102 = arith.constant 0 : index
      %212 = vector.load %arg21[%c0_101, %c0_102] : memref<8x128xf32, #tpu.memory_space<vmem>>, vector<8x128xf32>
      tpu.vector_store %arg21[%c0_101, %c0_102], %211 {strides = array<i32>} : memref<8x128xf32, #tpu.memory_space<vmem>>, vector<8x128xf32>,
    } else {
    }
    %c0 = arith.constant 0 : index
    %c0_1 = arith.constant 0 : index
    %3 = vector.load %arg21[%c0, %c0_1] : memref<8x128xf32, #tpu.memory_space<vmem>>, vector<8x128xf32>
    %4 = arith.truncf %3 : vector<8x128xf32> to vector<8x128xbf16>
    %c0_2 = arith.constant 0 : index
    %c0_3 = arith.constant 0 : index
    %c0_4 = arith.constant 0 : index
    %5 = vector.load %arg2[%c0_2, %c0_3, %c0_4] : memref<1x128x512xbf16, #tpu.memory_space<vmem>>, vector<1x128x512xbf16>
    %6 = vector.shape_cast %5 : vector<1x128x512xbf16> to vector<128x512xbf16>
    %cst = arith.constant dense<0.000000e+00> : vector<8x512xf32>
    %7 = tpu.matmul %4, %6, %cst {dimension_numbers = #tpu.dot_dimension_numbers<[1], [0], [0], [1], [0, 0, 1, 1], [], []>} : vector<8x128xbf16>, vector<128x512xbf16>, vector<8x512xf32> -> vector<8x512xf32>
    %c0_5 = arith.constant 0 : index
    %c0_6 = arith.constant 0 : index
    %c0_7 = arith.constant 0 : index
    %8 = vector.load %arg3[%c0_5, %c0_6, %c0_7] : memref<1x1x512xf32, #tpu.memory_space<vmem>>, vector<1x1x512xf32>
    %9 = vector.shape_cast %8 : vector<1x1x512xf32> to vector<1x512xf32>
    %10 = vector.broadcast %9 : vector<1x512xf32> to vector<8x512xf32>
    %11 = arith.addf %7, %10 : vector<8x512xf32>
    %c0_8 = arith.constant 0 : index
    %c0_9 = arith.constant 0 : index
    %c0_10 = arith.constant 0 : index
    %12 = vector.load %arg4[%c0_8, %c0_9, %c0_10] : memref<1x128x512xbf16, #tpu.memory_space<vmem>>, vector<1x128x512xbf16>
    %13 = vector.shape_cast %12 : vector<1x128x512xbf16> to vector<128x512xbf16>
    %cst_11 = arith.constant dense<0.000000e+00> : vector<8x512xf32>
    %14 = tpu.matmul %4, %13, %cst_11 {dimension_numbers = #tpu.dot_dimension_numbers<[1], [0], [0], [1], [0, 0, 1, 1], [], []>} : vector<8x128xbf16>, vector<128x512xbf16>, vector<8x512xf32> -> vector<8x512xf32>
    %c0_12 = arith.constant 0 : index
    %c0_13 = arith.constant 0 : index
    %c0_14 = arith.constant 0 : index
    %15 = vector.load %arg5[%c0_12, %c0_13, %c0_14] : memref<1x1x512xf32, #tpu.memory_space<vmem>>, vector<1x1x512xf32>
    %16 = vector.shape_cast %15 : vector<1x1x512xf32> to vector<1x512xf32>
    %17 = vector.broadcast %16 : vector<1x512xf32> to vector<8x512xf32>
    %18 = arith.addf %14, %17 : vector<8x512xf32>
    %c0_15 = arith.constant 0 : index
    %c0_16 = arith.constant 0 : index
    %c0_17 = arith.constant 0 : index
    %19 = vector.load %arg6[%c0_15, %c0_16, %c0_17] : memref<1x128x512xbf16, #tpu.memory_space<vmem>>, vector<1x128x512xbf16>
    %20 = vector.shape_cast %19 : vector<1x128x512xbf16> to vector<128x512xbf16>
    %cst_18 = arith.constant dense<0.000000e+00> : vector<8x512xf32>
    %21 = tpu.matmul %4, %20, %cst_18 {dimension_numbers = #tpu.dot_dimension_numbers<[1], [0], [0], [1], [0, 0, 1, 1], [], []>} : vector<8x128xbf16>, vector<128x512xbf16>, vector<8x512xf32> -> vector<8x512xf32>
    %c0_19 = arith.constant 0 : index
    %c0_20 = arith.constant 0 : index
    %c0_21 = arith.constant 0 : index
    %22 = vector.load %arg7[%c0_19, %c0_20, %c0_21] : memref<1x1x512xf32, #tpu.memory_space<vmem>>, vector<1x1x512xf32>
    %23 = vector.shape_cast %22 : vector<1x1x512xf32> to vector<1x512xf32>
    %24 = vector.broadcast %23 : vector<1x512xf32> to vector<8x512xf32>
    %25 = arith.addf %21, %24 : vector<8x512xf32>
    %cst_22 = arith.constant 0.000000e+00 : f32
    %26 = vector.broadcast %cst_22 : f32 to vector<8x128xf32>
    %27 = vector.extract_strided_slice %11 {offsets = [0, 0], sizes = [8, 128], strides = [1, 1]} : vector<8x512xf32> to vector<8x128xf32>
    %28 = arith.truncf %27 : vector<8x128xf32> to vector<8x128xbf16>
    %29 = vector.extract_strided_slice %18 {offsets = [0, 0], sizes = [8, 128], strides = [1, 1]} : vector<8x512xf32> to vector<8x128xf32>
    %30 = arith.truncf %29 : vector<8x128xf32> to vector<8x128xbf16>
    %31 = vector.extract_strided_slice %25 {offsets = [0, 0], sizes = [8, 128], strides = [1, 1]} : vector<8x512xf32> to vector<8x128xf32>
    %32 = arith.truncf %31 : vector<8x128xf32> to vector<8x128xbf16>
    %cst_23 = arith.constant dense<0.000000e+00> : vector<8x8xf32>
    %33 = tpu.matmul %28, %30, %cst_23 {dimension_numbers = #tpu.dot_dimension_numbers<[1], [1], [0], [0], [0, 0, 1, 0], [], []>} : vector<8x128xbf16>, vector<8x128xbf16>, vector<8x8xf32> -> vector<8x8xf32>
    %cst_24 = arith.constant 0.0883883461 : f32
    %34 = vector.broadcast %cst_24 : f32 to vector<8x8xf32>
    %35 = arith.mulf %33, %34 : vector<8x8xf32>
    %cst_25 = arith.constant dense<0xFF800000> : vector<8xf32>
    %36 = vector.multi_reduction <maximumf>, %35, %cst_25 [1] : vector<8x8xf32> to vector<8xf32>
    %37 = vector.shape_cast %36 : vector<8xf32> to vector<8x1xf32>
    %38 = vector.broadcast %37 : vector<8x1xf32> to vector<8x8xf32>
    %39 = arith.subf %35, %38 : vector<8x8xf32>
    %40 = math.exp %39 : vector<8x8xf32>
    %cst_26 = arith.constant dense<0.000000e+00> : vector<8xf32>
    %41 = vector.multi_reduction <add>, %40, %cst_26 [1] : vector<8x8xf32> to vector<8xf32>
    %42 = vector.shape_cast %41 : vector<8xf32> to vector<8x1xf32>
    %43 = tpu.reciprocal %42 {approx = true} : vector<8x1xf32> -> vector<8x1xf32>
    %44 = vector.broadcast %43 : vector<8x1xf32> to vector<8x8xf32>
    %45 = arith.mulf %40, %44 : vector<8x8xf32>
    %46 = arith.truncf %45 : vector<8x8xf32> to vector<8x8xbf16>
    %cst_27 = arith.constant dense<0.000000e+00> : vector<8x128xf32>
    %47 = tpu.matmul %46, %32, %cst_27 {dimension_numbers = #tpu.dot_dimension_numbers<[1], [0], [0], [1], [0, 0, 1, 1], [], []>} : vector<8x8xbf16>, vector<8x128xbf16>, vector<8x128xf32> -> vector<8x128xf32>
    %48 = arith.truncf %47 : vector<8x128xf32> to vector<8x128xbf16>
    %c0_28 = arith.constant 0 : index
    %c0_29 = arith.constant 0 : index
    %c0_30 = arith.constant 0 : index
    %49 = vector.load %arg8[%c0_28, %c0_29, %c0_30] : memref<1x512x128xbf16, #tpu.memory_space<vmem>>, vector<1x128x128xbf16>
    %50 = vector.shape_cast %49 : vector<1x128x128xbf16> to vector<128x128xbf16>
    %cst_31 = arith.constant dense<0.000000e+00> : vector<8x128xf32>
    %51 = tpu.matmul %48, %50, %cst_31 {dimension_numbers = #tpu.dot_dimension_numbers<[1], [0], [0], [1], [0, 0, 1, 1], [], []>} : vector<8x128xbf16>, vector<128x128xbf16>, vector<8x128xf32> -> vector<8x128xf32>
    %52 = arith.addf %26, %51 : vector<8x128xf32>
    %53 = vector.extract_strided_slice %11 {offsets = [0, 128], sizes = [8, 128], strides = [1, 1]} : vector<8x512xf32> to vector<8x128xf32>
    %54 = arith.truncf %53 : vector<8x128xf32> to vector<8x128xbf16>
    %55 = vector.extract_strided_slice %18 {offsets = [0, 128], sizes = [8, 128], strides = [1, 1]} : vector<8x512xf32> to vector<8x128xf32>
    %56 = arith.truncf %55 : vector<8x128xf32> to vector<8x128xbf16>
    %57 = vector.extract_strided_slice %25 {offsets = [0, 128], sizes = [8, 128], strides = [1, 1]} : vector<8x512xf32> to vector<8x128xf32>
    %58 = arith.truncf %57 : vector<8x128xf32> to vector<8x128xbf16>
    %cst_32 = arith.constant dense<0.000000e+00> : vector<8x8xf32>
    %59 = tpu.matmul %54, %56, %cst_32 {dimension_numbers = #tpu.dot_dimension_numbers<[1], [1], [0], [0], [0, 0, 1, 0], [], []>} : vector<8x128xbf16>, vector<8x128xbf16>, vector<8x8xf32> -> vector<8x8xf32>
    %cst_33 = arith.constant 0.0883883461 : f32
    %60 = vector.broadcast %cst_33 : f32 to vector<8x8xf32>
    %61 = arith.mulf %59, %60 : vector<8x8xf32>
    %cst_34 = arith.constant dense<0xFF800000> : vector<8xf32>
    %62 = vector.multi_reduction <maximumf>, %61, %cst_34 [1] : vector<8x8xf32> to vector<8xf32>
    %63 = vector.shape_cast %62 : vector<8xf32> to vector<8x1xf32>
    %64 = vector.broadcast %63 : vector<8x1xf32> to vector<8x8xf32>
    %65 = arith.subf %61, %64 : vector<8x8xf32>
    %66 = math.exp %65 : vector<8x8xf32>
    %cst_35 = arith.constant dense<0.000000e+00> : vector<8xf32>
    %67 = vector.multi_reduction <add>, %66, %cst_35 [1] : vector<8x8xf32> to vector<8xf32>
    %68 = vector.shape_cast %67 : vector<8xf32> to vector<8x1xf32>
    %69 = tpu.reciprocal %68 {approx = true} : vector<8x1xf32> -> vector<8x1xf32>
    %70 = vector.broadcast %69 : vector<8x1xf32> to vector<8x8xf32>
    %71 = arith.mulf %66, %70 : vector<8x8xf32>
    %72 = arith.truncf %71 : vector<8x8xf32> to vector<8x8xbf16>
    %cst_36 = arith.constant dense<0.000000e+00> : vector<8x128xf32>
    %73 = tpu.matmul %72, %58, %cst_36 {dimension_numbers = #tpu.dot_dimension_numbers<[1], [0], [0], [1], [0, 0, 1, 1], [], []>} : vector<8x8xbf16>, vector<8x128xbf16>, vector<8x128xf32> -> vector<8x128xf32>
    %74 = arith.truncf %73 : vector<8x128xf32> to vector<8x128xbf16>
    %c0_37 = arith.constant 0 : index
    %c128 = arith.constant 128 : index
    %c0_38 = arith.constant 0 : index
    %75 = vector.load %arg8[%c0_37, %c128, %c0_38] : memref<1x512x128xbf16, #tpu.memory_space<vmem>>, vector<1x128x128xbf16>
    %76 = vector.shape_cast %75 : vector<1x128x128xbf16> to vector<128x128xbf16>
    %cst_39 = arith.constant dense<0.000000e+00> : vector<8x128xf32>
    %77 = tpu.matmul %74, %76, %cst_39 {dimension_numbers = #tpu.dot_dimension_numbers<[1], [0], [0], [1], [0, 0, 1, 1], [], []>} : vector<8x128xbf16>, vector<128x128xbf16>, vector<8x128xf32> -> vector<8x128xf32>
    %78 = arith.addf %52, %77 : vector<8x128xf32>
    %79 = vector.extract_strided_slice %11 {offsets = [0, 256], sizes = [8, 128], strides = [1, 1]} : vector<8x512xf32> to vector<8x128xf32>
    %80 = arith.truncf %79 : vector<8x128xf32> to vector<8x128xbf16>
    %81 = vector.extract_strided_slice %18 {offsets = [0, 256], sizes = [8, 128], strides = [1, 1]} : vector<8x512xf32> to vector<8x128xf32>
    %82 = arith.truncf %81 : vector<8x128xf32> to vector<8x128xbf16>
    %83 = vector.extract_strided_slice %25 {offsets = [0, 256], sizes = [8, 128], strides = [1, 1]} : vector<8x512xf32> to vector<8x128xf32>
    %84 = arith.truncf %83 : vector<8x128xf32> to vector<8x128xbf16>
    %cst_40 = arith.constant dense<0.000000e+00> : vector<8x8xf32>
    %85 = tpu.matmul %80, %82, %cst_40 {dimension_numbers = #tpu.dot_dimension_numbers<[1], [1], [0], [0], [0, 0, 1, 0], [], []>} : vector<8x128xbf16>, vector<8x128xbf16>, vector<8x8xf32> -> vector<8x8xf32>
    %cst_41 = arith.constant 0.0883883461 : f32
    %86 = vector.broadcast %cst_41 : f32 to vector<8x8xf32>
    %87 = arith.mulf %85, %86 : vector<8x8xf32>
    %cst_42 = arith.constant dense<0xFF800000> : vector<8xf32>
    %88 = vector.multi_reduction <maximumf>, %87, %cst_42 [1] : vector<8x8xf32> to vector<8xf32>
    %89 = vector.shape_cast %88 : vector<8xf32> to vector<8x1xf32>
    %90 = vector.broadcast %89 : vector<8x1xf32> to vector<8x8xf32>
    %91 = arith.subf %87, %90 : vector<8x8xf32>
    %92 = math.exp %91 : vector<8x8xf32>
    %cst_43 = arith.constant dense<0.000000e+00> : vector<8xf32>
    %93 = vector.multi_reduction <add>, %92, %cst_43 [1] : vector<8x8xf32> to vector<8xf32>
    %94 = vector.shape_cast %93 : vector<8xf32> to vector<8x1xf32>
    %95 = tpu.reciprocal %94 {approx = true} : vector<8x1xf32> -> vector<8x1xf32>
    %96 = vector.broadcast %95 : vector<8x1xf32> to vector<8x8xf32>
    %97 = arith.mulf %92, %96 : vector<8x8xf32>
    %98 = arith.truncf %97 : vector<8x8xf32> to vector<8x8xbf16>
    %cst_44 = arith.constant dense<0.000000e+00> : vector<8x128xf32>
    %99 = tpu.matmul %98, %84, %cst_44 {dimension_numbers = #tpu.dot_dimension_numbers<[1], [0], [0], [1], [0, 0, 1, 1], [], []>} : vector<8x8xbf16>, vector<8x128xbf16>, vector<8x128xf32> -> vector<8x128xf32>
    %100 = arith.truncf %99 : vector<8x128xf32> to vector<8x128xbf16>
    %c0_45 = arith.constant 0 : index
    %c256 = arith.constant 256 : index
    %c0_46 = arith.constant 0 : index
    %101 = vector.load %arg8[%c0_45, %c256, %c0_46] : memref<1x512x128xbf16, #tpu.memory_space<vmem>>, vector<1x128x128xbf16>
    %102 = vector.shape_cast %101 : vector<1x128x128xbf16> to vector<128x128xbf16>
    %cst_47 = arith.constant dense<0.000000e+00> : vector<8x128xf32>
    %103 = tpu.matmul %100, %102, %cst_47 {dimension_numbers = #tpu.dot_dimension_numbers<[1], [0], [0], [1], [0, 0, 1, 1], [], []>} : vector<8x128xbf16>, vector<128x128xbf16>, vector<8x128xf32> -> vector<8x128xf32>
    %104 = arith.addf %78, %103 : vector<8x128xf32>
    %105 = vector.extract_strided_slice %11 {offsets = [0, 384], sizes = [8, 128], strides = [1, 1]} : vector<8x512xf32> to vector<8x128xf32>
    %106 = arith.truncf %105 : vector<8x128xf32> to vector<8x128xbf16>
    %107 = vector.extract_strided_slice %18 {offsets = [0, 384], sizes = [8, 128], strides = [1, 1]} : vector<8x512xf32> to vector<8x128xf32>
    %108 = arith.truncf %107 : vector<8x128xf32> to vector<8x128xbf16>
    %109 = vector.extract_strided_slice %25 {offsets = [0, 384], sizes = [8, 128], strides = [1, 1]} : vector<8x512xf32> to vector<8x128xf32>
    %110 = arith.truncf %109 : vector<8x128xf32> to vector<8x128xbf16>
    %cst_48 = arith.constant dense<0.000000e+00> : vector<8x8xf32>
    %111 = tpu.matmul %106, %108, %cst_48 {dimension_numbers = #tpu.dot_dimension_numbers<[1], [1], [0], [0], [0, 0, 1, 0], [], []>} : vector<8x128xbf16>, vector<8x128xbf16>, vector<8x8xf32> -> vector<8x8xf32>
    %cst_49 = arith.constant 0.0883883461 : f32
    %112 = vector.broadcast %cst_49 : f32 to vector<8x8xf32>
    %113 = arith.mulf %111, %112 : vector<8x8xf32>
    %cst_50 = arith.constant dense<0xFF800000> : vector<8xf32>
    %114 = vector.multi_reduction <maximumf>, %113, %cst_50 [1] : vector<8x8xf32> to vector<8xf32>
    %115 = vector.shape_cast %114 : vector<8xf32> to vector<8x1xf32>
    %116 = vector.broadcast %115 : vector<8x1xf32> to vector<8x8xf32>
    %117 = arith.subf %113, %116 : vector<8x8xf32>
    %118 = math.exp %117 : vector<8x8xf32>
    %cst_51 = arith.constant dense<0.000000e+00> : vector<8xf32>
    %119 = vector.multi_reduction <add>, %118, %cst_51 [1] : vector<8x8xf32> to vector<8xf32>
    %120 = vector.shape_cast %119 : vector<8xf32> to vector<8x1xf32>
    %121 = tpu.reciprocal %120 {approx = true} : vector<8x1xf32> -> vector<8x1xf32>
    %122 = vector.broadcast %121 : vector<8x1xf32> to vector<8x8xf32>
    %123 = arith.mulf %118, %122 : vector<8x8xf32>
    %124 = arith.truncf %123 : vector<8x8xf32> to vector<8x8xbf16>
    %cst_52 = arith.constant dense<0.000000e+00> : vector<8x128xf32>
    %125 = tpu.matmul %124, %110, %cst_52 {dimension_numbers = #tpu.dot_dimension_numbers<[1], [0], [0], [1], [0, 0, 1, 1], [], []>} : vector<8x8xbf16>, vector<8x128xbf16>, vector<8x128xf32> -> vector<8x128xf32>
    %126 = arith.truncf %125 : vector<8x128xf32> to vector<8x128xbf16>
    %c0_53 = arith.constant 0 : index
    %c384 = arith.constant 384 : index
    %c0_54 = arith.constant 0 : index
    %127 = vector.load %arg8[%c0_53, %c384, %c0_54] : memref<1x512x128xbf16, #tpu.memory_space<vmem>>, vector<1x128x128xbf16>
    %128 = vector.shape_cast %127 : vector<1x128x128xbf16> to vector<128x128xbf16>
    %cst_55 = arith.constant dense<0.000000e+00> : vector<8x128xf32>
    %129 = tpu.matmul %126, %128, %cst_55 {dimension_numbers = #tpu.dot_dimension_numbers<[1], [0], [0], [1], [0, 0, 1, 1], [], []>} : vector<8x128xbf16>, vector<128x128xbf16>, vector<8x128xf32> -> vector<8x128xf32>
    %130 = arith.addf %104, %129 : vector<8x128xf32>
    %c0_56 = arith.constant 0 : index
    %c0_57 = arith.constant 0 : index
    %c0_58 = arith.constant 0 : index
    %131 = vector.load %arg9[%c0_56, %c0_57, %c0_58] : memref<1x1x128xf32, #tpu.memory_space<vmem>>, vector<1x1x128xf32>
    %132 = vector.shape_cast %131 : vector<1x1x128xf32> to vector<1x128xf32>
    %133 = vector.broadcast %132 : vector<1x128xf32> to vector<8x128xf32>
    %134 = arith.addf %130, %133 : vector<8x128xf32>
    %135 = arith.addf %3, %134 : vector<8x128xf32>
    %cst_59 = arith.constant dense<0.000000e+00> : vector<8xf32>
    %136 = vector.multi_reduction <add>, %135, %cst_59 [1] : vector<8x128xf32> to vector<8xf32>
    %137 = vector.shape_cast %136 : vector<8xf32> to vector<8x1xf32>
    %cst_60 = arith.constant 1.280000e+02 : f32
    %138 = vector.broadcast %cst_60 : f32 to vector<8x1xf32>
    %139 = arith.divf %137, %138 : vector<8x1xf32>
    %140 = vector.broadcast %139 : vector<8x1xf32> to vector<8x128xf32>
    %141 = arith.subf %135, %140 : vector<8x128xf32>
    %142 = arith.mulf %141, %141 : vector<8x128xf32>
    %cst_61 = arith.constant dense<0.000000e+00> : vector<8xf32>
    %143 = vector.multi_reduction <add>, %142, %cst_61 [1] : vector<8x128xf32> to vector<8xf32>
    %144 = vector.shape_cast %143 : vector<8xf32> to vector<8x1xf32>
    %cst_62 = arith.constant 1.280000e+02 : f32
    %145 = vector.broadcast %cst_62 : f32 to vector<8x1xf32>
    %146 = arith.divf %144, %145 : vector<8x1xf32>
    %147 = vector.broadcast %139 : vector<8x1xf32> to vector<8x128xf32>
    %148 = arith.subf %135, %147 : vector<8x128xf32>
    %cst_63 = arith.constant 9.99999974E-6 : f32
    %149 = vector.broadcast %cst_63 : f32 to vector<8x1xf32>
    %150 = arith.addf %146, %149 : vector<8x1xf32>
    %151 = math.rsqrt %150 : vector<8x1xf32>
    %152 = vector.broadcast %151 : vector<8x1xf32> to vector<8x128xf32>
    %153 = arith.mulf %148, %152 : vector<8x128xf32>
    %c0_64 = arith.constant 0 : index
    %c0_65 = arith.constant 0 : index
    %c0_66 = arith.constant 0 : index
    %154 = vector.load %arg10[%c0_64, %c0_65, %c0_66] : memref<1x1x128xf32, #tpu.memory_space<vmem>>, vector<1x1x128xf32>
    %155 = vector.shape_cast %154 : vector<1x1x128xf32> to vector<1x128xf32>
    %156 = vector.broadcast %155 : vector<1x128xf32> to vector<8x128xf32>
    %157 = arith.mulf %153, %156 : vector<8x128xf32>
    %c0_67 = arith.constant 0 : index
    %c0_68 = arith.constant 0 : index
    %c0_69 = arith.constant 0 : index
    %158 = vector.load %arg11[%c0_67, %c0_68, %c0_69] : memref<1x1x128xf32, #tpu.memory_space<vmem>>, vector<1x1x128xf32>
    %159 = vector.shape_cast %158 : vector<1x1x128xf32> to vector<1x128xf32>
    %160 = vector.broadcast %159 : vector<1x128xf32> to vector<8x128xf32>
    %161 = arith.addf %157, %160 : vector<8x128xf32>
    %162 = arith.truncf %161 : vector<8x128xf32> to vector<8x128xbf16>
    %c0_70 = arith.constant 0 : index
    %c0_71 = arith.constant 0 : index
    %c0_72 = arith.constant 0 : index
    %163 = vector.load %arg12[%c0_70, %c0_71, %c0_72] : memref<1x128x512xbf16, #tpu.memory_space<vmem>>, vector<1x128x512xbf16>
    %164 = vector.shape_cast %163 : vector<1x128x512xbf16> to vector<128x512xbf16>
    %cst_73 = arith.constant dense<0.000000e+00> : vector<8x512xf32>
    %165 = tpu.matmul %162, %164, %cst_73 {dimension_numbers = #tpu.dot_dimension_numbers<[1], [0], [0], [1], [0, 0, 1, 1], [], []>} : vector<8x128xbf16>, vector<128x512xbf16>, vector<8x512xf32> -> vector<8x512xf32>
    %c0_74 = arith.constant 0 : index
    %c0_75 = arith.constant 0 : index
    %c0_76 = arith.constant 0 : index
    %166 = vector.load %arg13[%c0_74, %c0_75, %c0_76] : memref<1x1x512xf32, #tpu.memory_space<vmem>>, vector<1x1x512xf32>
    %167 = vector.shape_cast %166 : vector<1x1x512xf32> to vector<1x512xf32>
    %168 = vector.broadcast %167 : vector<1x512xf32> to vector<8x512xf32>
    %169 = arith.addf %165, %168 : vector<8x512xf32>
    %cst_77 = arith.constant 0.000000e+00 : f32
    %170 = vector.broadcast %cst_77 : f32 to vector<8x512xf32>
    %171 = arith.maximumf %169, %170 : vector<8x512xf32>
    %172 = arith.truncf %171 : vector<8x512xf32> to vector<8x512xbf16>
    %c0_78 = arith.constant 0 : index
    %c0_79 = arith.constant 0 : index
    %c0_80 = arith.constant 0 : index
    %173 = vector.load %arg14[%c0_78, %c0_79, %c0_80] : memref<1x512x128xbf16, #tpu.memory_space<vmem>>, vector<1x512x128xbf16>
    %174 = vector.shape_cast %173 : vector<1x512x128xbf16> to vector<512x128xbf16>
    %cst_81 = arith.constant dense<0.000000e+00> : vector<8x128xf32>
    %175 = tpu.matmul %172, %174, %cst_81 {dimension_numbers = #tpu.dot_dimension_numbers<[1], [0], [0], [1], [0, 0, 1, 1], [], []>} : vector<8x512xbf16>, vector<512x128xbf16>, vector<8x128xf32> -> vector<8x128xf32>
    %c0_82 = arith.constant 0 : index
    %c0_83 = arith.constant 0 : index
    %c0_84 = arith.constant 0 : index
    %176 = vector.load %arg15[%c0_82, %c0_83, %c0_84] : memref<1x1x128xf32, #tpu.memory_space<vmem>>, vector<1x1x128xf32>
    %177 = vector.shape_cast %176 : vector<1x1x128xf32> to vector<1x128xf32>
    %178 = vector.broadcast %177 : vector<1x128xf32> to vector<8x128xf32>
    %179 = arith.addf %175, %178 : vector<8x128xf32>
    %180 = arith.addf %161, %179 : vector<8x128xf32>
    %cst_85 = arith.constant dense<0.000000e+00> : vector<8xf32>
    %181 = vector.multi_reduction <add>, %180, %cst_85 [1] : vector<8x128xf32> to vector<8xf32>
    %182 = vector.shape_cast %181 : vector<8xf32> to vector<8x1xf32>
    %cst_86 = arith.constant 1.280000e+02 : f32
    %183 = vector.broadcast %cst_86 : f32 to vector<8x1xf32>
    %184 = arith.divf %182, %183 : vector<8x1xf32>
    %185 = vector.broadcast %184 : vector<8x1xf32> to vector<8x128xf32>
    %186 = arith.subf %180, %185 : vector<8x128xf32>
    %187 = arith.mulf %186, %186 : vector<8x128xf32>
    %cst_87 = arith.constant dense<0.000000e+00> : vector<8xf32>
    %188 = vector.multi_reduction <add>, %187, %cst_87 [1] : vector<8x128xf32> to vector<8xf32>
    %189 = vector.shape_cast %188 : vector<8xf32> to vector<8x1xf32>
    %cst_88 = arith.constant 1.280000e+02 : f32
    %190 = vector.broadcast %cst_88 : f32 to vector<8x1xf32>
    %191 = arith.divf %189, %190 : vector<8x1xf32>
    %192 = vector.broadcast %184 : vector<8x1xf32> to vector<8x128xf32>
    %193 = arith.subf %180, %192 : vector<8x128xf32>
    %cst_89 = arith.constant 9.99999974E-6 : f32
    %194 = vector.broadcast %cst_89 : f32 to vector<8x1xf32>
    %195 = arith.addf %191, %194 : vector<8x1xf32>
    %196 = math.rsqrt %195 : vector<8x1xf32>
    %197 = vector.broadcast %196 : vector<8x1xf32> to vector<8x128xf32>
    %198 = arith.mulf %193, %197 : vector<8x128xf32>
    %c0_90 = arith.constant 0 : index
    %c0_91 = arith.constant 0 : index
    %c0_92 = arith.constant 0 : index
    %199 = vector.load %arg16[%c0_90, %c0_91, %c0_92] : memref<1x1x128xf32, #tpu.memory_space<vmem>>, vector<1x1x128xf32>
    %200 = vector.shape_cast %199 : vector<1x1x128xf32> to vector<1x128xf32>
    %201 = vector.broadcast %200 : vector<1x128xf32> to vector<8x128xf32>
    %202 = arith.mulf %198, %201 : vector<8x128xf32>
    %c0_93 = arith.constant 0 : index
    %c0_94 = arith.constant 0 : index
    %c0_95 = arith.constant 0 : index
    %203 = vector.load %arg17[%c0_93, %c0_94, %c0_95] : memref<1x1x128xf32, #tpu.memory_space<vmem>>, vector<1x1x128xf32>
    %204 = vector.shape_cast %203 : vector<1x1x128xf32> to vector<1x128xf32>
    %205 = vector.broadcast %204 : vector<1x128xf32> to vector<8x128xf32>
    %206 = arith.addf %202, %205 : vector<8x128xf32>
    %c0_96 = arith.constant 0 : index
    %c0_97 = arith.constant 0 : index
    %207 = vector.load %arg21[%c0_96, %c0_97] : memref<8x128xf32, #tpu.memory_space<vmem>>, vector<8x128xf32>
    tpu.vector_store %arg21[%c0_96, %c0_97], %206 {strides = array<i32>} : memref<8x128xf32, #tpu.memory_space<vmem>>, vector<8x128xf32>,
    %c1_i32 = arith.constant 1 : i32
    %208 = arith.cmpi eq, %arg0, %c1_i32 : i32
    %209 = arith.extui %208 : i1 to i32
    %c0_i32_98 = arith.constant 0 : i32
    %210 = arith.cmpi ne, %209, %c0_i32_98 : i32
    scf.if %210 {
      %c0_99 = arith.constant 0 : index
      %c0_100 = arith.constant 0 : index
      %211 = vector.load %arg21[%c0_99, %c0_100] : memref<8x128xf32, #tpu.memory_space<vmem>>, vector<8x128xf32>
      %212 = math.tanh %211 : vector<8x128xf32>
      %213 = arith.truncf %212 : vector<8x128xf32> to vector<8x128xbf16>
      %c0_101 = arith.constant 0 : index
      %c0_102 = arith.constant 0 : index
      %214 = vector.load %arg18[%c0_101, %c0_102] : memref<128x128xbf16, #tpu.memory_space<vmem>>, vector<128x128xbf16>
      %cst_103 = arith.constant dense<0.000000e+00> : vector<8x128xf32>
      %215 = tpu.matmul %213, %214, %cst_103 {dimension_numbers = #tpu.dot_dimension_numbers<[1], [0], [0], [1], [0, 0, 1, 1], [], []>} : vector<8x128xbf16>, vector<128x128xbf16>, vector<8x128xf32> -> vector<8x128xf32>
      %c0_104 = arith.constant 0 : index
      %c0_105 = arith.constant 0 : index
      %216 = vector.load %arg19[%c0_104, %c0_105] : memref<1x128xf32, #tpu.memory_space<vmem>>, vector<1x128xf32>
      %217 = vector.broadcast %216 : vector<1x128xf32> to vector<8x128xf32>
      %218 = arith.addf %215, %217 : vector<8x128xf32>
      %c0_106 = arith.constant 0 : index
      %c0_107 = arith.constant 0 : index
      %219 = vector.load %arg20[%c0_106, %c0_107] : memref<8x128xf32, #tpu.memory_space<vmem>>, vector<8x128xf32>
      tpu.vector_store %arg20[%c0_106, %c0_107], %218 {strides = array<i32>} : memref<8x128xf32, #tpu.memory_space<vmem>>, vector<8x128xf32>,
    } else {
    }
    return
  }
  func.func @transform_0(%arg0: i32) -> (i32, i32) {
    %c0_i32 = arith.constant 0 : i32
    %c0_i32_0 = arith.constant 0 : i32
    %c0_i32_1 = arith.constant 0 : i32
    return %c0_i32, %c0_i32_0 : i32, i32
  }
  func.func @transform_1(%arg0: i32) -> (i32, i32, i32) {
    %c0_i32 = arith.constant 0 : i32
    %c0_i32_0 = arith.constant 0 : i32
    %c0_i32_1 = arith.constant 0 : i32
    return %arg0, %c0_i32, %c0_i32_0 : i32, i32, i32
  }
  func.func @transform_2(%arg0: i32) -> (i32, i32, i32) {
    %c0_i32 = arith.constant 0 : i32
    %c0_i32_0 = arith.constant 0 : i32
    %c0_i32_1 = arith.constant 0 : i32
    return %arg0, %c0_i32, %c0_i32_0 : i32, i32, i32
  }
  func.func @transform_3(%arg0: i32) -> (i32, i32, i32) {
    %c0_i32 = arith.constant 0 : i32
    %c0_i32_0 = arith.constant 0 : i32
    %c0_i32_1 = arith.constant 0 : i32
    return %arg0, %c0_i32, %c0_i32_0 : i32, i32, i32
  }
  func.func @transform_4(%arg0: i32) -> (i32, i32, i32) {
    %c0_i32 = arith.constant 0 : i32
    %c0_i32_0 = arith.constant 0 : i32
    %c0_i32_1 = arith.constant 0 : i32
    return %arg0, %c0_i32, %c0_i32_0 : i32, i32, i32
  }
  func.func @transform_5(%arg0: i32) -> (i32, i32, i32) {
    %c0_i32 = arith.constant 0 : i32
    %c0_i32_0 = arith.constant 0 : i32
    %c0_i32_1 = arith.constant 0 : i32
    return %arg0, %c0_i32, %c0_i32_0 : i32, i32, i32
  }
  func.func @transform_6(%arg0: i32) -> (i32, i32, i32) {
    %c0_i32 = arith.constant 0 : i32
    %c0_i32_0 = arith.constant 0 : i32
    %c0_i32_1 = arith.constant 0 : i32
    return %arg0, %c0_i32, %c0_i32_0 : i32, i32, i32
  }
  func.func @transform_7(%arg0: i32) -> (i32, i32, i32) {
    %c0_i32 = arith.constant 0 : i32
    %c0_i32_0 = arith.constant 0 : i32
    %c0_i32_1 = arith.constant 0 : i32
    return %arg0, %c0_i32, %c0_i32_0 : i32, i32, i32
  }
  func.func @transform_8(%arg0: i32) -> (i32, i32, i32) {
    %c0_i32 = arith.constant 0 : i32
    %c0_i32_0 = arith.constant 0 : i32
    %c0_i32_1 = arith.constant 0 : i32
    return %arg0, %c0_i32, %c0_i32_0 : i32, i32, i32
  }
  func.func @transform_9(%arg0: i32) -> (i32, i32, i32) {
    %c0_i32 = arith.constant 0 : i32
    %c0_i32_0 = arith.constant 0 : i32
    %c0_i32_1 = arith.constant 0 : i32
    return %arg0, %c0_i32, %c0_i32_0 : i32, i32, i32
  }
  func.func @transform_10(%arg0: i32) -> (i32, i32, i32) {
    %c0_i32 = arith.constant 0 : i32
    %c0_i32_0 = arith.constant 0 : i32
    %c0_i32_1 = arith.constant 0 : i32
    return %arg0, %c0_i32, %c0_i32_0 : i32, i32, i32
  }
  func.func @transform_11(%arg0: i32) -> (i32, i32, i32) {
    %c0_i32 = arith.constant 0 : i32
    %c0_i32_0 = arith.constant 0 : i32
    %c0_i32_1 = arith.constant 0 : i32
    return %arg0, %c0_i32, %c0_i32_0 : i32, i32, i32
  }
  func.func @transform_12(%arg0: i32) -> (i32, i32, i32) {
    %c0_i32 = arith.constant 0 : i32
    %c0_i32_0 = arith.constant 0 : i32
    %c0_i32_1 = arith.constant 0 : i32
    return %arg0, %c0_i32, %c0_i32_0 : i32, i32, i32
  }
  func.func @transform_13(%arg0: i32) -> (i32, i32, i32) {
    %c0_i32 = arith.constant 0 : i32
    %c0_i32_0 = arith.constant 0 : i32
    %c0_i32_1 = arith.constant 0 : i32
    return %arg0, %c0_i32, %c0_i32_0 : i32, i32, i32
  }
  func.func @transform_14(%arg0: i32) -> (i32, i32, i32) {
    %c0_i32 = arith.constant 0 : i32
    %c0_i32_0 = arith.constant 0 : i32
    %c0_i32_1 = arith.constant 0 : i32
    return %arg0, %c0_i32, %c0_i32_0 : i32, i32, i32
  }
  func.func @transform_15(%arg0: i32) -> (i32, i32, i32) {
    %c0_i32 = arith.constant 0 : i32
    %c0_i32_0 = arith.constant 0 : i32
    %c0_i32_1 = arith.constant 0 : i32
    return %arg0, %c0_i32, %c0_i32_0 : i32, i32, i32
  }
  func.func @transform_16(%arg0: i32) -> (i32, i32, i32) {
    %c0_i32 = arith.constant 0 : i32
    %c0_i32_0 = arith.constant 0 : i32
    %c0_i32_1 = arith.constant 0 : i32
    return %arg0, %c0_i32, %c0_i32_0 : i32, i32, i32
  }
  func.func @transform_17(%arg0: i32) -> (i32, i32) {
    %c0_i32 = arith.constant 0 : i32
    %c0_i32_0 = arith.constant 0 : i32
    %c0_i32_1 = arith.constant 0 : i32
    return %c0_i32, %c0_i32_0 : i32, i32
  }
  func.func @transform_18(%arg0: i32) -> (i32, i32) {
    %c0_i32 = arith.constant 0 : i32
    %c0_i32_0 = arith.constant 0 : i32
    %c0_i32_1 = arith.constant 0 : i32
    return %c0_i32, %c0_i32_0 : i32, i32
  }
  func.func @transform_19(%arg0: i32) -> (i32, i32) {
    %c0_i32 = arith.constant 0 : i32
    %c0_i32_0 = arith.constant 0 : i32
    %c0_i32_1 = arith.constant 0 : i32
    return %c0_i32, %c0_i32_0 : i32, i32
  }
}

</mosaic_0001>

<bundles_post_ra>
// kernel: tpu_custom_call.1
= control target key start
LH: loop header
LB: loop body
LE: loop exit
PB: predicated region body
PF: predicated region fallthrough
CT: control target
= control target key end

     0   :  { %s6819_s0 = inlined_call_operand.hbm [shape: f32[8,128], index: 0, kind: input, shape index: {}]   ;;  %s6820_s1 = inlined_call_operand.hbm [shape: bf16[2,128,512], index: 1, kind: input, shape index: {}]   ;;  %s6821_s2 = inlined_call_operand.hbm [shape: f32[2,1,512], index: 2, kind: input, shape index: {}]   ;;  %s6822_s3 = inlined_call_operand.hbm [shape: bf16[2,128,512], index: 3, kind: input, shape index: {}]   ;;  %s6823_s4 = inlined_call_operand.hbm [shape: f32[2,1,512], index: 4, kind: input, shape index: {}]   ;;  %s6824_s5 = inlined_call_operand.hbm [shape: bf16[2,128,512], index: 5, kind: input, shape index: {}]   ;;  %s6825_s6 = inlined_call_operand.hbm [shape: f32[2,1,512], index: 6, kind: input, shape index: {}]   ;;  %s6826_s7 = inlined_call_operand.hbm [shape: bf16[2,512,128], index: 7, kind: input, shape index: {}]   ;;  %s6827_s8 = inlined_call_operand.hbm [shape: f32[2,1,128], index: 8, kind: input, shape index: {}]   ;;  %s6828_s9 = inlined_call_operand.hbm [shape: f32[2,1,128], index: 9, kind: input, shape index: {}]   ;;  %s6829_s10 = inlined_call_operand.hbm [shape: f32[2,1,128], index: 10, kind: input, shape index: {}]   ;;  %s6830_s11 = inlined_call_operand.hbm [shape: bf16[2,128,512], index: 11, kind: input, shape index: {}]   ;;  %s6831_s12 = inlined_call_operand.hbm [shape: f32[2,1,512], index: 12, kind: input, shape index: {}]   ;;  %s6832_s13 = inlined_call_operand.hbm [shape: bf16[2,512,128], index: 13, kind: input, shape index: {}]   ;;  %s6833_s14 = inlined_call_operand.hbm [shape: f32[2,1,128], index: 14, kind: input, shape index: {}]   ;;  %s6834_s15 = inlined_call_operand.hbm [shape: f32[2,1,128], index: 15, kind: input, shape index: {}]   ;;  %s6835_s16 = inlined_call_operand.hbm [shape: f32[2,1,128], index: 16, kind: input, shape index: {}]   ;;  %s6836_s17 = inlined_call_operand.vmem [shape: bf16[128,128], index: 17, kind: input, shape index: {}]   ;;  %s6837_s18 = inlined_call_operand.vmem [shape: f32[1,128], index: 18, kind: input, shape index: {}]   ;;  %s6838_s19 = inlined_call_operand.hbm [shape: f32[8,128], index: 19, kind: output, shape index: {}]  }
   0x1   :  { %6875 = sst [smem:[#allocation48_spill]] %s6819_s0 }
   0x2   :  { %6876 = sst [smem:[#allocation49_spill]] %s6820_s1 }
   0x3   :  { %6877 = sst [smem:[#allocation50_spill]] %s6821_s2 }
   0x4   :  { %6878 = sst [smem:[#allocation51_spill]] %s6822_s3 }
   0x5   :  { %6879 = sst [smem:[#allocation52_spill]] %s6833_s14 }
   0x6   :  { %6880 = sst [smem:[#allocation53_spill]] %s6835_s16 }
   0x7   :  { %6881 = sst [smem:[#allocation54_spill]] %s6836_s17 }
   0x8   :  { %6882 = sst [smem:[#allocation55_spill]] %s6837_s18 }
   0x9   :  { %6883 = sst [smem:[#allocation56_spill]] %s6838_s19 }
   0xa   :  { %24 = vsyncpa [#allocation4], 0 }
   0xb   :  { %25 = vsyncpa [#allocation7], 0 }
   0xc   :  { %27 = vsyncpa [#allocation7 + $0x1], 0 }
   0xd   :  { %28 = vsyncpa [#allocation10], 0 }
   0xe   :  { %30 = vsyncpa [#allocation10 + $0x1], 0 }
   0xf   :  { %31 = vsyncpa [#allocation13], 0 }
  0x10   :  { %33 = vsyncpa [#allocation13 + $0x1], 0 }
  0x11   :  { %34 = vsyncpa [#allocation16], 0 }
  0x12   :  { %36 = vsyncpa [#allocation16 + $0x1], 0 }
  0x13   :  { %37 = vsyncpa [#allocation19], 0 }
  0x14   :  { %39 = vsyncpa [#allocation19 + $0x1], 0 }
  0x15   :  { %40 = vsyncpa [#allocation22], 0 }
  0x16   :  { %42 = vsyncpa [#allocation22 + $0x1], 0 }
  0x17   :  { %43 = vsyncpa [#allocation25], 0 }
  0x18   :  { %45 = vsyncpa [#allocation25 + $0x1], 0 }
  0x19   :  { %46 = vsyncpa [#allocation28], 0 }
  0x1a   :  { %48 = vsyncpa [#allocation28 + $0x1], 0 }
  0x1b   :  { %49 = vsyncpa [#allocation5], 0  ;;  %s5699_s0 = smov 0   ;;  %s5701_s30 = smov 0  }
  0x1c   :  { %s5703_s20 = smov 0   ;;  %s5705_s21 = smov 0  }
  0x1d LB: > { %6884 = sst [smem:[#allocation41_spill]] %s5562_s30  ;;  %s5718_s1 = sadd.s32 4294967295, %s5570_s21   ;;  %s5570_s21 = sphi %s5705_s21, %s6934_s21   ;;  %s5566_s20 = sphi %s5703_s20, %s6937_s20   ;;  %s5562_s30 = sphi %s5701_s30, %s6936_s30   ;;  %s5558_s0 = sphi %s5699_s0, %s6935_s0  }
  0x1e   : > { %6885 = sst [smem:[#allocation42_spill]] %s5566_s20  ;;  %s5721_s22 = sadd.s32 1, %s5570_s21  }
  0x1f   : > { %6886 = sst [smem:[#allocation43_spill]] %s5718_s1  ;;  %s80_s2 = ssub.s32 %s5570_s21, %s5721_s22 }
  0x20   : > { %6887 = sst [smem:[#allocation44_spill]] %s5721_s22  ;;  %s83_s23 = sadd.s32 1, %s5566_s20 }
  0x21   : > { %p81_p0 = scmp.eq.s32.totalorder %s80_s2, 0  ;;  %p90_p1 = scmp.ne.s32.totalorder %s5566_s20, %s5562_s30 }
  0x22   : > { %p91_p2 = scmp.eq.s32.totalorder %s5570_s21, 0  ;;  %p96_p3 = scmp.ne.s32.totalorder %s5562_s30, %s5558_s0 }
  0x23   : > { %s5731_s24 = scalar_select %p81_p0, %s5566_s20, %s83_s23  }
  0x24   : > { %p5733_p4 = por %p91_p2, %p90_p1  ;;  %p6847_p5 = scmp.eq.s32.totalorder %s5718_s1, 0 }
  0x25   : > { %6888 = sst [smem:[#allocation45_spill]] %s5731_s24  ;;  %p4089_p6 = scmp.ge.s32.totalorder %s5570_s21, 1 }
  0x26   : > { %s6889_s25 = scalar_select %p5733_p4, 1, 0 }
  0x27   : > { %p560_p7 = scmp.lt.s32.totalorder %s5570_s21, 3  ;;  %p5742_p8 = por %p6847_p5, %p96_p3 }
  0x28   : > { %s5572_s27 = smov [#allocation3]   ;;  %s6895_s23 = sld [smem:[#allocation48_spill]] }
  0x29   : > { %s6890_s3 = scalar_select %p5742_p8, 1, 0 }
  0x2a   : > { %p5747_p10 = pnand %p4089_p6, %p560_p7  ;;  %s573_s28 = sshll.u32 %s5572_s27, 4  ;;  %s574_s28 = int_to_ptr.vmem [resolvable:$true] %s573_s28 }
  0x2b   : > { %6891 = sst [smem:[#allocation46_spill]] %s6890_s3 }
  0x2c   : > { %s6892_s26 = scalar_select %p5747_p10, 1, 0 }
  0x2d   : > { %p4660_p11 = pneg %p5747_p10 }
  0x2e   : > { %6893 = sst [smem:[#allocation47_spill]] %s6892_s26  ;;  %s4998_s24 = scalar_lea.hbm %s6895_s23, 128 }
  0x2f   : > { %p5755_p12 = pnand %p4660_p11, %p6847_p5  ;;  %p4999_p13 = scmp.ne.s32.totalorder %s6895_s23, %s4998_s24 }
  0x30   : > { %p5005_p3 = scmp.lt.u32.totalorder %s4998_s24, %s6895_s23 }
  0x31   : > { %p5000_p0 = pneg %p5755_p12 }
  0x33   : > { %p5001_p1 = pnand %p5000_p0, %p4999_p13 }
  0x35   : > { %p5002_p2 = pneg %p5001_p1 }
  0x37   : > { %p5007_p6 = pnand %p5005_p3, %p5002_p2 }
  0x39   : > { %5010 = shalt.err (!%p5007_p6)
}
  0x3a   : > { %s5011_s17 = scalar_lea.vmem %s574_s28, 128  ;;  %p5019_p5 = scmp.lt.s32.totalorder %s574_s28, %s574_s28 }
  0x3b   : > { %p5012_p7 = scmp.ne.s32.totalorder %s574_s28, %s5011_s17  ;;  %p5020_p8 = scmp.lt.s32.totalorder %s5011_s17, %s5011_s17 }
  0x3d   : > { %p5014_p11 = pnand %p5012_p7, %p5000_p0  ;;  %p5021_p10 = por %p5020_p8, %p5019_p5 }
  0x3f   : > { %p5015_p9 = pneg %p5014_p11 }
  0x41   : > { %p5022_p4 = pnand %p5021_p10, %p5015_p9 }
  0x43   : > { %5025 = shalt.err (!%p5022_p4)
}
  0x44   : > { %4663 = dma.hbm_to_vmem [thread:$0]  (!%p5755_p12), %s6895_s23, 128, %s574_s28, [#allocation4]  }
  0x45   : > { %p4091_p13 = scmp.ge.s32.totalorder %s5570_s21, 2 }
  0x46   : > { %s5777_s18 = sand.u32 (!%p4091_p13), 1, %s5570_s21   ;;  %s5780_s17 = sand.u32 (!%p4091_p13), 1, %s5566_s20  }
  0x47   : > { %586 = sbr.rel (%p4091_p13) target bundleno = 481 (0x1e1), region = 28  ;;  %s5783_s24 = sshll.u32 (!%p4091_p13), %s5780_s17, 8 }
  0x48   : > { %s5786_s29 = sshll.u32 (!%p4091_p13), %s5570_s21, 12  ;;  %s6896_s2 = sld [smem:[#allocation49_spill]] (!%p4091_p13) }
  0x49   : > { %s594_s19 = scalar_lea.vmem (!%p4091_p13), [#allocation6], %s5783_s24  ;;  %s6865_s23 = scalar_lea.sflag (!%p4091_p13), [#allocation7], %s5777_s18 }
  0x4a   : > { %s601_s22 = sshll.u32 (!%p4091_p13), %s594_s19, 4  ;;  %p6897_p5 = scmp.ne.s32.totalorder (!%p4091_p13), %s6889_s25, 0  ;;  %s5795_s22 = int_to_ptr.vmem [resolvable:$true] %s601_s22 }
  0x4e   : > { %s5792_s27 = scalar_lea.hbm %s6896_s2, %s5786_s29  ;;  %s5030_s28 = scalar_lea.hbm %s6896_s2, 8192 }
  0x4f   : > { %s5026_s20 = scalar_lea.hbm %s5792_s27, 4096  ;;  %p5031_p10 = scmp.lt.u32.totalorder %s5792_s27, %s6896_s2 }
  0x50   : > { %p5027_p4 = scmp.ne.s32.totalorder %s5792_s27, %s5026_s20  ;;  %p5032_p12 = scmp.lt.u32.totalorder %s5030_s28, %s5026_s20 }
  0x51   : > { %p5034_p1 = scmp.lt.u32.totalorder %s5026_s20, %s5792_s27 }
  0x52   : > { %p5028_p8 = pnand %p5027_p4, %p6897_p5  ;;  %p5033_p0 = por %p5032_p12, %p5031_p10 }
  0x54   : > { %p5029_p9 = pneg %p5028_p8  ;;  %p5035_p2 = por %p5034_p1, %p5033_p0 }
  0x56   : > { %p5036_p3 = pnand %p5035_p2, %p5029_p9 }
  0x58   : > { %5039 = shalt.err (!%p5036_p3)
}
  0x59   : > { %s5040_s19 = scalar_lea.vmem %s5795_s22, 4096  ;;  %s5573_s30 = smov [#allocation6]  }
  0x5a   : > { %p5041_p6 = scmp.ne.s32.totalorder %s5795_s22, %s5040_s19  ;;  %s5044_s3 = sshll.u32 %s5573_s30, 4  ;;  %s5045_s3 = int_to_ptr.vmem [resolvable:$false] %s5044_s3 }
  0x5b   : > { %s5046_s1 = scalar_lea.vmem %s5045_s3, 8192  ;;  %p5047_p13 = scmp.lt.s32.totalorder %s5795_s22, %s5045_s3 }
  0x5c   : > { %p5042_p7 = pnand %p5041_p6, %p6897_p5  ;;  %p5048_p4 = scmp.lt.s32.totalorder %s5046_s1, %s5040_s19 }
  0x5e   : > { %p5043_p11 = pneg %p5042_p7  ;;  %p5049_p8 = por %p5048_p4, %p5047_p13 }
  0x60   : > { %p5050_p10 = pnand %p5049_p8, %p5043_p11 }
  0x62   : > { %5053 = shalt.err (!%p5050_p10)
}
  0x63   : > { %s6866_s20 = smov 256   ;;  %s6867_s28 = smov 16  }
  0x64   : > { %4622 = dma.hbm_to_vmem [thread:$0]  (%p6897_p5), %s5792_s27, 4096, %s5795_s22, %s6865_s23, %s6866_s20, %s6866_s20, %s6867_s28  }
  0x65   : > { %s6898_s30 = sld [smem:[#allocation51_spill]]  ;;  %s634_s2 = scalar_lea.vmem [#allocation9], %s5783_s24 }
  0x66   : > { %s641_s26 = sshll.u32 %s634_s2, 4  ;;  %s6863_s16 = scalar_lea.sflag [#allocation10], %s5777_s18  ;;  %s5831_s26 = int_to_ptr.vmem [resolvable:$true] %s641_s26 }
  0x6b   : > { %s6899_s3 = smov %s6898_s30  ;;  %s5828_s1 = scalar_lea.hbm %s6898_s30, %s5786_s29 }
  0x6c   : > { %s5054_s14 = scalar_lea.hbm %s5828_s1, 4096  ;;  %s5058_s0 = scalar_lea.hbm %s6899_s3, 8192 }
  0x6d   : > { %p5055_p9 = scmp.ne.s32.totalorder %s5828_s1, %s5054_s14  ;;  %p5059_p1 = scmp.lt.u32.totalorder %s5828_s1, %s6899_s3 }
  0x6e   : > { %p5060_p2 = scmp.lt.u32.totalorder %s5058_s0, %s5054_s14  ;;  %p5062_p6 = scmp.lt.u32.totalorder %s5054_s14, %s5828_s1 }
  0x6f   : > { %p5056_p12 = pnand %p5055_p9, %p6897_p5 }
  0x70   : > { %p5061_p3 = por %p5060_p2, %p5059_p1 }
  0x71   : > { %p5057_p0 = pneg %p5056_p12 }
  0x72   : > { %p5063_p7 = por %p5062_p6, %p5061_p3 }
  0x74   : > { %p5064_p11 = pnand %p5063_p7, %p5057_p0 }
  0x76   : > { %5067 = shalt.err (!%p5064_p11)
}
  0x77   : > { %s5068_s2 = scalar_lea.vmem %s5831_s26, 4096  ;;  %s5576_s27 = smov [#allocation9]  }
  0x78   : > { %p5069_p13 = scmp.ne.s32.totalorder %s5831_s26, %s5068_s2  ;;  %s5072_s22 = sshll.u32 %s5576_s27, 4  ;;  %s5073_s22 = int_to_ptr.vmem [resolvable:$false] %s5072_s22 }
  0x79   : > { %s5074_s19 = scalar_lea.vmem %s5073_s22, 8192  ;;  %p5075_p10 = scmp.lt.s32.totalorder %s5831_s26, %s5073_s22 }
  0x7a   : > { %p5070_p4 = pnand %p5069_p13, %p6897_p5  ;;  %p5076_p9 = scmp.lt.s32.totalorder %s5074_s19, %s5068_s2 }
  0x7c   : > { %p5071_p8 = pneg %p5070_p4  ;;  %p5077_p12 = por %p5076_p9, %p5075_p10 }
  0x7e   : > { %p5078_p1 = pnand %p5077_p12, %p5071_p8 }
  0x80   : > { %5081 = shalt.err (!%p5078_p1)
}
  0x81   : > { %4624 = dma.hbm_to_vmem [thread:$0]  (%p6897_p5), %s5828_s1, 4096, %s5831_s26, %s6863_s16, %s6866_s20, %s6866_s20, %s6867_s28  }
  0x82   : > { %s5864_s30 = scalar_lea.hbm %s6824_s5, %s5786_s29  ;;  %s674_s2 = scalar_lea.vmem [#allocation12], %s5783_s24 }
  0x83   : > { %s681_s27 = sshll.u32 %s674_s2, 4  ;;  %s6864_s22 = scalar_lea.sflag [#allocation13], %s5777_s18  ;;  %s5867_s27 = int_to_ptr.vmem [resolvable:$true] %s681_s27 }
  0x84   : > { %s5082_s19 = scalar_lea.hbm %s5864_s30, 4096  ;;  %s5086_s14 = scalar_lea.hbm %s6824_s5, 8192 }
  0x85   : > { %p5083_p0 = scmp.ne.s32.totalorder %s5864_s30, %s5082_s19  ;;  %p5087_p6 = scmp.lt.u32.totalorder %s5864_s30, %s6824_s5 }
  0x86   : > { %p5088_p7 = scmp.lt.u32.totalorder %s5086_s14, %s5082_s19  ;;  %p5090_p13 = scmp.lt.u32.totalorder %s5082_s19, %s5864_s30 }
  0x87   : > { %p5084_p2 = pnand %p5083_p0, %p6897_p5 }
  0x88   : > { %p5089_p11 = por %p5088_p7, %p5087_p6 }
  0x89   : > { %p5085_p3 = pneg %p5084_p2 }
  0x8a   : > { %p5091_p4 = por %p5090_p13, %p5089_p11 }
  0x8c   : > { %p5092_p8 = pnand %p5091_p4, %p5085_p3 }
  0x8e   : > { %5095 = shalt.err (!%p5092_p8)
}
  0x8f   : > { %s5096_s2 = scalar_lea.vmem %s5867_s27, 4096  ;;  %s5577_s26 = smov [#allocation12]  }
  0x90   : > { %p5097_p10 = scmp.ne.s32.totalorder %s5867_s27, %s5096_s2  ;;  %s5100_s1 = sshll.u32 %s5577_s26, 4  ;;  %s5101_s1 = int_to_ptr.vmem [resolvable:$false] %s5100_s1 }
  0x91   : > { %s5102_s16 = scalar_lea.vmem %s5101_s1, 8192  ;;  %p5103_p1 = scmp.lt.s32.totalorder %s5867_s27, %s5101_s1 }
  0x92   : > { %p5098_p9 = pnand %p5097_p10, %p6897_p5  ;;  %p5104_p0 = scmp.lt.s32.totalorder %s5102_s16, %s5096_s2 }
  0x94   : > { %p5099_p12 = pneg %p5098_p9  ;;  %p5105_p2 = por %p5104_p0, %p5103_p1 }
  0x96   : > { %p5106_p6 = pnand %p5105_p2, %p5099_p12 }
  0x98   : > { %5109 = shalt.err (!%p5106_p6)
}
  0x99   : > { %4626 = dma.hbm_to_vmem [thread:$0]  (%p6897_p5), %s5864_s30, 4096, %s5867_s27, %s6864_s22, %s6866_s20, %s6866_s20, %s6867_s28  }
  0x9a   : > { %s5900_s0 = scalar_lea.hbm %s6826_s7, %s5786_s29  ;;  %s714_s2 = scalar_lea.vmem [#allocation15], %s5783_s24 }
  0x9b   : > { %s721_s26 = sshll.u32 %s714_s2, 4  ;;  %s6868_s1 = scalar_lea.sflag [#allocation16], %s5777_s18  ;;  %s5903_s26 = int_to_ptr.vmem [resolvable:$true] %s721_s26 }
  0x9c   : > { %s5110_s16 = scalar_lea.hbm %s5900_s0, 4096  ;;  %s5114_s19 = scalar_lea.hbm %s6826_s7, 8192 }
  0x9d   : > { %p5111_p3 = scmp.ne.s32.totalorder %s5900_s0, %s5110_s16  ;;  %p5115_p13 = scmp.lt.u32.totalorder %s5900_s0, %s6826_s7 }
  0x9e   : > { %p5116_p4 = scmp.lt.u32.totalorder %s5114_s19, %s5110_s16  ;;  %p5118_p10 = scmp.lt.u32.totalorder %s5110_s16, %s5900_s0 }
  0x9f   : > { %p5112_p7 = pnand %p5111_p3, %p6897_p5 }
  0xa0   : > { %p5117_p8 = por %p5116_p4, %p5115_p13 }
  0xa1   : > { %p5113_p11 = pneg %p5112_p7 }
  0xa2   : > { %p5119_p9 = por %p5118_p10, %p5117_p8 }
  0xa4   : > { %p5120_p12 = pnand %p5119_p9, %p5113_p11 }
  0xa6   : > { %5123 = shalt.err (!%p5120_p12)
}
  0xa7   : > { %s5124_s2 = scalar_lea.vmem %s5903_s26, 4096  ;;  %s5578_s30 = smov [#allocation15]  }
  0xa8   : > { %p5125_p1 = scmp.ne.s32.totalorder %s5903_s26, %s5124_s2  ;;  %s5128_s27 = sshll.u32 %s5578_s30, 4  ;;  %s5129_s27 = int_to_ptr.vmem [resolvable:$false] %s5128_s27 }
  0xa9   : > { %s5130_s22 = scalar_lea.vmem %s5129_s27, 8192  ;;  %p5131_p6 = scmp.lt.s32.totalorder %s5903_s26, %s5129_s27 }
  0xaa   : > { %p5126_p0 = pnand %p5125_p1, %p6897_p5  ;;  %p5132_p3 = scmp.lt.s32.totalorder %s5130_s22, %s5124_s2 }
  0xac   : > { %p5127_p2 = pneg %p5126_p0  ;;  %p5133_p7 = por %p5132_p3, %p5131_p6 }
  0xae   : > { %p5134_p13 = pnand %p5133_p7, %p5127_p2 }
  0xb0   : > { %5137 = shalt.err (!%p5134_p13)
}
  0xb1   : > { %s6869_s16 = smov 64   ;;  %s6870_s19 = smov 4  }
  0xb2   : > { %4628 = dma.hbm_to_vmem [thread:$0]  (%p6897_p5), %s5900_s0, 4096, %s5903_s26, %s6868_s1, %s6869_s16, %s6869_s16, %s6870_s19  }
  0xb3   : > { %s5933_s14 = sshll.u32 %s5570_s21, 4  ;;  %s751_s22 = scalar_lea.vmem [#allocation18], %s5780_s17 }
  0xb4   : > { %s5939_s27 = scalar_lea.hbm %s6828_s9, %s5933_s14  ;;  %s758_s23 = sshll.u32 %s751_s22, 4  ;;  %s759_s23 = int_to_ptr.vmem [resolvable:$true] %s758_s23 }
  0xb5   : > { %s6871_s20 = scalar_lea.sflag [#allocation19], %s5777_s18  ;;  %s5138_s28 = scalar_lea.hbm %s5939_s27, 16 }
  0xb6   : > { %p5139_p11 = scmp.ne.s32.totalorder %s5939_s27, %s5138_s28  ;;  %s5142_s1 = scalar_lea.hbm %s6828_s9, 32 }
  0xb7   : > { %p5143_p10 = scmp.lt.u32.totalorder %s5939_s27, %s6828_s9  ;;  %p5144_p9 = scmp.lt.u32.totalorder %s5142_s1, %s5138_s28 }
  0xb8   : > { %p5140_p4 = pnand %p5139_p11, %p6897_p5  ;;  %p5146_p1 = scmp.lt.u32.totalorder %s5138_s28, %s5939_s27 }
  0xb9   : > { %p5145_p12 = por %p5144_p9, %p5143_p10 }
  0xba   : > { %p5141_p8 = pneg %p5140_p4 }
  0xbb   : > { %p5147_p0 = por %p5146_p1, %p5145_p12 }
  0xbd   : > { %p5148_p2 = pnand %p5147_p0, %p5141_p8 }
  0xbf   : > { %5151 = shalt.err (!%p5148_p2)
}
  0xc0   : > { %s5152_s22 = scalar_lea.vmem %s759_s23, 16  ;;  %s5581_s16 = smov [#allocation18]  }
  0xc1   : > { %p5153_p6 = scmp.ne.s32.totalorder %s759_s23, %s5152_s22  ;;  %s5156_s19 = sshll.u32 %s5581_s16, 4  ;;  %s5157_s19 = int_to_ptr.vmem [resolvable:$false] %s5156_s19 }
  0xc2   : > { %s5158_s0 = scalar_lea.vmem %s5157_s19, 32  ;;  %p5159_p13 = scmp.lt.s32.totalorder %s759_s23, %s5157_s19 }
  0xc3   : > { %p5154_p3 = pnand %p5153_p6, %p6897_p5  ;;  %p5160_p11 = scmp.lt.s32.totalorder %s5158_s0, %s5152_s22 }
  0xc5   : > { %p5155_p7 = pneg %p5154_p3  ;;  %p5161_p4 = por %p5160_p11, %p5159_p13 }
  0xc7   : > { %p5162_p9 = pnand %p5161_p4, %p5155_p7 }
  0xc9   : > { %5165 = shalt.err (!%p5162_p9)
}
  0xca   : > { %4630 = dma.hbm_to_vmem [thread:$0]  (%p6897_p5), %s5939_s27, 16, %s759_s23, %s6871_s20  }
  0xcb   : > { %s5966_s16 = scalar_lea.hbm %s6830_s11, %s5786_s29  ;;  %s786_s19 = scalar_lea.vmem [#allocation21], %s5783_s24 }
  0xcc   : > { %s793_s26 = sshll.u32 %s786_s19, 4  ;;  %s783_s2 = scalar_lea.sflag [#allocation22], %s5777_s18  ;;  %s5969_s26 = int_to_ptr.vmem [resolvable:$true] %s793_s26 }
  0xcd   : > { %s5166_s30 = scalar_lea.hbm %s5966_s16, 4096  ;;  %s5170_s22 = scalar_lea.hbm %s6830_s11, 8192 }
  0xce   : > { %p5167_p8 = scmp.ne.s32.totalorder %s5966_s16, %s5166_s30  ;;  %p5171_p1 = scmp.lt.u32.totalorder %s5966_s16, %s6830_s11 }
  0xcf   : > { %p5172_p0 = scmp.lt.u32.totalorder %s5170_s22, %s5166_s30  ;;  %p5174_p6 = scmp.lt.u32.totalorder %s5166_s30, %s5966_s16 }
  0xd0   : > { %p5168_p10 = pnand %p5167_p8, %p6897_p5 }
  0xd1   : > { %p5173_p2 = por %p5172_p0, %p5171_p1 }
  0xd2   : > { %p5169_p12 = pneg %p5168_p10 }
  0xd3   : > { %p5175_p3 = por %p5174_p6, %p5173_p2 }
  0xd5   : > { %p5176_p7 = pnand %p5175_p3, %p5169_p12 }
  0xd7   : > { %5179 = shalt.err (!%p5176_p7)
}
  0xd8   : > { %s5180_s1 = scalar_lea.vmem %s5969_s26, 4096  ;;  %s5582_s19 = smov [#allocation21]  }
  0xd9   : > { %p5181_p13 = scmp.ne.s32.totalorder %s5969_s26, %s5180_s1  ;;  %s5184_s23 = sshll.u32 %s5582_s19, 4  ;;  %s5185_s23 = int_to_ptr.vmem [resolvable:$false] %s5184_s23 }
  0xda   : > { %s5186_s27 = scalar_lea.vmem %s5185_s23, 8192  ;;  %p5187_p9 = scmp.lt.s32.totalorder %s5969_s26, %s5185_s23 }
  0xdb   : > { %p5182_p11 = pnand %p5181_p13, %p6897_p5  ;;  %p5188_p8 = scmp.lt.s32.totalorder %s5186_s27, %s5180_s1 }
  0xdd   : > { %p5183_p4 = pneg %p5182_p11  ;;  %p5189_p10 = por %p5188_p8, %p5187_p9 }
  0xdf   : > { %p5190_p1 = pnand %p5189_p10, %p5183_p4 }
  0xe1   : > { %5193 = shalt.err (!%p5190_p1)
}
  0xe2   : > { %s6900_s30 = smov 16   ;;  %s6901_s22 = smov 256  }
  0xe3   : > { %4632 = dma.hbm_to_vmem [thread:$0]  (%p6897_p5), %s5966_s16, 4096, %s5969_s26, %s783_s2, %s6901_s22, %s6901_s22, %s6900_s30  }
  0xe4   : > { %s6002_s1 = scalar_lea.hbm %s6832_s13, %s5786_s29  ;;  %s826_s19 = scalar_lea.vmem [#allocation24], %s5783_s24 }
  0xe5   : > { %s833_s23 = sshll.u32 %s826_s19, 4  ;;  %s6873_s27 = scalar_lea.sflag [#allocation25], %s5777_s18  ;;  %s6005_s23 = int_to_ptr.vmem [resolvable:$true] %s833_s23 }
  0xe6   : > { %s5194_s20 = scalar_lea.hbm %s6002_s1, 4096  ;;  %s5198_s30 = scalar_lea.hbm %s6832_s13, 8192 }
  0xe7   : > { %p5195_p12 = scmp.ne.s32.totalorder %s6002_s1, %s5194_s20  ;;  %p5199_p6 = scmp.lt.u32.totalorder %s6002_s1, %s6832_s13 }
  0xe8   : > { %p5200_p3 = scmp.lt.u32.totalorder %s5198_s30, %s5194_s20  ;;  %p5202_p13 = scmp.lt.u32.totalorder %s5194_s20, %s6002_s1 }
  0xe9   : > { %p5196_p0 = pnand %p5195_p12, %p6897_p5 }
  0xea   : > { %p5201_p7 = por %p5200_p3, %p5199_p6 }
  0xeb   : > { %p5197_p2 = pneg %p5196_p0 }
  0xec   : > { %p5203_p11 = por %p5202_p13, %p5201_p7 }
  0xee   : > { %p5204_p4 = pnand %p5203_p11, %p5197_p2 }
  0xf0   : > { %5207 = shalt.err (!%p5204_p4)
}
  0xf1   : > { %s5208_s24 = scalar_lea.vmem %s6005_s23, 4096  ;;  %s5583_s0 = smov [#allocation24]  }
  0xf2   : > { %p5209_p9 = scmp.ne.s32.totalorder %s6005_s23, %s5208_s24  ;;  %s5212_s28 = sshll.u32 %s5583_s0, 4  ;;  %s5213_s28 = int_to_ptr.vmem [resolvable:$false] %s5212_s28 }
  0xf3   : > { %s5214_s19 = scalar_lea.vmem %s5213_s28, 8192  ;;  %p5215_p1 = scmp.lt.s32.totalorder %s6005_s23, %s5213_s28 }
  0xf4   : > { %p5210_p8 = pnand %p5209_p9, %p6897_p5  ;;  %p5216_p12 = scmp.lt.s32.totalorder %s5214_s19, %s5208_s24 }
  0xf6   : > { %p5211_p10 = pneg %p5210_p8  ;;  %p5217_p0 = por %p5216_p12, %p5215_p1 }
  0xf8   : > { %p5218_p6 = pnand %p5217_p0, %p5211_p10 }
  0xfa   : > { %5221 = shalt.err (!%p5218_p6)
}
  0xfb   : > { %s6902_s20 = smov 4   ;;  %s6903_s16 = smov 64  }
  0xfc   : > { %4634 = dma.hbm_to_vmem [thread:$0]  (%p6897_p5), %s6002_s1, 4096, %s6005_s23, %s6873_s27, %s6903_s16, %s6903_s16, %s6902_s20  }
  0xfd   : > { %s6038_s29 = scalar_lea.hbm %s6834_s15, %s5933_s14  ;;  %s863_s22 = scalar_lea.vmem [#allocation27], %s5780_s17 }
  0xfe   : > { %s870_s24 = sshll.u32 %s863_s22, 4  ;;  %s6044_s0 = sshll.u32 %s5780_s17, 2  ;;  %s6041_s24 = int_to_ptr.vmem [resolvable:$true] %s870_s24 }
  0xff   : > { %s6872_s28 = scalar_lea.sflag [#allocation28], %s5777_s18  ;;  %s5222_s19 = scalar_lea.hbm %s6038_s29, 16 }
 0x100   : > { %p5223_p2 = scmp.ne.s32.totalorder %s6038_s29, %s5222_s19  ;;  %s5226_s20 = scalar_lea.hbm %s6834_s15, 32 }
 0x101   : > { %p5227_p13 = scmp.lt.u32.totalorder %s6038_s29, %s6834_s15  ;;  %p5228_p11 = scmp.lt.u32.totalorder %s5226_s20, %s5222_s19 }
 0x102   : > { %p5224_p3 = pnand %p5223_p2, %p6897_p5  ;;  %p5230_p9 = scmp.lt.u32.totalorder %s5222_s19, %s6038_s29 }
 0x103   : > { %p5229_p4 = por %p5228_p11, %p5227_p13 }
 0x104   : > { %p5225_p7 = pneg %p5224_p3 }
 0x105   : > { %p5231_p8 = por %p5230_p9, %p5229_p4 }
 0x107   : > { %p5232_p10 = pnand %p5231_p8, %p5225_p7 }
 0x109   : > { %5235 = shalt.err (!%p5232_p10)
}
 0x10a   : > { %s5236_s30 = scalar_lea.vmem %s6041_s24, 16  ;;  %s5584_s22 = smov [#allocation27]  }
 0x10b   : > { %p5237_p1 = scmp.ne.s32.totalorder %s6041_s24, %s5236_s30  ;;  %s5240_s1 = sshll.u32 %s5584_s22, 4  ;;  %s5241_s1 = int_to_ptr.vmem [resolvable:$false] %s5240_s1 }
 0x10c   : > { %s5242_s23 = scalar_lea.vmem %s5241_s1, 32  ;;  %p5243_p6 = scmp.lt.s32.totalorder %s6041_s24, %s5241_s1 }
 0x10d   : > { %p5238_p12 = pnand %p5237_p1, %p6897_p5  ;;  %p5244_p2 = scmp.lt.s32.totalorder %s5242_s23, %s5236_s30 }
 0x10f   : > { %p5239_p0 = pneg %p5238_p12  ;;  %p5245_p3 = por %p5244_p2, %p5243_p6 }
 0x111   : > { %p5246_p13 = pnand %p5245_p3, %p5239_p0 }
 0x113   : > { %5249 = shalt.err (!%p5246_p13)
}
 0x114   : > { %4636 = dma.hbm_to_vmem [thread:$0]  (%p6897_p5), %s6038_s29, 16, %s6041_s24, %s6872_s28  }
 0x115   : > { %s6071_s19 = sshll.u32 %s5570_s21, 6  ;;  %s6904_s26 = sld [smem:[#allocation50_spill]] }
 0x116   : > { %s615_s22 = scalar_lea.vmem [#allocation8], %s6044_s0 }
 0x117   : > { %s623_s1 = sshll.u32 %s615_s22, 4  ;;  %s624_s1 = int_to_ptr.vmem [resolvable:$true] %s623_s1 }
 0x11b   : > { %s6077_s30 = scalar_lea.hbm %s6904_s26, %s6071_s19  ;;  %s5254_s24 = scalar_lea.hbm %s6904_s26, 128 }
 0x11c   : > { %s5250_s23 = scalar_lea.hbm %s6077_s30, 64  ;;  %p5255_p9 = scmp.lt.u32.totalorder %s6077_s30, %s6904_s26 }
 0x11d   : > { %p5251_p7 = scmp.ne.s32.totalorder %s6077_s30, %s5250_s23  ;;  %p5256_p8 = scmp.lt.u32.totalorder %s5254_s24, %s5250_s23 }
 0x11e   : > { %p5258_p1 = scmp.lt.u32.totalorder %s5250_s23, %s6077_s30 }
 0x11f   : > { %p5252_p11 = pnand %p5251_p7, %p6897_p5  ;;  %p5257_p10 = por %p5256_p8, %p5255_p9 }
 0x121   : > { %p5253_p4 = pneg %p5252_p11  ;;  %p5259_p12 = por %p5258_p1, %p5257_p10 }
 0x123   : > { %p5260_p0 = pnand %p5259_p12, %p5253_p4 }
 0x125   : > { %5263 = shalt.err (!%p5260_p0)
}
 0x126   : > { %s5264_s16 = scalar_lea.vmem %s624_s1, 64  ;;  %s5585_s22 = smov [#allocation8]  }
 0x127   : > { %p5265_p6 = scmp.ne.s32.totalorder %s624_s1, %s5264_s16  ;;  %s5268_s27 = sshll.u32 %s5585_s22, 4  ;;  %s5269_s27 = int_to_ptr.vmem [resolvable:$false] %s5268_s27 }
 0x128   : > { %s5270_s21 = scalar_lea.vmem %s5269_s27, 128  ;;  %p5271_p13 = scmp.lt.s32.totalorder %s624_s1, %s5269_s27 }
 0x129   : > { %p5266_p2 = pnand %p5265_p6, %p6897_p5  ;;  %p5272_p7 = scmp.lt.s32.totalorder %s5270_s21, %s5264_s16 }
 0x12b   : > { %p5267_p3 = pneg %p5266_p2  ;;  %p5273_p11 = por %p5272_p7, %p5271_p13 }
 0x12d   : > { %p5274_p8 = pnand %p5273_p11, %p5267_p3 }
 0x12f   : > { %5277 = shalt.err (!%p5274_p8)
}
 0x130   : > { %s6905_s28 = scalar_lea.sflag [#allocation7], %s5777_s18  ;;  %s6103_s24 = scalar_lea.hbm %s6823_s4, %s6071_s19 }
 0x131   : > { %4623 = dma.hbm_to_vmem [thread:$0]  (%p6897_p5), %s6077_s30, 64, %s624_s1, %s6905_s28  }
 0x132   : > { %s655_s27 = scalar_lea.vmem [#allocation11], %s6044_s0  ;;  %s5278_s16 = scalar_lea.hbm %s6103_s24, 64 }
 0x133   : > { %s663_s20 = sshll.u32 %s655_s27, 4  ;;  %p5279_p4 = scmp.ne.s32.totalorder %s6103_s24, %s5278_s16  ;;  %s664_s20 = int_to_ptr.vmem [resolvable:$true] %s663_s20 }
 0x134   : > { %s5282_s30 = scalar_lea.hbm %s6823_s4, 128  ;;  %p5283_p1 = scmp.lt.u32.totalorder %s6103_s24, %s6823_s4 }
 0x135   : > { %p5280_p9 = pnand %p5279_p4, %p6897_p5  ;;  %p5284_p12 = scmp.lt.u32.totalorder %s5282_s30, %s5278_s16 }
 0x136   : > { %p5286_p6 = scmp.lt.u32.totalorder %s5278_s16, %s6103_s24 }
 0x137   : > { %p5281_p10 = pneg %p5280_p9  ;;  %p5285_p0 = por %p5284_p12, %p5283_p1 }
 0x139   : > { %p5287_p2 = por %p5286_p6, %p5285_p0 }
 0x13b   : > { %p5288_p3 = pnand %p5287_p2, %p5281_p10 }
 0x13d   : > { %5291 = shalt.err (!%p5288_p3)
}
 0x13e   : > { %s5292_s23 = scalar_lea.vmem %s664_s20, 64  ;;  %s5586_s29 = smov [#allocation11]  }
 0x13f   : > { %p5293_p13 = scmp.ne.s32.totalorder %s664_s20, %s5292_s23  ;;  %s5296_s27 = sshll.u32 %s5586_s29, 4  ;;  %s5297_s27 = int_to_ptr.vmem [resolvable:$false] %s5296_s27 }
 0x140   : > { %s5298_s22 = scalar_lea.vmem %s5297_s27, 128  ;;  %p5299_p8 = scmp.lt.s32.totalorder %s664_s20, %s5297_s27 }
 0x141   : > { %p5294_p7 = pnand %p5293_p13, %p6897_p5  ;;  %p5300_p4 = scmp.lt.s32.totalorder %s5298_s22, %s5292_s23 }
 0x143   : > { %p5295_p11 = pneg %p5294_p7  ;;  %p5301_p9 = por %p5300_p4, %p5299_p8 }
 0x145   : > { %p5302_p1 = pnand %p5301_p9, %p5295_p11 }
 0x147   : > { %5305 = shalt.err (!%p5302_p1)
}
 0x148   : > { %s6906_s16 = scalar_lea.sflag [#allocation10], %s5777_s18  ;;  %s6129_s1 = scalar_lea.hbm %s6825_s6, %s6071_s19 }
 0x149   : > { %4625 = dma.hbm_to_vmem [thread:$0]  (%p6897_p5), %s6103_s24, 64, %s664_s20, %s6906_s16  }
 0x14a   : > { %s695_s28 = scalar_lea.vmem [#allocation14], %s6044_s0  ;;  %s5306_s29 = scalar_lea.hbm %s6129_s1, 64 }
 0x14b   : > { %s703_s23 = sshll.u32 %s695_s28, 4  ;;  %p5307_p10 = scmp.ne.s32.totalorder %s6129_s1, %s5306_s29  ;;  %s704_s23 = int_to_ptr.vmem [resolvable:$true] %s703_s23 }
 0x14c   : > { %s5310_s24 = scalar_lea.hbm %s6825_s6, 128  ;;  %p5311_p6 = scmp.lt.u32.totalorder %s6129_s1, %s6825_s6 }
 0x14d   : > { %p5308_p12 = pnand %p5307_p10, %p6897_p5  ;;  %p5312_p2 = scmp.lt.u32.totalorder %s5310_s24, %s5306_s29 }
 0x14e   : > { %p5314_p13 = scmp.lt.u32.totalorder %s5306_s29, %s6129_s1 }
 0x14f   : > { %p5309_p0 = pneg %p5308_p12  ;;  %p5313_p3 = por %p5312_p2, %p5311_p6 }
 0x151   : > { %p5315_p7 = por %p5314_p13, %p5313_p3 }
 0x153   : > { %p5316_p11 = pnand %p5315_p7, %p5309_p0 }
 0x155   : > { %5319 = shalt.err (!%p5316_p11)
}
 0x156   : > { %s5320_s21 = scalar_lea.vmem %s704_s23, 64  ;;  %s5587_s30 = smov [#allocation14]  }
 0x157   : > { %p5321_p8 = scmp.ne.s32.totalorder %s704_s23, %s5320_s21  ;;  %s5324_s28 = sshll.u32 %s5587_s30, 4  ;;  %s5325_s28 = int_to_ptr.vmem [resolvable:$false] %s5324_s28 }
 0x158   : > { %s5326_s27 = scalar_lea.vmem %s5325_s28, 128  ;;  %p5327_p1 = scmp.lt.s32.totalorder %s704_s23, %s5325_s28 }
 0x159   : > { %p5322_p4 = pnand %p5321_p8, %p6897_p5  ;;  %p5328_p10 = scmp.lt.s32.totalorder %s5326_s27, %s5320_s21 }
 0x15b   : > { %p5323_p9 = pneg %p5322_p4  ;;  %p5329_p12 = por %p5328_p10, %p5327_p1 }
 0x15d   : > { %p5330_p2 = pnand %p5329_p12, %p5323_p9 }
 0x15f   : > { %5333 = shalt.err (!%p5330_p2)
}
 0x160   : > { %s6907_s29 = scalar_lea.sflag [#allocation13], %s5777_s18  ;;  %s6155_s20 = scalar_lea.hbm %s6827_s8, %s5933_s14 }
 0x161   : > { %4627 = dma.hbm_to_vmem [thread:$0]  (%p6897_p5), %s6129_s1, 64, %s704_s23, %s6907_s29  }
 0x162   : > { %s734_s16 = scalar_lea.vmem [#allocation17], %s5780_s17  ;;  %s5334_s30 = scalar_lea.hbm %s6155_s20, 16 }
 0x163   : > { %s741_s21 = sshll.u32 %s734_s16, 4  ;;  %p5335_p0 = scmp.ne.s32.totalorder %s6155_s20, %s5334_s30  ;;  %s742_s21 = int_to_ptr.vmem [resolvable:$true] %s741_s21 }
 0x164   : > { %s5338_s1 = scalar_lea.hbm %s6827_s8, 32  ;;  %p5339_p13 = scmp.lt.u32.totalorder %s6155_s20, %s6827_s8 }
 0x165   : > { %p5336_p6 = pnand %p5335_p0, %p6897_p5  ;;  %p5340_p7 = scmp.lt.u32.totalorder %s5338_s1, %s5334_s30 }
 0x166   : > { %p5342_p8 = scmp.lt.u32.totalorder %s5334_s30, %s6155_s20 }
 0x167   : > { %p5337_p3 = pneg %p5336_p6  ;;  %p5341_p11 = por %p5340_p7, %p5339_p13 }
 0x169   : > { %p5343_p4 = por %p5342_p8, %p5341_p11 }
 0x16b   : > { %p5344_p9 = pnand %p5343_p4, %p5337_p3 }
 0x16d   : > { %5347 = shalt.err (!%p5344_p9)
}
 0x16e   : > { %s5348_s22 = scalar_lea.vmem %s742_s21, 16  ;;  %s5588_s24 = smov [#allocation17]  }
 0x16f   : > { %p5349_p1 = scmp.ne.s32.totalorder %s742_s21, %s5348_s22  ;;  %s5352_s16 = sshll.u32 %s5588_s24, 4  ;;  %s5353_s16 = int_to_ptr.vmem [resolvable:$false] %s5352_s16 }
 0x170   : > { %s5354_s28 = scalar_lea.vmem %s5353_s16, 32  ;;  %p5355_p2 = scmp.lt.s32.totalorder %s742_s21, %s5353_s16 }
 0x171   : > { %p5350_p10 = pnand %p5349_p1, %p6897_p5  ;;  %p5356_p0 = scmp.lt.s32.totalorder %s5354_s28, %s5348_s22 }
 0x173   : > { %p5351_p12 = pneg %p5350_p10  ;;  %p5357_p6 = por %p5356_p0, %p5355_p2 }
 0x175   : > { %p5358_p7 = pnand %p5357_p6, %p5351_p12 }
 0x177   : > { %5361 = shalt.err (!%p5358_p7)
}
 0x178   : > { %s6908_s30 = scalar_lea.sflag [#allocation16], %s5777_s18  ;;  %s6181_s23 = scalar_lea.hbm %s6829_s10, %s5933_s14 }
 0x179   : > { %4629 = dma.hbm_to_vmem [thread:$0]  (%p6897_p5), %s6155_s20, 16, %s742_s21, %s6908_s30  }
 0x17a   : > { %s768_s29 = scalar_lea.vmem [#allocation20], %s5780_s17  ;;  %s5362_s24 = scalar_lea.hbm %s6181_s23, 16 }
 0x17b   : > { %s775_s22 = sshll.u32 %s768_s29, 4  ;;  %p5363_p3 = scmp.ne.s32.totalorder %s6181_s23, %s5362_s24  ;;  %s776_s22 = int_to_ptr.vmem [resolvable:$true] %s775_s22 }
 0x17c   : > { %s5366_s20 = scalar_lea.hbm %s6829_s10, 32  ;;  %p5367_p8 = scmp.lt.u32.totalorder %s6181_s23, %s6829_s10 }
 0x17d   : > { %p5364_p13 = pnand %p5363_p3, %p6897_p5  ;;  %p5368_p4 = scmp.lt.u32.totalorder %s5366_s20, %s5362_s24 }
 0x17e   : > { %p5370_p1 = scmp.lt.u32.totalorder %s5362_s24, %s6181_s23 }
 0x17f   : > { %p5365_p11 = pneg %p5364_p13  ;;  %p5369_p9 = por %p5368_p4, %p5367_p8 }
 0x181   : > { %p5371_p10 = por %p5370_p1, %p5369_p9 }
 0x183   : > { %p5372_p12 = pnand %p5371_p10, %p5365_p11 }
 0x185   : > { %5375 = shalt.err (!%p5372_p12)
}
 0x186   : > { %s5376_s27 = scalar_lea.vmem %s776_s22, 16  ;;  %s5589_s1 = smov [#allocation20]  }
 0x187   : > { %p5377_p2 = scmp.ne.s32.totalorder %s776_s22, %s5376_s27  ;;  %s5380_s29 = sshll.u32 %s5589_s1, 4  ;;  %s5381_s29 = int_to_ptr.vmem [resolvable:$false] %s5380_s29 }
 0x188   : > { %s5382_s16 = scalar_lea.vmem %s5381_s29, 32  ;;  %p5383_p7 = scmp.lt.s32.totalorder %s776_s22, %s5381_s29 }
 0x189   : > { %p5378_p0 = pnand %p5377_p2, %p6897_p5  ;;  %p5384_p3 = scmp.lt.s32.totalorder %s5382_s16, %s5376_s27 }
 0x18b   : > { %p5379_p6 = pneg %p5378_p0  ;;  %p5385_p13 = por %p5384_p3, %p5383_p7 }
 0x18d   : > { %p5386_p4 = pnand %p5385_p13, %p5379_p6 }
 0x18f   : > { %5389 = shalt.err (!%p5386_p4)
}
 0x190   : > { %s6909_s24 = scalar_lea.sflag [#allocation19], %s5777_s18  ;;  %s6207_s21 = scalar_lea.hbm %s6831_s12, %s6071_s19 }
 0x191   : > { %4631 = dma.hbm_to_vmem [thread:$0]  (%p6897_p5), %s6181_s23, 16, %s776_s22, %s6909_s24  }
 0x192   : > { %s807_s30 = scalar_lea.vmem [#allocation23], %s6044_s0  ;;  %s5390_s1 = scalar_lea.hbm %s6207_s21, 64 }
 0x193   : > { %s815_s27 = sshll.u32 %s807_s30, 4  ;;  %p5391_p11 = scmp.ne.s32.totalorder %s6207_s21, %s5390_s1  ;;  %s816_s27 = int_to_ptr.vmem [resolvable:$true] %s815_s27 }
 0x194   : > { %s5394_s23 = scalar_lea.hbm %s6831_s12, 128  ;;  %p5395_p1 = scmp.lt.u32.totalorder %s6207_s21, %s6831_s12 }
 0x195   : > { %p5392_p8 = pnand %p5391_p11, %p6897_p5  ;;  %p5396_p10 = scmp.lt.u32.totalorder %s5394_s23, %s5390_s1 }
 0x196   : > { %p5398_p2 = scmp.lt.u32.totalorder %s5390_s1, %s6207_s21 }
 0x197   : > { %p5393_p9 = pneg %p5392_p8  ;;  %p5397_p12 = por %p5396_p10, %p5395_p1 }
 0x199   : > { %p5399_p0 = por %p5398_p2, %p5397_p12 }
 0x19b   : > { %p5400_p6 = pnand %p5399_p0, %p5393_p9 }
 0x19d   : > { %5403 = shalt.err (!%p5400_p6)
}
 0x19e   : > { %s5404_s0 = scalar_lea.vmem %s816_s27, 64  ;;  %s5590_s19 = smov [#allocation23]  }
 0x19f   : > { %p5405_p7 = scmp.ne.s32.totalorder %s816_s27, %s5404_s0  ;;  %s5408_s28 = sshll.u32 %s5590_s19, 4  ;;  %s5409_s28 = int_to_ptr.vmem [resolvable:$false] %s5408_s28 }
 0x1a0   : > { %s5410_s20 = scalar_lea.vmem %s5409_s28, 128  ;;  %p5411_p4 = scmp.lt.s32.totalorder %s816_s27, %s5409_s28 }
 0x1a1   : > { %p5406_p3 = pnand %p5405_p7, %p6897_p5  ;;  %p5412_p11 = scmp.lt.s32.totalorder %s5410_s20, %s5404_s0 }
 0x1a3   : > { %p5407_p13 = pneg %p5406_p3  ;;  %p5413_p8 = por %p5412_p11, %p5411_p4 }
 0x1a5   : > { %p5414_p1 = pnand %p5413_p8, %p5407_p13 }
 0x1a7   : > { %5417 = shalt.err (!%p5414_p1)
}
 0x1a8   : > { %4633 = dma.hbm_to_vmem [thread:$0]  (%p6897_p5), %s6207_s21, 64, %s816_s27, %s783_s2  }
 0x1a9   : > { %s6910_s29 = sld [smem:[#allocation52_spill]]  ;;  %s846_s23 = scalar_lea.vmem [#allocation26], %s5780_s17 }
 0x1aa   : > { %s853_s22 = sshll.u32 %s846_s23, 4  ;;  %s854_s22 = int_to_ptr.vmem [resolvable:$true] %s853_s22 }
 0x1af   : > { %s6233_s16 = scalar_lea.hbm %s6910_s29, %s5933_s14  ;;  %s5422_s2 = scalar_lea.hbm %s6910_s29, 32 }
 0x1b0   : > { %s5418_s24 = scalar_lea.hbm %s6233_s16, 16  ;;  %p5423_p2 = scmp.lt.u32.totalorder %s6233_s16, %s6910_s29 }
 0x1b1   : > { %p5419_p9 = scmp.ne.s32.totalorder %s6233_s16, %s5418_s24  ;;  %p5424_p0 = scmp.lt.u32.totalorder %s5422_s2, %s5418_s24 }
 0x1b2   : > { %p5426_p7 = scmp.lt.u32.totalorder %s5418_s24, %s6233_s16 }
 0x1b3   : > { %p5420_p10 = pnand %p5419_p9, %p6897_p5  ;;  %p5425_p6 = por %p5424_p0, %p5423_p2 }
 0x1b5   : > { %p5421_p12 = pneg %p5420_p10  ;;  %p5427_p3 = por %p5426_p7, %p5425_p6 }
 0x1b7   : > { %p5428_p13 = pnand %p5427_p3, %p5421_p12 }
 0x1b9   : > { %5431 = shalt.err (!%p5428_p13)
}
 0x1ba   : > { %s5432_s28 = scalar_lea.vmem %s854_s22, 16  ;;  %s5591_s20 = smov [#allocation26]  }
 0x1bb   : > { %p5433_p4 = scmp.ne.s32.totalorder %s854_s22, %s5432_s28  ;;  %s5436_s30 = sshll.u32 %s5591_s20, 4  ;;  %s5437_s30 = int_to_ptr.vmem [resolvable:$false] %s5436_s30 }
 0x1bc   : > { %s5438_s1 = scalar_lea.vmem %s5437_s30, 32  ;;  %p5439_p1 = scmp.lt.s32.totalorder %s854_s22, %s5437_s30 }
 0x1bd   : > { %p5434_p11 = pnand %p5433_p4, %p6897_p5  ;;  %p5440_p9 = scmp.lt.s32.totalorder %s5438_s1, %s5432_s28 }
 0x1bf   : > { %p5435_p8 = pneg %p5434_p11  ;;  %p5441_p10 = por %p5440_p9, %p5439_p1 }
 0x1c1   : > { %p5442_p0 = pnand %p5441_p10, %p5435_p8 }
 0x1c3   : > { %5445 = shalt.err (!%p5442_p0)
}
 0x1c4   : > { %s6911_s23 = scalar_lea.sflag [#allocation25], %s5777_s18  ;;  %s6912_s19 = sld [smem:[#allocation53_spill]] }
 0x1c5   : > { %4635 = dma.hbm_to_vmem [thread:$0]  (%p6897_p5), %s6233_s16, 16, %s854_s22, %s6911_s23  }
 0x1c6   : > { %s880_s21 = scalar_lea.vmem [#allocation29], %s5780_s17 }
 0x1c7   : > { %s887_s27 = sshll.u32 %s880_s21, 4  ;;  %s888_s27 = int_to_ptr.vmem [resolvable:$true] %s887_s27 }
 0x1ca   : > { %s6259_s2 = scalar_lea.hbm %s6912_s19, %s5933_s14  ;;  %s5450_s16 = scalar_lea.hbm %s6912_s19, 32 }
 0x1cb   : > { %s5446_s28 = scalar_lea.hbm %s6259_s2, 16  ;;  %p5451_p7 = scmp.lt.u32.totalorder %s6259_s2, %s6912_s19 }
 0x1cc   : > { %p5447_p12 = scmp.ne.s32.totalorder %s6259_s2, %s5446_s28  ;;  %p5452_p3 = scmp.lt.u32.totalorder %s5450_s16, %s5446_s28 }
 0x1cd   : > { %p5454_p4 = scmp.lt.u32.totalorder %s5446_s28, %s6259_s2 }
 0x1ce   : > { %p5448_p2 = pnand %p5447_p12, %p6897_p5  ;;  %p5453_p13 = por %p5452_p3, %p5451_p7 }
 0x1d0   : > { %p5449_p6 = pneg %p5448_p2  ;;  %p5455_p11 = por %p5454_p4, %p5453_p13 }
 0x1d2   : > { %p5456_p8 = pnand %p5455_p11, %p5449_p6 }
 0x1d4   : > { %5459 = shalt.err (!%p5456_p8)
}
 0x1d5   : > { %s5460_s17 = scalar_lea.vmem %s888_s27, 16  ;;  %s5592_s14 = smov [#allocation29]  }
 0x1d6   : > { %p5461_p1 = scmp.ne.s32.totalorder %s888_s27, %s5460_s17  ;;  %s5464_s23 = sshll.u32 %s5592_s14, 4  ;;  %s5465_s23 = int_to_ptr.vmem [resolvable:$false] %s5464_s23 }
 0x1d7   : > { %s5466_s24 = scalar_lea.vmem %s5465_s23, 32  ;;  %p5467_p0 = scmp.lt.s32.totalorder %s888_s27, %s5465_s23 }
 0x1d8   : > { %p5462_p9 = pnand %p5461_p1, %p6897_p5  ;;  %p5468_p12 = scmp.lt.s32.totalorder %s5466_s24, %s5460_s17 }
 0x1da   : > { %p5463_p10 = pneg %p5462_p9  ;;  %p5469_p2 = por %p5468_p12, %p5467_p0 }
 0x1dc   : > { %p5470_p3 = pnand %p5469_p2, %p5463_p10 }
 0x1de   : > { %5473 = shalt.err (!%p5470_p3)
}
 0x1df   : > { %s6913_s0 = scalar_lea.sflag [#allocation28], %s5777_s18 }
 0x1e0   : > { %4637 = dma.hbm_to_vmem [thread:$0]  (%p6897_p5), %s6259_s2, 16, %s888_s27, %s6913_s0  }
 0x1e1 PF: > { %s6914_s21 = sld [smem:[#allocation47_spill]] }
 0x1e7   : > { %p6915_p6 = scmp.ne.s32.totalorder %s6914_s21, 0 }
 0x1e8   : > { %s6916_s28 = sld [smem:[#allocation43_spill]] (!%p6915_p6) }
 0x1e9   : > { %896 = sbr.rel (%p6915_p6) target bundleno = 4947 (0x1353), region = 96 }
 0x1ee   : > { %p6917_p7 = scmp.eq.s32.totalorder (!%p6915_p6), %s6916_s28, 0 }
 0x1f0   : > { %5517 = dma.done.wait (%p6917_p7), [#allocation4], 128   ;;  %p6918_p13 = pmov %p6917_p7 }
 0x1f1   : > { %s6919_s20 = sld [smem:[#allocation41_spill]]  ;;  %s6920_s30 = sld [smem:[#allocation46_spill]] }
 0x1f2   : > { %5519 = vsyncadd (%p6918_p13), [#allocation4], 4294967168  ;;  %s6288_s16 = sand.u32 1, %s6916_s28  }
 0x1f3   : > { %s903_s2 = scalar_lea.sflag [#allocation7], %s6288_s16 }
 0x1f7   : > { %s6291_s25 = sand.u32 1, %s6919_s20   ;;  %p6921_p5 = scmp.ne.s32.totalorder %s6920_s30, 0 }
 0x1f8   : > { %s6294_s18 = sshll.u32 %s6291_s25, 8 }
 0x1f9   : > { %s6298_s27 = scalar_lea.vmem [#allocation6], %s6294_s18 }
 0x1fa   : > { %5521 = dma.done.wait (%p6921_p5), %s903_s2, 4160  }
 0x1fb   : > { %5523 = vsyncadd (%p6921_p5), %s903_s2, 4294963136  ;;  %s6305_s22 = sshll.u32 %s6291_s25, 2  ;;  %s921_s17 = scalar_lea.sflag [#allocation10], %s6288_s16 }
 0x1fc   : > { %s6310_s14 = scalar_lea.vmem [#allocation9], %s6294_s18 }
 0x1fd   : > { %5525 = dma.done.wait (%p6921_p5), %s921_s17, 4160  }
 0x1fe   : > { %5527 = vsyncadd (%p6921_p5), %s921_s17, 4294963136  ;;  %s939_s24 = scalar_lea.sflag [#allocation13], %s6288_s16  ;;  %s6319_s0 = scalar_lea.vmem [#allocation12], %s6294_s18 }
 0x1ff   : > { %5529 = dma.done.wait (%p6921_p5), %s939_s24, 4160  }
 0x200   : > { %5531 = vsyncadd (%p6921_p5), %s939_s24, 4294963136  ;;  %s957_s20 = scalar_lea.sflag [#allocation16], %s6288_s16  ;;  %s6328_s2 = scalar_lea.vmem [#allocation15], %s6294_s18 }
 0x201   : > { %5533 = dma.done.wait (%p6921_p5), %s957_s20, 4112  }
 0x202   : > { %5535 = vsyncadd (%p6921_p5), %s957_s20, 4294963184  ;;  %s974_s1 = scalar_lea.sflag [#allocation19], %s6288_s16 }
 0x203   : > { %5537 = dma.done.wait (%p6921_p5), %s974_s1, 32  }
 0x204   : > { %5539 = vsyncadd (%p6921_p5), %s974_s1, 4294967264  ;;  %s990_s23 = scalar_lea.sflag [#allocation22], %s6288_s16  ;;  %s6344_s3 = scalar_lea.vmem [#allocation21], %s6294_s18 }
 0x205   : > { %5541 = dma.done.wait (%p6921_p5), %s990_s23, 4160  }
 0x206   : > { %5543 = vsyncadd (%p6921_p5), %s990_s23, 4294963136  ;;  %s1002_s20 = scalar_lea.vmem [#allocation23], %s6305_s22  ;;  %s1008_s24 = scalar_lea.sflag [#allocation25], %s6288_s16 }
 0x207   : > { %s6353_s1 = scalar_lea.vmem [#allocation24], %s6294_s18 }
 0x208   : > { %5545 = dma.done.wait (%p6921_p5), %s1008_s24, 4112  }
 0x209   : > { %5547 = vsyncadd (%p6921_p5), %s1008_s24, 4294963184  ;;  %s1019_s21 = scalar_lea.vmem [#allocation26], %s6291_s25  ;;  %s1025_s17 = scalar_lea.sflag [#allocation28], %s6288_s16 }
 0x20a   : > { %s1027_s23 = scalar_lea.vmem [#allocation27], %s6291_s25 }
 0x20b   : > { %5549 = dma.done.wait (%p6921_p5), %s1025_s17, 32  }
 0x20c   : > { %5551 = vsyncadd (%p6921_p5), %s1025_s17, 4294967264  ;;  %s1035_s18 = scalar_lea.vmem [#allocation29], %s6291_s25  ;;  %p6922_p4 = scmp.ne.s32.totalorder %s6916_s28, 0 }
 0x20d   : > { %v1159_v0 = vld [vmem:[#allocation3] sm:$0xff] (!%p6922_p4) }
 0x20e   : > { %1158 = sbr.rel (%p6922_p4) target bundleno = 533 (0x215), region = 168  ;;  %1160 = vst [vmem:[#allocation2] sm:$0xff] (!%p6922_p4), %v1159_v0 }
 0x215 PF: > { %v4711_v1 = vld [vmem:[%s6298_s27 + $0x4] ss:$16 sps:$4 sm:$0xff]   ;;  %v4713_v2 = vld [vmem:[%s6298_s27] ss:$16 sps:$4 sm:$0xff]   ;;  %v5593_v3 = vmov 0   ;;  %v5594_v52 = vmov 0.0  }
 0x216   : > { %1409 = vmatprep.mubr.bf16.mxu0 %v5593_v3  ;;  %1450 = vmatprep.mubr.bf16.mxu1 %v5593_v3  ;;  %v4714_v4 = vld [vmem:[%s6298_s27 + $0x24] ss:$16 sps:$4 sm:$0xff]   ;;  %v4716_v5 = vld [vmem:[%s6298_s27 + $0x20] ss:$16 sps:$4 sm:$0xff]   ;;  %v4737_v19 = vld [vmem:[%s6310_s14 + $0x4] ss:$16 sps:$4 sm:$0xff]  }
 0x217   : > { %1377 = vmatprep.subr.bf16.mxu0 %v4711_v1  ;;  %v4717_v6 = vld [vmem:[%s6298_s27 + $0x44] ss:$16 sps:$4 sm:$0xff]   ;;  %v4719_v7 = vld [vmem:[%s6298_s27 + $0x40] ss:$16 sps:$4 sm:$0xff]   ;;  %v4735_v20 = vld [vmem:[%s6310_s14] ss:$16 sps:$4 sm:$0xff]  }
 0x218   : > { %1378 = vmatpush1.bf16.msra.mxu0 %v4713_v2  ;;  %v4720_v8 = vld [vmem:[%s6298_s27 + $0x64] ss:$16 sps:$4 sm:$0xff]   ;;  %v4722_v9 = vld [vmem:[%s6298_s27 + $0x60] ss:$16 sps:$4 sm:$0xff]   ;;  %v4740_v22 = vld [vmem:[%s6310_s14 + $0x24] ss:$16 sps:$4 sm:$0xff]  }
 0x219   : > { %1379 = vmatprep.subr.bf16.mxu0 %v4714_v4  ;;  %v4723_v10 = vld [vmem:[%s6298_s27 + $0x84] ss:$16 sps:$4 sm:$0xff]   ;;  %v4725_v11 = vld [vmem:[%s6298_s27 + $0x80] ss:$16 sps:$4 sm:$0xff]   ;;  %v4738_v23 = vld [vmem:[%s6310_s14 + $0x20] ss:$16 sps:$4 sm:$0xff]  }
 0x21a   : > { %v4726_v12 = vld [vmem:[%s6298_s27 + $0xa4] ss:$16 sps:$4 sm:$0xff]   ;;  %v4728_v13 = vld [vmem:[%s6298_s27 + $0xa0] ss:$16 sps:$4 sm:$0xff]   ;;  %v4743_v24 = vld [vmem:[%s6310_s14 + $0x44] ss:$16 sps:$4 sm:$0xff]  }
 0x21b   : > { %v4729_v14 = vld [vmem:[%s6298_s27 + $0xc4] ss:$16 sps:$4 sm:$0xff]   ;;  %v4731_v15 = vld [vmem:[%s6298_s27 + $0xc0] ss:$16 sps:$4 sm:$0xff]   ;;  %v4741_v25 = vld [vmem:[%s6310_s14 + $0x40] ss:$16 sps:$4 sm:$0xff]  }
 0x21c   : > { %1380 = vmatpush1.bf16.msra.mxu0 %v4716_v5  ;;  %v4732_v16 = vld [vmem:[%s6298_s27 + $0xe4] ss:$16 sps:$4 sm:$0xff]   ;;  %v4734_v17 = vld [vmem:[%s6298_s27 + $0xe0] ss:$16 sps:$4 sm:$0xff]   ;;  %v4746_v26 = vld [vmem:[%s6310_s14 + $0x64] ss:$16 sps:$4 sm:$0xff]  }
 0x21d   : > { %1381 = vmatprep.subr.bf16.mxu0 %v4717_v6  ;;  %v1161_v18 = vld [vmem:[#allocation2] sm:$0xff]  ;;  %v4744_v27 = vld [vmem:[%s6310_s14 + $0x60] ss:$16 sps:$4 sm:$0xff]   ;;  %v4749_v28 = vld [vmem:[%s6310_s14 + $0x84] ss:$16 sps:$4 sm:$0xff]   ;;  %vm5595_vm0 = vmmov 0  }
 0x21e   : > { %v6389_v21 = vpack.c.bf16 %v1161_v18, %v1161_v18  ;;  %v4747_v29 = vld [vmem:[%s6310_s14 + $0x80] ss:$16 sps:$4 sm:$0xff]   ;;  %v4752_v30 = vld [vmem:[%s6310_s14 + $0xa4] ss:$16 sps:$4 sm:$0xff]   ;;  %v4761_v36 = vld [vmem:[%s6319_s0 + $0x4] ss:$16 sps:$4 sm:$0xff]  }
 0x21f   : > { %v4750_v31 = vld [vmem:[%s6310_s14 + $0xa0] ss:$16 sps:$4 sm:$0xff]   ;;  %v4755_v32 = vld [vmem:[%s6310_s14 + $0xc4] ss:$16 sps:$4 sm:$0xff]   ;;  %v4759_v37 = vld [vmem:[%s6319_s0] ss:$16 sps:$4 sm:$0xff]  }
 0x220   : > { %1382 = vmatpush1.bf16.msra.mxu0 %v4719_v7  ;;  %v4753_v33 = vld [vmem:[%s6310_s14 + $0xc0] ss:$16 sps:$4 sm:$0xff]   ;;  %v4758_v34 = vld [vmem:[%s6310_s14 + $0xe4] ss:$16 sps:$4 sm:$0xff]   ;;  %v4764_v38 = vld [vmem:[%s6319_s0 + $0x24] ss:$16 sps:$4 sm:$0xff]  }
 0x221   : > { %1383 = vmatprep.subr.bf16.mxu0 %v4720_v8  ;;  %v4756_v35 = vld [vmem:[%s6310_s14 + $0xe0] ss:$16 sps:$4 sm:$0xff]   ;;  %v4762_v39 = vld [vmem:[%s6319_s0 + $0x20] ss:$16 sps:$4 sm:$0xff]   ;;  %v4767_v41 = vld [vmem:[%s6319_s0 + $0x44] ss:$16 sps:$4 sm:$0xff]  }
 0x222   : > { %v4765_v40 = vld [vmem:[%s6319_s0 + $0x40] ss:$16 sps:$4 sm:$0xff]   ;;  %v4770_v42 = vld [vmem:[%s6319_s0 + $0x64] ss:$16 sps:$4 sm:$0xff]   ;;  %v4783_v53 = vld [vmem:[%s6298_s27 + $0xc] ss:$16 sps:$4 sm:$0xff]  }
 0x223   : > { %v4768_v43 = vld [vmem:[%s6319_s0 + $0x60] ss:$16 sps:$4 sm:$0xff]   ;;  %v4773_v44 = vld [vmem:[%s6319_s0 + $0x84] ss:$16 sps:$4 sm:$0xff]   ;;  %v4785_v54 = vld [vmem:[%s6298_s27 + $0x8] ss:$16 sps:$4 sm:$0xff]   ;;  %1418 = vmatprep.subr.bf16.mxu1 %v4783_v53 }
 0x224   : > { %1384 = vmatpush1.bf16.msra.mxu0 %v4722_v9  ;;  %v4771_v45 = vld [vmem:[%s6319_s0 + $0x80] ss:$16 sps:$4 sm:$0xff]   ;;  %v4776_v46 = vld [vmem:[%s6319_s0 + $0xa4] ss:$16 sps:$4 sm:$0xff]   ;;  %v4786_v55 = vld [vmem:[%s6298_s27 + $0x2c] ss:$16 sps:$4 sm:$0xff]   ;;  %1419 = vmatpush1.bf16.msra.mxu1 %v4785_v54 }
 0x225   : > { %1385 = vmatprep.subr.bf16.mxu0 %v4723_v10  ;;  %v4774_v47 = vld [vmem:[%s6319_s0 + $0xa0] ss:$16 sps:$4 sm:$0xff]   ;;  %v4779_v48 = vld [vmem:[%s6319_s0 + $0xc4] ss:$16 sps:$4 sm:$0xff]   ;;  %v4788_v56 = vld [vmem:[%s6298_s27 + $0x28] ss:$16 sps:$4 sm:$0xff]   ;;  %1420 = vmatprep.subr.bf16.mxu1 %v4786_v55 }
 0x226   : > { %v4777_v49 = vld [vmem:[%s6319_s0 + $0xc0] ss:$16 sps:$4 sm:$0xff]   ;;  %v4782_v50 = vld [vmem:[%s6319_s0 + $0xe4] ss:$16 sps:$4 sm:$0xff]   ;;  %v4789_v57 = vld [vmem:[%s6298_s27 + $0x4c] ss:$16 sps:$4 sm:$0xff]  }
 0x227   : > { %v4780_v51 = vld [vmem:[%s6319_s0 + $0xe0] ss:$16 sps:$4 sm:$0xff]   ;;  %v4791_v58 = vld [vmem:[%s6298_s27 + $0x48] ss:$16 sps:$4 sm:$0xff]   ;;  %v4792_v59 = vld [vmem:[%s6298_s27 + $0x6c] ss:$16 sps:$4 sm:$0xff]  }
 0x228   : > { %1386 = vmatpush1.bf16.msra.mxu0 %v4725_v11  ;;  %1421 = vmatpush1.bf16.msra.mxu1 %v4788_v56  ;;  %v4794_v60 = vld [vmem:[%s6298_s27 + $0x68] ss:$16 sps:$4 sm:$0xff]   ;;  %v4795_v61 = vld [vmem:[%s6298_s27 + $0x8c] ss:$16 sps:$4 sm:$0xff]   ;;  %v4809_v6 = vld [vmem:[%s6310_s14 + $0xc] ss:$16 sps:$4 sm:$0xff]  }
 0x229   : > { %1387 = vmatprep.subr.bf16.mxu0 %v4726_v12  ;;  %1422 = vmatprep.subr.bf16.mxu1 %v4789_v57  ;;  %v4797_v62 = vld [vmem:[%s6298_s27 + $0x88] ss:$16 sps:$4 sm:$0xff]   ;;  %v4798_v63 = vld [vmem:[%s6298_s27 + $0xac] ss:$16 sps:$4 sm:$0xff]   ;;  %v4807_v7 = vld [vmem:[%s6310_s14 + $0x8] ss:$16 sps:$4 sm:$0xff]  }
 0x22a   : > { %v4800_v0 = vld [vmem:[%s6298_s27 + $0xa8] ss:$16 sps:$4 sm:$0xff]   ;;  %v4801_v1 = vld [vmem:[%s6298_s27 + $0xcc] ss:$16 sps:$4 sm:$0xff]   ;;  %v4812_v8 = vld [vmem:[%s6310_s14 + $0x2c] ss:$16 sps:$4 sm:$0xff]  }
 0x22b   : > { %v4803_v2 = vld [vmem:[%s6298_s27 + $0xc8] ss:$16 sps:$4 sm:$0xff]   ;;  %v4804_v4 = vld [vmem:[%s6298_s27 + $0xec] ss:$16 sps:$4 sm:$0xff]   ;;  %v4810_v9 = vld [vmem:[%s6310_s14 + $0x28] ss:$16 sps:$4 sm:$0xff]  }
 0x22c   : > { %1388 = vmatpush1.bf16.msra.mxu0 %v4728_v13  ;;  %1423 = vmatpush1.bf16.msra.mxu1 %v4791_v58  ;;  %v4806_v5 = vld [vmem:[%s6298_s27 + $0xe8] ss:$16 sps:$4 sm:$0xff]   ;;  %v4815_v10 = vld [vmem:[%s6310_s14 + $0x4c] ss:$16 sps:$4 sm:$0xff]   ;;  %v4813_v11 = vld [vmem:[%s6310_s14 + $0x48] ss:$16 sps:$4 sm:$0xff]  }
 0x22d   : > { %1389 = vmatprep.subr.bf16.mxu0 %v4729_v14  ;;  %1424 = vmatprep.subr.bf16.mxu1 %v4792_v59  ;;  %v4818_v12 = vld [vmem:[%s6310_s14 + $0x6c] ss:$16 sps:$4 sm:$0xff]   ;;  %v4816_v13 = vld [vmem:[%s6310_s14 + $0x68] ss:$16 sps:$4 sm:$0xff]   ;;  %s6923_s28 = scalar_lea.vmem [#allocation11], %s6305_s22  ;;  %s6924_s30 = scalar_lea.vmem [#allocation8], %s6305_s22 }
 0x22e   : > { %v4821_v14 = vld [vmem:[%s6310_s14 + $0x8c] ss:$16 sps:$4 sm:$0xff]   ;;  %s6925_s16 = scalar_lea.vmem [#allocation14], %s6305_s22  ;;  %vm2111_vm1 = vcmask 1043456   ;;  %vm2095_vm2 = vcmask 64512   ;;  %s6926_s27 = scalar_lea.vmem [#allocation17], %s6291_s25 }
 0x22f   : > { %v4827_v18 = vld [vmem:[%s6310_s14 + $0xcc] ss:$16 sps:$4 sm:$0xff]   ;;  %s6929_s22 = sld [smem:[#allocation43_spill]] }
 0x230   : > { %1390 = vmatpush1.bf16.msra.mxu0 %v4731_v15  ;;  %1425 = vmatpush1.bf16.msra.mxu1 %v4794_v60  ;;  %v4819_v15 = vld [vmem:[%s6310_s14 + $0x88] ss:$16 sps:$4 sm:$0xff]  }
 0x231   : > { %1391 = vmatprep.subr.bf16.mxu0 %v4732_v16  ;;  %1426 = vmatprep.subr.bf16.mxu1 %v4795_v61  ;;  %v4824_v16 = vld [vmem:[%s6310_s14 + $0xac] ss:$16 sps:$4 sm:$0xff]  }
 0x232   : > { %v6509_v58 = vld [vmem:[%s6925_s16] sm:$0xf] }
 0x234   : > { %1392 = vmatpush1.bf16.msra.mxu0 %v4734_v17  ;;  %1427 = vmatpush1.bf16.msra.mxu1 %v4797_v62  ;;  %v4822_v17 = vld [vmem:[%s6310_s14 + $0xa8] ss:$16 sps:$4 sm:$0xff]  }
 0x235   : > { %1673 = vmatprep.subr.bf16.mxu0 %v4737_v19  ;;  %1428 = vmatprep.subr.bf16.mxu1 %v4798_v63  ;;  %v4825_v19 = vld [vmem:[%s6310_s14 + $0xc8] ss:$16 sps:$4 sm:$0xff]   ;;  %p4343_p11 = scmp.ne.s32.totalorder %s6929_s22, 1 }
 0x236   : > { %vm5597_vm3 = vmmov (!%p4343_p11), 0   ;;  %s6931_s17 = sld [smem:[#allocation55_spill]] (!%p4343_p11) }
 0x237   : > { %1410 = vmatmul.mubr.bf16.vlgmr.msra.gmra.mrb[0].mxu0 %v6389_v21 }
 0x238   : > { %1674 = vmatpush1.bf16.msra.mxu0 %v4735_v20  ;;  %1705 = vmatprep.mubr.bf16.mxu0 %v5593_v3  ;;  %v4830_v20 = vld [vmem:[%s6310_s14 + $0xec] ss:$16 sps:$4 sm:$0xff]  }
 0x239   : > { %1675 = vmatprep.subr.bf16.mxu0 %v4740_v22  ;;  %1429 = vmatpush1.bf16.msra.mxu1 %v4800_v0  ;;  %v4828_v22 = vld [vmem:[%s6310_s14 + $0xe8] ss:$16 sps:$4 sm:$0xff]   ;;  %s6928_s14 = scalar_lea.vmem [#allocation20], %s6291_s25 }
 0x23a   : > { %1430 = vmatprep.subr.bf16.mxu1 %v4801_v1 }
 0x23c   : > { %1676 = vmatpush1.bf16.msra.mxu0 %v4738_v23  ;;  %v4833_v23 = vld [vmem:[%s6319_s0 + $0xc] ss:$16 sps:$4 sm:$0xff]  }
 0x23d   : > { %1677 = vmatprep.subr.bf16.mxu0 %v4743_v24  ;;  %1431 = vmatpush1.bf16.msra.mxu1 %v4803_v2  ;;  %v4831_v24 = vld [vmem:[%s6319_s0 + $0x8] ss:$16 sps:$4 sm:$0xff]  }
 0x23e   : > { %1432 = vmatprep.subr.bf16.mxu1 %v4804_v4 }
 0x240   : > { %1678 = vmatpush1.bf16.msra.mxu0 %v4741_v25  ;;  %v4836_v25 = vld [vmem:[%s6319_s0 + $0x2c] ss:$16 sps:$4 sm:$0xff]  }
 0x241   : > { %1679 = vmatprep.subr.bf16.mxu0 %v4746_v26  ;;  %1433 = vmatpush1.bf16.msra.mxu1 %v4806_v5  ;;  %v4834_v26 = vld [vmem:[%s6319_s0 + $0x28] ss:$16 sps:$4 sm:$0xff]  }
 0x242   : > { %1714 = vmatprep.subr.bf16.mxu1 %v4809_v6 }
 0x244   : > { %1680 = vmatpush1.bf16.msra.mxu0 %v4744_v27  ;;  %1451 = vmatmul.mubr.bf16.vlgmr.msra.gmra.mrb[0].mxu1 %v6389_v21  ;;  %v4839_v27 = vld [vmem:[%s6319_s0 + $0x4c] ss:$16 sps:$4 sm:$0xff]  }
 0x245   : > { %1681 = vmatprep.subr.bf16.mxu0 %v4749_v28  ;;  %1715 = vmatpush1.bf16.msra.mxu1 %v4807_v7  ;;  %v4837_v28 = vld [vmem:[%s6319_s0 + $0x48] ss:$16 sps:$4 sm:$0xff]  }
 0x246   : > { %1746 = vmatprep.mubr.bf16.mxu1 %v5593_v3  ;;  %1716 = vmatprep.subr.bf16.mxu1 %v4812_v8 }
 0x248   : > { %1682 = vmatpush1.bf16.msra.mxu0 %v4747_v29  ;;  %v4842_v29 = vld [vmem:[%s6319_s0 + $0x6c] ss:$16 sps:$4 sm:$0xff]  }
 0x249   : > { %1683 = vmatprep.subr.bf16.mxu0 %v4752_v30  ;;  %1717 = vmatpush1.bf16.msra.mxu1 %v4810_v9  ;;  %v4840_v30 = vld [vmem:[%s6319_s0 + $0x68] ss:$16 sps:$4 sm:$0xff]  }
 0x24a   : > { %1718 = vmatprep.subr.bf16.mxu1 %v4815_v10 }
 0x24c   : > { %1684 = vmatpush1.bf16.msra.mxu0 %v4750_v31  ;;  %v4845_v31 = vld [vmem:[%s6319_s0 + $0x8c] ss:$16 sps:$4 sm:$0xff]  }
 0x24d   : > { %1685 = vmatprep.subr.bf16.mxu0 %v4755_v32  ;;  %1719 = vmatpush1.bf16.msra.mxu1 %v4813_v11  ;;  %v4843_v32 = vld [vmem:[%s6319_s0 + $0x88] ss:$16 sps:$4 sm:$0xff]  }
 0x24e   : > { %1720 = vmatprep.subr.bf16.mxu1 %v4818_v12 }
 0x250   : > { %1686 = vmatpush1.bf16.msra.mxu0 %v4753_v33  ;;  %v4848_v33 = vld [vmem:[%s6319_s0 + $0xac] ss:$16 sps:$4 sm:$0xff]  }
 0x251   : > { %1687 = vmatprep.subr.bf16.mxu0 %v4758_v34  ;;  %1721 = vmatpush1.bf16.msra.mxu1 %v4816_v13  ;;  %v4846_v34 = vld [vmem:[%s6319_s0 + $0xa8] ss:$16 sps:$4 sm:$0xff]  }
 0x252   : > { %1722 = vmatprep.subr.bf16.mxu1 %v4821_v14 }
 0x254   : > { %1688 = vmatpush1.bf16.msra.mxu0 %v4756_v35 }
 0x255   : > { %1969 = vmatprep.subr.bf16.mxu0 %v4761_v36  ;;  %1723 = vmatpush1.bf16.msra.mxu1 %v4819_v15  ;;  %v4851_v36 = vld [vmem:[%s6319_s0 + $0xcc] ss:$16 sps:$4 sm:$0xff]  }
 0x256   : > { %1724 = vmatprep.subr.bf16.mxu1 %v4824_v16 }
 0x257   : > { %1706 = vmatmul.mubr.bf16.vlgmr.msra.gmra.mrb[4].mxu0 %v6389_v21 }
 0x258   : > { %1970 = vmatpush1.bf16.msra.mxu0 %v4759_v37  ;;  %2001 = vmatprep.mubr.bf16.mxu0 %v5593_v3 }
 0x259   : > { %1971 = vmatprep.subr.bf16.mxu0 %v4764_v38  ;;  %1725 = vmatpush1.bf16.msra.mxu1 %v4822_v17 }
 0x25a   : > { %1726 = vmatprep.subr.bf16.mxu1 %v4827_v18 }
 0x25c   : > { %1972 = vmatpush1.bf16.msra.mxu0 %v4762_v39 }
 0x25d   : > { %1973 = vmatprep.subr.bf16.mxu0 %v4767_v41  ;;  %1727 = vmatpush1.bf16.msra.mxu1 %v4825_v19  ;;  %v4854_v41 = vld [vmem:[%s6319_s0 + $0xec] ss:$16 sps:$4 sm:$0xff]  }
 0x25e   : > { %1728 = vmatprep.subr.bf16.mxu1 %v4830_v20 }
 0x260   : > { %1974 = vmatpush1.bf16.msra.mxu0 %v4765_v40  ;;  %v4849_v40 = vld [vmem:[%s6319_s0 + $0xc8] ss:$16 sps:$4 sm:$0xff]  }
 0x261   : > { %1975 = vmatprep.subr.bf16.mxu0 %v4770_v42  ;;  %1729 = vmatpush1.bf16.msra.mxu1 %v4828_v22  ;;  %v4852_v42 = vld [vmem:[%s6319_s0 + $0xe8] ss:$16 sps:$4 sm:$0xff]  }
 0x262   : > { %2010 = vmatprep.subr.bf16.mxu1 %v4833_v23 }
 0x264   : > { %1976 = vmatpush1.bf16.msra.mxu0 %v4768_v43  ;;  %1747 = vmatmul.mubr.bf16.vlgmr.msra.gmra.mrb[4].mxu1 %v6389_v21  ;;  %v1197_v43 = vlaneseq }
 0x265   : > { %1977 = vmatprep.subr.bf16.mxu0 %v4773_v44  ;;  %2011 = vmatpush1.bf16.msra.mxu1 %v4831_v24 }
 0x266   : > { %2042 = vmatprep.mubr.bf16.mxu1 %v5593_v3  ;;  %2012 = vmatprep.subr.bf16.mxu1 %v4836_v25  ;;  %v6487_v44 = vshrl.u32 %v1197_v43, 7 }
 0x268   : > { %1978 = vmatpush1.bf16.msra.mxu0 %v4771_v45  ;;  %v6491_v45 = vld [vmem:[%s6923_s28] sm:$0xf]  ;;  %v6512_v59 = vsub.s32 1, %v6487_v44 }
 0x269   : > { %1979 = vmatprep.subr.bf16.mxu0 %v4776_v46  ;;  %2013 = vmatpush1.bf16.msra.mxu1 %v4834_v26  ;;  %v6494_v46 = vsub.s32 0, %v6487_v44 }
 0x26a   : > { %2014 = vmatprep.subr.bf16.mxu1 %v4839_v27  ;;  %v1796_v61 = vrot.slane %v6509_v58, %v6512_v59  ;;  %v1500_v22 = vrot.slane %v6491_v45, %v6512_v59 }
 0x26b   : > { %v1792_v60 = vrot.slane %v6509_v58, %v6494_v46 }
 0x26c   : > { %1980 = vmatpush1.bf16.msra.mxu0 %v4774_v47  ;;  %v1496_v47 = vrot.slane %v6491_v45, %v6494_v46 }
 0x26d   : > { %1981 = vmatprep.subr.bf16.mxu0 %v4779_v48  ;;  %2015 = vmatpush1.bf16.msra.mxu1 %v4837_v28  ;;  %v6500_v48 = vld [vmem:[%s6924_s30] sm:$0xf] }
 0x26e   : > { %2016 = vmatprep.subr.bf16.mxu1 %v4842_v29  ;;  %v1204_v26 = vrot.slane %v6500_v48, %v6512_v59 }
 0x270   : > { %1982 = vmatpush1.bf16.msra.mxu0 %v4777_v49 }
 0x271   : > { %1983 = vmatprep.subr.bf16.mxu0 %v4782_v50  ;;  %2017 = vmatpush1.bf16.msra.mxu1 %v4840_v30 }
 0x272   : > { %2018 = vmatprep.subr.bf16.mxu1 %v4845_v31 }
 0x274   : > { %1984 = vmatpush1.bf16.msra.mxu0 %v4780_v51  ;;  %v1200_v51 = vrot.slane %v6500_v48, %v6494_v46 }
 0x275   : > { %4472 = vmatprep.subr.bf16.mxu0 %v5594_v52  ;;  %2019 = vmatpush1.bf16.msra.mxu1 %v4843_v32 }
 0x276   : > { %2020 = vmatprep.subr.bf16.mxu1 %v4848_v33 }
 0x277   : > { %2002 = vmatmul.mubr.bf16.vlgmr.msra.gmra.mrb[8].mxu0 %v6389_v21 }
 0x278   : > { %4474 = vmatprep.mubr.msk.bf16.mxu0 %vm5595_vm0, %v5594_v52 }
 0x279   : > { %2021 = vmatpush1.bf16.msra.mxu1 %v4846_v34 }
 0x27a   : > { %2022 = vmatprep.subr.bf16.mxu1 %v4851_v36 }
 0x27d   : > { %2023 = vmatpush1.bf16.msra.mxu1 %v4849_v40 }
 0x27e   : > { %2024 = vmatprep.subr.bf16.mxu1 %v4854_v41 }
 0x281   : > { %2025 = vmatpush1.bf16.msra.mxu1 %v4852_v42 }
 0x282   : > { %4490 = vmatprep.subr.bf16.mxu1 %v5594_v52 }
 0x284   : > { %2043 = vmatmul.mubr.bf16.vlgmr.msra.gmra.mrb[8].mxu1 %v6389_v21 }
 0x285   : > { %4492 = vmatprep.mubr.msk.bf16.mxu1 %vm5595_vm0, %v5594_v52 }
 0x30a   : > { %v1411_v35 = vpop.f32.mrb[0].mxu0 }
 0x30b   : > { %v6478_v37 = vpop.f32.mrb[1].mxu0  ;;  %v1412_v56 = vadd.f32 %v1411_v35, %v1200_v51 }
 0x30c   : > { %v1415_v38 = vpop.f32.mrb[2].mxu0  ;;  %v1414_v29 = vadd.f32 %v6478_v37, %v1204_v26 }
 0x30d   : > { %v1416_v39 = vpop.f32.mrb[3].mxu0  ;;  %v2051_v57 = vpack.c.bf16 %v1412_v56, %v1412_v56 }
 0x30e   : > { %v2172_v30 = vpack.c.bf16 %v1414_v29, %v1414_v29 }
 0x32a   : > { %v1707_v21 = vpop.f32.mrb[4].mxu0 }
 0x32b   : > { %v1708_v49 = vadd.f32 %v1707_v21, %v1496_v47  ;;  %v1709_v50 = vpop.f32.mrb[5].mxu0 }
 0x32c   : > { %v1711_v53 = vpop.f32.mrb[6].mxu0  ;;  %v1710_v24 = vadd.f32 %v1709_v50, %v1500_v22  ;;  %v4863_v50 = vld [vmem:[%s6328_s2 + $0x40] sm:$0xff]   ;;  %v4861_v22 = vld [vmem:[%s6328_s2 + $0x30] sm:$0xff]  }
 0x32d   : > { %v2052_v54 = vpack.c.bf16 %v1708_v49, %v1708_v49  ;;  %v1712_v55 = vpop.f32.mrb[7].mxu0  ;;  %v6539_v49 = vpop.f32.mrb[0].mxu1 }
 0x32e   : > { %v2173_v28 = vpack.c.bf16 %v1710_v24, %v1710_v24  ;;  %v6542_v51 = vpop.f32.mrb[1].mxu1  ;;  %v4862_v24 = vld [vmem:[%s6328_s2 + $0x38] sm:$0xff]  }
 0x32f   : > { %4473 = vmatpush3.bf16.xpose.msra.mxu0 %v2052_v54  ;;  %v1456_v53 = vpop.f32.mrb[2].mxu1  ;;  %v4864_v54 = vld [vmem:[%s6328_s2 + $0x48] sm:$0xff]  }
 0x330   : > { %4478 = vmatprep.subr.bf16.mxu0 %v5594_v52  ;;  %v1457_v55 = vpop.f32.mrb[3].mxu1 }
 0x336   : > { %4475 = vmatmul.mubr.bf16.vlgmr.msra.gmra.mrb[12].mxu0 %v2051_v57 }
 0x337   : > { %4480 = vmatprep.mubr.msk.bf16.mxu0 %vm5595_vm0, %v5594_v52  ;;  %v6546_v56 = vpop.f32.mrb[4].mxu1 }
 0x338   : > { %v6548_v57 = vpop.f32.mrb[5].mxu1 }
 0x34a   : > { %v2003_v62 = vpop.f32.mrb[8].mxu0 }
 0x34b   : > { %v2004_v63 = vadd.f32 %v2003_v62, %v1792_v60  ;;  %v2005_v0 = vpop.f32.mrb[9].mxu0  ;;  %v1752_v60 = vpop.f32.mrb[6].mxu1 }
 0x34c   : > { %v2006_v1 = vadd.f32 %v2005_v0, %v1796_v61  ;;  %v2007_v2 = vpop.f32.mrb[10].mxu0  ;;  %v4865_v61 = vld [vmem:[%s6328_s2 + $0x50] sm:$0xff]   ;;  %v1753_v62 = vpop.f32.mrb[7].mxu1 }
 0x34d   : > { %v2053_v4 = vpack.c.bf16 %v2004_v63, %v2004_v63  ;;  %v2008_v5 = vpop.f32.mrb[11].mxu0 }
 0x34e   : > { %v2174_v6 = vpack.c.bf16 %v2006_v1, %v2006_v1  ;;  %v4866_v1 = vld [vmem:[%s6328_s2 + $0x58] sm:$0xff]   ;;  %v4867_v5 = vld [vmem:[%s6328_s2 + $0x60] sm:$0xff]  }
 0x34f   : > { %v2113_v7 = vsel %vm2111_vm1, %v2053_v4, 0 }
 0x350   : > { %v2232_v8 = vsel %vm2111_vm1, %v2174_v6, 0  ;;  %4479 = vmatpush3.bf16.msra.mxu0 %v2113_v7  ;;  %v4868_v6 = vld [vmem:[%s6328_s2 + $0x68] sm:$0xff]   ;;  %v4869_v7 = vld [vmem:[%s6328_s2 + $0x70] sm:$0xff]  }
 0x351   : > { %4491 = vmatpush3.bf16.msra.mxu1 %v2232_v8  ;;  %4484 = vmatprep.subr.bf16.mxu0 %v5594_v52  ;;  %v4870_v8 = vld [vmem:[%s6328_s2 + $0x78] sm:$0xff]  }
 0x352   : > { %4516 = vmatprep.subr.bf16.mxu1 %v5594_v52 }
 0x357   : > { %v2044_v63 = vpop.f32.mrb[8].mxu1 }
 0x358   : > { %v6552_v0 = vpop.f32.mrb[9].mxu1 }
 0x359   : > { %v2048_v2 = vpop.f32.mrb[10].mxu1 }
 0x35a   : > { %v2049_v4 = vpop.f32.mrb[11].mxu1 }
 0x409   : > { %v2088_v9 = vpop.f32.mrb[12].mxu0 }
 0x40a   : > { %v2094_v10 = vmul.f32 0.088388346, %v2088_v9  ;;  %v4476_v11 = vpop.f32.mrb[13].mxu0 }
 0x40b   : > { %v2091_v12 = vpop.f32.mrb[14].mxu0 }
 0x40c   : > { %v4477_v13 = vpop.f32.mrb[15].mxu0  ;;  %v2096_v14 = vsel %vm2095_vm2, %v2094_v10, -inf  ;;  %v4855_v12 = vld [vmem:[%s6328_s2] sm:$0xff]  }
 0x40d   : > { %2097 = vmax.xlane.f32.xlu0 %v2096_v14  ;;  %v4856_v14 = vld [vmem:[%s6328_s2 + $0x8] sm:$0xff]  }
 0x49a   : > { %v2098_v15 = vpop.xlane.xlu0 %2097 }
 0x49b   : > { %v2099_v16 = vsub.f32 %v2094_v10, %v2098_v15  ;;  %v4857_v15 = vld [vmem:[%s6328_s2 + $0x10] sm:$0xff]  }
 0x49d   : > { %v2100_v17 = vmul.f32 1.442695, %v2099_v16  ;;  %v4858_v16 = vld [vmem:[%s6328_s2 + $0x18] sm:$0xff]  }
 0x49f   : > { %4967 = vpow2.f32 %v2100_v17  ;;  %v4859_v17 = vld [vmem:[%s6328_s2 + $0x20] sm:$0xff]  }
 0x4a9   : > { %v4968_v18 = vpop.eup %4967 }
 0x4aa   : > { %v2102_v19 = vsel %vm2095_vm2, %v4968_v18, 0.0 }
 0x4ab   : > { %2103 = vadd.xlane.f32.xlu0 %v2102_v19  ;;  %v4860_v19 = vld [vmem:[%s6328_s2 + $0x28] sm:$0xff]  }
 0x538   : > { %v2104_v20 = vpop.xlane.xlu0 %2103 }
 0x539   : > { %4969 = vrcp.f32 %v2104_v20 }
 0x543   : > { %v4970_v23 = vpop.eup %4969 }
 0x544   : > { %v2106_v25 = vmul.f32 %v4970_v23, %v4968_v18  ;;  %v6578_v18 = vsub.s32 2, %v6487_v44 }
 0x546   : > { %v2107_v27 = vpack.c.bf16 %v2106_v25, %v2106_v25  ;;  %v1800_v20 = vrot.slane %v6509_v58, %v6578_v18 }
 0x548   : > { %4481 = vmatmul.mubr.msk.bf16.vlgmr.msra.gmra.mrb[16].mxu0 %vm2095_vm2, %v2107_v27  ;;  %v2045_v23 = vadd.f32 %v2044_v63, %v1800_v20 }
 0x549   : > { %4485 = vmatpush3.bf16.xpose.msra.mxu0 %v2173_v28  ;;  %4486 = vmatprep.mubr.msk.bf16.mxu0 %vm5595_vm0, %v5594_v52  ;;  %v1504_v28 = vrot.slane %v6491_v45, %v6578_v18 }
 0x54a   : > { %4496 = vmatprep.subr.bf16.mxu0 %v5594_v52  ;;  %v2469_v25 = vpack.c.bf16 %v2045_v23, %v2045_v23 }
 0x54b   : > { %v1749_v29 = vadd.f32 %v6546_v56, %v1504_v28 }
 0x54c   : > { %v2527_v27 = vsel %vm2111_vm1, %v2469_v25, 0 }
 0x550   : > { %4487 = vmatmul.mubr.bf16.vlgmr.msra.gmra.mrb[20].mxu0 %v2172_v30 }
 0x551   : > { %4512 = vmatprep.mubr.msk.bf16.mxu0 %vm5595_vm0, %v5594_v52  ;;  %4497 = vmatpush3.bf16.msra.mxu0 %v4863_v50 }
 0x552   : > { %4498 = vmatprep.subr.bf16.mxu0 %v5594_v52 }
 0x555   : > { %4499 = vmatpush3.bf16.msra.mxu0 %v4864_v54 }
 0x556   : > { %4500 = vmatprep.subr.bf16.mxu0 %v5594_v52 }
 0x559   : > { %4501 = vmatpush3.bf16.msra.mxu0 %v4865_v61 }
 0x55a   : > { %4502 = vmatprep.subr.bf16.mxu0 %v5594_v52 }
 0x55d   : > { %4503 = vmatpush3.bf16.msra.mxu0 %v4866_v1 }
 0x55e   : > { %4504 = vmatprep.subr.bf16.mxu0 %v5594_v52 }
 0x561   : > { %4505 = vmatpush3.bf16.msra.mxu0 %v4867_v5  ;;  %v4871_v5 = vld [vmem:[%s6328_s2 + $0x80] sm:$0xff]  }
 0x562   : > { %4506 = vmatprep.subr.bf16.mxu0 %v5594_v52 }
 0x565   : > { %4507 = vmatpush3.bf16.msra.mxu0 %v4868_v6  ;;  %v4872_v6 = vld [vmem:[%s6328_s2 + $0x88] sm:$0xff]  }
 0x566   : > { %4508 = vmatprep.subr.bf16.mxu0 %v5594_v52 }
 0x569   : > { %4509 = vmatpush3.bf16.msra.mxu0 %v4869_v7  ;;  %v4873_v7 = vld [vmem:[%s6328_s2 + $0x90] sm:$0xff]  }
 0x56a   : > { %4510 = vmatprep.subr.bf16.mxu0 %v5594_v52 }
 0x56d   : > { %4511 = vmatpush3.bf16.msra.mxu0 %v4870_v8  ;;  %v4874_v8 = vld [vmem:[%s6328_s2 + $0x98] sm:$0xff]  }
 0x56e   : > { %4536 = vmatprep.subr.bf16.mxu0 %v5594_v52 }
 0x61b   : > { %v6535_v31 = vpop.f32.mrb[16].mxu0 }
 0x61c   : > { %v4482_v32 = vpop.f32.mrb[17].mxu0  ;;  %v2155_v26 = vpack.c.bf16 %v6535_v31, %v6535_v31  ;;  %v1208_v31 = vrot.slane %v6500_v48, %v6578_v18 }
 0x61d   : > { %v2152_v33 = vpop.f32.mrb[18].mxu0 }
 0x61e   : > { %v4483_v34 = vpop.f32.mrb[19].mxu0 }
 0x61f   : > { %v2468_v34 = vpack.c.bf16 %v1749_v29, %v1749_v29 }
 0x623   : > { %v2209_v35 = vpop.f32.mrb[20].mxu0 }
 0x624   : > { %v2215_v36 = vmul.f32 0.088388346, %v2209_v35  ;;  %v4488_v38 = vpop.f32.mrb[21].mxu0 }
 0x625   : > { %v2212_v39 = vpop.f32.mrb[22].mxu0  ;;  %v1453_v38 = vadd.f32 %v6539_v49, %v1208_v31 }
 0x626   : > { %v4489_v40 = vpop.f32.mrb[23].mxu0  ;;  %v2216_v37 = vsel %vm2095_vm2, %v2215_v36, -inf }
 0x627   : > { %2217 = vmax.xlane.f32.xlu1 %v2216_v37  ;;  %v2467_v39 = vpack.c.bf16 %v1453_v38, %v1453_v38 }
 0x6b4   : > { %v2218_v41 = vpop.xlane.xlu1 %2217 }
 0x6b5   : > { %v2219_v42 = vsub.f32 %v2215_v36, %v2218_v41 }
 0x6b7   : > { %v2220_v43 = vmul.f32 1.442695, %v2219_v42 }
 0x6b9   : > { %4971 = vpow2.f32 %v2220_v43 }
 0x6c3   : > { %v4972_v47 = vpop.eup %4971 }
 0x6c4   : > { %v2222_v21 = vsel %vm2095_vm2, %v4972_v47, 0.0 }
 0x6c5   : > { %2223 = vadd.xlane.f32.xlu1 %v2222_v21 }
 0x752   : > { %v2224_v9 = vpop.xlane.xlu1 %2223 }
 0x753   : > { %4973 = vrcp.f32 %v2224_v9  ;;  %v4875_v9 = vld [vmem:[%s6328_s2 + $0xa0] sm:$0xff]  }
 0x75d   : > { %v4974_v10 = vpop.eup %4973 }
 0x75e   : > { %v2226_v11 = vmul.f32 %v4974_v10, %v4972_v47  ;;  %v4876_v10 = vld [vmem:[%s6328_s2 + $0xa8] sm:$0xff]  }
 0x760   : > { %v2227_v13 = vpack.c.bf16 %v2226_v11, %v2226_v11  ;;  %v4877_v11 = vld [vmem:[%s6328_s2 + $0xb0] sm:$0xff]  }
 0x762   : > { %4493 = vmatmul.mubr.msk.bf16.vlgmr.msra.gmra.mrb[12].mxu1 %vm2095_vm2, %v2227_v13  ;;  %v6625_v13 = vsub.s32 3, %v6487_v44 }
 0x763   : > { %4517 = vmatpush3.bf16.msra.mxu1 %v4855_v12  ;;  %4532 = vmatprep.mubr.msk.bf16.mxu1 %vm5595_vm0, %v5594_v52 }
 0x764   : > { %4518 = vmatprep.subr.bf16.mxu1 %v5594_v52  ;;  %v1212_v20 = vrot.slane %v6500_v48, %v6625_v13  ;;  %v4878_v48 = vld [vmem:[%s6328_s2 + $0xb8] sm:$0xff]  }
 0x766   : > { %v1455_v44 = vadd.f32 %v6542_v51, %v1212_v20  ;;  %v4895_v20 = vld [vmem:[%s6344_s3 + $0x24] ss:$16 sps:$4 sm:$0xff]  }
 0x767   : > { %4519 = vmatpush3.bf16.msra.mxu1 %v4856_v14  ;;  %v1508_v14 = vrot.slane %v6491_v45, %v6625_v13 }
 0x768   : > { %4520 = vmatprep.subr.bf16.mxu1 %v5594_v52 }
 0x76b   : > { %4521 = vmatpush3.bf16.msra.mxu1 %v4857_v15 }
 0x76c   : > { %4522 = vmatprep.subr.bf16.mxu1 %v5594_v52 }
 0x76f   : > { %4523 = vmatpush3.bf16.msra.mxu1 %v4858_v16  ;;  %v1751_v16 = vadd.f32 %v6548_v57, %v1508_v14  ;;  %v4987_v14 = vld [vmem:[#allocation2] sm:$0xff] }
 0x770   : > { %4524 = vmatprep.subr.bf16.mxu1 %v5594_v52 }
 0x771   : > { %v2676_v23 = vpack.c.bf16 %v1751_v16, %v1751_v16  ;;  %v4887_v16 = vld [vmem:[%s6344_s3] ss:$16 sps:$4 sm:$0xff]  }
 0x773   : > { %4525 = vmatpush3.bf16.msra.mxu1 %v4859_v17  ;;  %v1804_v17 = vrot.slane %v6509_v58, %v6625_v13  ;;  %v2675_v58 = vpack.c.bf16 %v1455_v44, %v1455_v44  ;;  %v4901_v44 = vld [vmem:[%s6344_s3 + $0x44] ss:$16 sps:$4 sm:$0xff]  }
 0x774   : > { %4526 = vmatprep.subr.bf16.mxu1 %v5594_v52 }
 0x777   : > { %4527 = vmatpush3.bf16.msra.mxu1 %v4860_v19 }
 0x778   : > { %4528 = vmatprep.subr.bf16.mxu1 %v5594_v52 }
 0x77b   : > { %4529 = vmatpush3.bf16.msra.mxu1 %v4861_v22 }
 0x77c   : > { %4530 = vmatprep.subr.bf16.mxu1 %v5594_v52 }
 0x77f   : > { %4531 = vmatpush3.bf16.msra.mxu1 %v4862_v24  ;;  %v2047_v24 = vadd.f32 %v6552_v0, %v1804_v17  ;;  %v4889_v17 = vld [vmem:[%s6344_s3 + $0x4] ss:$16 sps:$4 sm:$0xff]  }
 0x780   : > { %4542 = vmatprep.subr.bf16.mxu1 %v5594_v52 }
 0x781   : > { %v2677_v45 = vpack.c.bf16 %v2047_v24, %v2047_v24  ;;  %v4896_v24 = vld [vmem:[%s6344_s3 + $0x28] ss:$16 sps:$4 sm:$0xff]  }
 0x782   : > { %4533 = vmatmul.mubr.bf16.vlgmr.msra.gmra.mrb[16].mxu1 %v2155_v26 }
 0x783   : > { %4543 = vmatpush3.bf16.msra.mxu1 %v2527_v27  ;;  %4544 = vmatprep.mubr.msk.bf16.mxu1 %vm5595_vm0, %v5594_v52  ;;  %v2735_v57 = vsel %vm2111_vm1, %v2677_v45, 0  ;;  %v4904_v45 = vld [vmem:[%s6344_s3 + $0x4c] ss:$16 sps:$4 sm:$0xff]  }
 0x784   : > { %4568 = vmatprep.subr.bf16.mxu1 %v5594_v52 }
 0x835   : > { %v2268_v30 = vpop.f32.mrb[12].mxu1 }
 0x836   : > { %v2274_v32 = vpack.c.bf16 %v2268_v30, %v2268_v30  ;;  %v4494_v33 = vpop.f32.mrb[13].mxu1 }
 0x837   : > { %v2271_v35 = vpop.f32.mrb[14].mxu1 }
 0x838   : > { %v4495_v36 = vpop.f32.mrb[15].mxu1  ;;  %4513 = vmatmul.mubr.bf16.vlgmr.msra.gmra.mrb[24].mxu0 %v2274_v32 }
 0x839   : > { %4537 = vmatpush3.bf16.xpose.msra.mxu0 %v2468_v34  ;;  %4538 = vmatprep.mubr.msk.bf16.mxu0 %vm5595_vm0, %v5594_v52 }
 0x83a   : > { %4548 = vmatprep.subr.bf16.mxu0 %v5594_v52 }
 0x840   : > { %4539 = vmatmul.mubr.bf16.vlgmr.msra.gmra.mrb[28].mxu0 %v2467_v39 }
 0x841   : > { %4564 = vmatprep.mubr.msk.bf16.mxu0 %vm5595_vm0, %v5594_v52  ;;  %4549 = vmatpush3.bf16.msra.mxu0 %v4871_v5 }
 0x842   : > { %4550 = vmatprep.subr.bf16.mxu0 %v5594_v52 }
 0x845   : > { %4551 = vmatpush3.bf16.msra.mxu0 %v4872_v6 }
 0x846   : > { %4552 = vmatprep.subr.bf16.mxu0 %v5594_v52 }
 0x849   : > { %4553 = vmatpush3.bf16.msra.mxu0 %v4873_v7 }
 0x84a   : > { %4554 = vmatprep.subr.bf16.mxu0 %v5594_v52 }
 0x84d   : > { %4555 = vmatpush3.bf16.msra.mxu0 %v4874_v8  ;;  %v4273_v8 = vld [vmem:[%s6926_s27] ss:$0 sm:$0xff] }
 0x84e   : > { %4556 = vmatprep.subr.bf16.mxu0 %v5594_v52 }
 0x851   : > { %4557 = vmatpush3.bf16.msra.mxu0 %v4875_v9 }
 0x852   : > { %4558 = vmatprep.subr.bf16.mxu0 %v5594_v52 }
 0x855   : > { %v2461_v40 = vpop.f32.mrb[16].mxu1  ;;  %4559 = vmatpush3.bf16.msra.mxu0 %v4876_v10 }
 0x856   : > { %v4534_v37 = vpop.f32.mrb[17].mxu1  ;;  %4560 = vmatprep.subr.bf16.mxu0 %v5594_v52 }
 0x857   : > { %v2464_v41 = vpop.f32.mrb[18].mxu1 }
 0x858   : > { %v4535_v42 = vpop.f32.mrb[19].mxu1 }
 0x859   : > { %4561 = vmatpush3.bf16.msra.mxu0 %v4877_v11 }
 0x85a   : > { %4562 = vmatprep.subr.bf16.mxu0 %v5594_v52 }
 0x85d   : > { %4563 = vmatpush3.bf16.msra.mxu0 %v4878_v48 }
 0x85e   : > { %3135 = vmatprep.subr.bf16.mxu0 %v4889_v17  ;;  %v4950_v17 = vld [vmem:[%s6353_s1 + $0x98] sm:$0xff]  }
 0x90b   : > { %v2373_v43 = vpop.f32.mrb[24].mxu0 }
 0x90c   : > { %v6606_v47 = vadd.f32 %v2461_v40, %v2373_v43  ;;  %v4514_v21 = vpop.f32.mrb[25].mxu0 }
 0x90d   : > { %v2376_v50 = vpop.f32.mrb[26].mxu0 }
 0x90e   : > { %v4515_v53 = vpop.f32.mrb[27].mxu0 }
 0x913   : > { %v2504_v54 = vpop.f32.mrb[28].mxu0 }
 0x914   : > { %v2510_v49 = vmul.f32 0.088388346, %v2504_v54  ;;  %v4540_v55 = vpop.f32.mrb[29].mxu0  ;;  %v4879_v54 = vld [vmem:[%s6328_s2 + $0xc0] sm:$0xff]  }
 0x915   : > { %v2507_v56 = vpop.f32.mrb[30].mxu0  ;;  %v4880_v55 = vld [vmem:[%s6328_s2 + $0xc8] sm:$0xff]  }
 0x916   : > { %v4541_v60 = vpop.f32.mrb[31].mxu0  ;;  %v2511_v61 = vsel %vm2095_vm2, %v2510_v49, -inf  ;;  %v4882_v56 = vld [vmem:[%s6328_s2 + $0xd8] sm:$0xff]  }
 0x917   : > { %2512 = vmax.xlane.f32.xlu0 %v2511_v61  ;;  %v4883_v60 = vld [vmem:[%s6328_s2 + $0xe0] sm:$0xff]   ;;  %v4884_v61 = vld [vmem:[%s6328_s2 + $0xe8] sm:$0xff]  }
 0x9a4   : > { %v2513_v62 = vpop.xlane.xlu0 %2512 }
 0x9a5   : > { %v2514_v63 = vsub.f32 %v2510_v49, %v2513_v62  ;;  %v4885_v62 = vld [vmem:[%s6328_s2 + $0xf0] sm:$0xff]  }
 0x9a7   : > { %v2515_v1 = vmul.f32 1.442695, %v2514_v63  ;;  %v4886_v63 = vld [vmem:[%s6328_s2 + $0xf8] sm:$0xff]  }
 0x9a9   : > { %4975 = vpow2.f32 %v2515_v1 }
 0x9b3   : > { %v4976_v2 = vpop.eup %4975 }
 0x9b4   : > { %v2517_v4 = vsel %vm2095_vm2, %v4976_v2, 0.0 }
 0x9b5   : > { %2518 = vadd.xlane.f32.xlu1 %v2517_v4 }
 0xa42   : > { %v2519_v12 = vpop.xlane.xlu1 %2518 }
 0xa43   : > { %4977 = vrcp.f32 %v2519_v12 }
 0xa4d   : > { %v4978_v15 = vpop.eup %4977 }
 0xa4e   : > { %v2521_v19 = vmul.f32 %v4978_v15, %v4976_v2 }
 0xa50   : > { %v2522_v22 = vpack.c.bf16 %v2521_v19, %v2521_v19  ;;  %v4892_v19 = vld [vmem:[%s6344_s3 + $0xc] ss:$16 sps:$4 sm:$0xff]  }
 0xa52   : > { %4545 = vmatmul.mubr.msk.bf16.vlgmr.msra.gmra.mrb[20].mxu1 %vm2095_vm2, %v2522_v22  ;;  %v4898_v22 = vld [vmem:[%s6344_s3 + $0x2c] ss:$16 sps:$4 sm:$0xff]  }
 0xa53   : > { %4569 = vmatpush3.bf16.xpose.msra.mxu1 %v2676_v23  ;;  %4570 = vmatprep.mubr.msk.bf16.mxu1 %vm5595_vm0, %v5594_v52  ;;  %v4893_v23 = vld [vmem:[%s6344_s3 + $0x20] ss:$16 sps:$4 sm:$0xff]  }
 0xa54   : > { %4574 = vmatprep.subr.bf16.mxu1 %v5594_v52 }
 0xa5a   : > { %4571 = vmatmul.mubr.bf16.vlgmr.msra.gmra.mrb[24].mxu1 %v2675_v58  ;;  %v4899_v58 = vld [vmem:[%s6344_s3 + $0x40] ss:$16 sps:$4 sm:$0xff]  }
 0xa5b   : > { %4575 = vmatpush3.bf16.msra.mxu1 %v2735_v57  ;;  %4576 = vmatprep.mubr.msk.bf16.mxu1 %vm5595_vm0, %v5594_v52  ;;  %v4902_v57 = vld [vmem:[%s6344_s3 + $0x48] ss:$16 sps:$4 sm:$0xff]  }
 0xa5c   : > { %4580 = vmatprep.subr.bf16.mxu1 %v5594_v52 }
 0xb25   : > { %v2563_v0 = vpop.f32.mrb[20].mxu1 }
 0xb26   : > { %v2569_v25 = vpack.c.bf16 %v2563_v0, %v2563_v0  ;;  %v4546_v26 = vpop.f32.mrb[21].mxu1 }
 0xb27   : > { %v2566_v27 = vpop.f32.mrb[22].mxu1 }
 0xb28   : > { %v4547_v51 = vpop.f32.mrb[23].mxu1  ;;  %4565 = vmatmul.mubr.bf16.vlgmr.msra.gmra.mrb[32].mxu0 %v2569_v25  ;;  %v4907_v27 = vld [vmem:[%s6344_s3 + $0x64] ss:$16 sps:$4 sm:$0xff]  }
 0xb29   : > { %3167 = vmatprep.mubr.bf16.mxu0 %v5593_v3  ;;  %3136 = vmatpush1.bf16.msra.mxu0 %v4887_v16  ;;  %v4910_v51 = vld [vmem:[%s6344_s3 + $0x6c] ss:$16 sps:$4 sm:$0xff]   ;;  %v4949_v16 = vld [vmem:[%s6353_s1 + $0x18] sm:$0xff]  }
 0xb2a   : > { %3137 = vmatprep.subr.bf16.mxu0 %v4895_v20  ;;  %v4953_v20 = vld [vmem:[%s6353_s1 + $0x20] sm:$0xff]  }
 0xb2d   : > { %v2712_v28 = vpop.f32.mrb[24].mxu1  ;;  %3138 = vmatpush1.bf16.msra.mxu0 %v4893_v23  ;;  %v4955_v23 = vld [vmem:[%s6353_s1 + $0x68] sm:$0xff]  }
 0xb2e   : > { %v2718_v29 = vmul.f32 0.088388346, %v2712_v28  ;;  %v4572_v30 = vpop.f32.mrb[25].mxu1  ;;  %3139 = vmatprep.subr.bf16.mxu0 %v4901_v44  ;;  %v4905_v28 = vld [vmem:[%s6344_s3 + $0x60] ss:$16 sps:$4 sm:$0xff]  }
 0xb2f   : > { %v2715_v31 = vpop.f32.mrb[26].mxu1  ;;  %v4913_v30 = vld [vmem:[%s6344_s3 + $0x84] ss:$16 sps:$4 sm:$0xff]  }
 0xb30   : > { %v4573_v32 = vpop.f32.mrb[27].mxu1  ;;  %v2719_v33 = vsel %vm2095_vm2, %v2718_v29, -inf  ;;  %v4916_v31 = vld [vmem:[%s6344_s3 + $0x8c] ss:$16 sps:$4 sm:$0xff]   ;;  %v4957_v44 = vld [vmem:[%s6353_s1 + $0x28] sm:$0xff]  }
 0xb31   : > { %2720 = vmax.xlane.f32.xlu0 %v2719_v33  ;;  %3140 = vmatpush1.bf16.msra.mxu0 %v4899_v58  ;;  %v4911_v32 = vld [vmem:[%s6344_s3 + $0x80] ss:$16 sps:$4 sm:$0xff]   ;;  %v4914_v33 = vld [vmem:[%s6344_s3 + $0x88] ss:$16 sps:$4 sm:$0xff]  }
 0xb32   : > { %3141 = vmatprep.subr.bf16.mxu0 %v4907_v27  ;;  %v4959_v58 = vld [vmem:[%s6353_s1 + $0x70] sm:$0xff]   ;;  %v4965_v27 = vld [vmem:[%s6353_s1 + $0x38] sm:$0xff]  }
 0xb35   : > { %3142 = vmatpush1.bf16.msra.mxu0 %v4905_v28  ;;  %v2953_v28 = vld [vmem:[%s1002_s20] sm:$0xf] }
 0xb36   : > { %3143 = vmatprep.subr.bf16.mxu0 %v4913_v30  ;;  %v2966_v30 = vrot.slane %v2953_v28, %v6578_v18 }
 0xb39   : > { %3144 = vmatpush1.bf16.msra.mxu0 %v4911_v32  ;;  %v2970_v32 = vrot.slane %v2953_v28, %v6625_v13 }
 0xbbe   : > { %v2721_v34 = vpop.xlane.xlu0 %2720 }
 0xbbf   : > { %v2722_v35 = vsub.f32 %v2718_v29, %v2721_v34  ;;  %v4908_v29 = vld [vmem:[%s6344_s3 + $0x68] ss:$16 sps:$4 sm:$0xff]   ;;  %v4919_v34 = vld [vmem:[%s6344_s3 + $0xa4] ss:$16 sps:$4 sm:$0xff]  }
 0xbc0   : > { %3145 = vmatprep.subr.bf16.mxu0 %v4919_v34 }
 0xbc1   : > { %v2723_v36 = vmul.f32 1.442695, %v2722_v35  ;;  %v4922_v35 = vld [vmem:[%s6344_s3 + $0xac] ss:$16 sps:$4 sm:$0xff]  }
 0xbc3   : > { %4979 = vpow2.f32 %v2723_v36  ;;  %v4917_v36 = vld [vmem:[%s6344_s3 + $0xa0] ss:$16 sps:$4 sm:$0xff]  }
 0xbc4   : > { %3146 = vmatpush1.bf16.msra.mxu0 %v4917_v36 }
 0xbcd   : > { %v4980_v38 = vpop.eup %4979 }
 0xbce   : > { %v2725_v39 = vsel %vm2095_vm2, %v4980_v38, 0.0 }
 0xbcf   : > { %2726 = vadd.xlane.f32.xlu1 %v2725_v39  ;;  %v4925_v39 = vld [vmem:[%s6344_s3 + $0xc4] ss:$16 sps:$4 sm:$0xff]  }
 0xbd0   : > { %3147 = vmatprep.subr.bf16.mxu0 %v4925_v39 }
 0xbfb   : > { %v2668_v40 = vpop.f32.mrb[32].mxu0 }
 0xbfc   : > { %v2674_v37 = vadd.f32 %v2668_v40, %v6606_v47  ;;  %v4566_v41 = vpop.f32.mrb[33].mxu0  ;;  %v4881_v47 = vld [vmem:[%s6328_s2 + $0xd0] sm:$0xff]   ;;  %s6930_s2 = sld [smem:[#allocation54_spill]] (!%p4343_p11) }
 0xbfd   : > { %v2671_v42 = vpop.f32.mrb[34].mxu0  ;;  %v4928_v40 = vld [vmem:[%s6344_s3 + $0xcc] ss:$16 sps:$4 sm:$0xff]   ;;  %v4926_v41 = vld [vmem:[%s6344_s3 + $0xc8] ss:$16 sps:$4 sm:$0xff]  }
 0xbfe   : > { %v4567_v43 = vpop.f32.mrb[35].mxu0  ;;  %v4931_v42 = vld [vmem:[%s6344_s3 + $0xe4] ss:$16 sps:$4 sm:$0xff]  }
 0xbff   : > { %v4934_v43 = vld [vmem:[%s6344_s3 + $0xec] ss:$16 sps:$4 sm:$0xff]  }
 0xc5c   : > { %v2727_v21 = vpop.xlane.xlu1 %2726 }
 0xc5d   : > { %4981 = vrcp.f32 %v2727_v21  ;;  %v4929_v21 = vld [vmem:[%s6344_s3 + $0xe0] ss:$16 sps:$4 sm:$0xff]  }
 0xc67   : > { %v4982_v50 = vpop.eup %4981 }
 0xc68   : > { %v2729_v53 = vmul.f32 %v4982_v50, %v4980_v38  ;;  %v4920_v38 = vld [vmem:[%s6344_s3 + $0xa8] ss:$16 sps:$4 sm:$0xff]  }
 0xc69   : > { %v4932_v50 = vld [vmem:[%s6344_s3 + $0xe8] ss:$16 sps:$4 sm:$0xff]  }
 0xc6a   : > { %v2730_v49 = vpack.c.bf16 %v2729_v53, %v2729_v53  ;;  %v4935_v53 = vld [vmem:[%s6353_s1 + $0x40] sm:$0xff]  }
 0xc6c   : > { %4577 = vmatmul.mubr.msk.bf16.vlgmr.msra.gmra.mrb[28].mxu1 %vm2095_vm2, %v2730_v49 }
 0xc6d   : > { %4581 = vmatpush3.bf16.msra.mxu1 %v4879_v54  ;;  %4596 = vmatprep.mubr.msk.bf16.mxu1 %vm5595_vm0, %v5594_v52  ;;  %v4936_v54 = vld [vmem:[%s6353_s1 + $0xc0] sm:$0xff]  }
 0xc6e   : > { %4582 = vmatprep.subr.bf16.mxu1 %v5594_v52 }
 0xc71   : > { %4583 = vmatpush3.bf16.msra.mxu1 %v4880_v55 }
 0xc72   : > { %4584 = vmatprep.subr.bf16.mxu1 %v5594_v52 }
 0xc75   : > { %4585 = vmatpush3.bf16.msra.mxu1 %v4881_v47 }
 0xc76   : > { %4586 = vmatprep.subr.bf16.mxu1 %v5594_v52 }
 0xc79   : > { %4587 = vmatpush3.bf16.msra.mxu1 %v4882_v56 }
 0xc7a   : > { %4588 = vmatprep.subr.bf16.mxu1 %v5594_v52 }
 0xc7d   : > { %4589 = vmatpush3.bf16.msra.mxu1 %v4883_v60 }
 0xc7e   : > { %4590 = vmatprep.subr.bf16.mxu1 %v5594_v52 }
 0xc81   : > { %4591 = vmatpush3.bf16.msra.mxu1 %v4884_v61 }
 0xc82   : > { %4592 = vmatprep.subr.bf16.mxu1 %v5594_v52 }
 0xc85   : > { %4593 = vmatpush3.bf16.msra.mxu1 %v4885_v62  ;;  %v4275_v62 = vld [vmem:[%s6928_s14] ss:$0 sm:$0xff] }
 0xc86   : > { %4594 = vmatprep.subr.bf16.mxu1 %v5594_v52 }
 0xc89   : > { %4595 = vmatpush3.bf16.msra.mxu1 %v4886_v63 }
 0xc8a   : > { %3176 = vmatprep.subr.bf16.mxu1 %v4892_v19  ;;  %v4952_v19 = vld [vmem:[%s6353_s1 + $0xe0] sm:$0xff]  }
 0xd3f   : > { %v2771_v1 = vpop.f32.mrb[28].mxu1 }
 0xd40   : > { %v2777_v2 = vpack.c.bf16 %v2771_v1, %v2771_v1  ;;  %v4578_v4 = vpop.f32.mrb[29].mxu1 }
 0xd41   : > { %v2774_v5 = vpop.f32.mrb[30].mxu1  ;;  %v4938_v4 = vld [vmem:[%s6353_s1 + $0x80] sm:$0xff]  }
 0xd42   : > { %v4579_v6 = vpop.f32.mrb[31].mxu1  ;;  %4597 = vmatmul.mubr.bf16.vlgmr.msra.gmra.mrb[32].mxu1 %v2777_v2  ;;  %v4937_v2 = vld [vmem:[%s6353_s1] sm:$0xff]  }
 0xd43   : > { %3208 = vmatprep.mubr.bf16.mxu1 %v5593_v3  ;;  %v4890_v3 = vld [vmem:[%s6344_s3 + $0x8] ss:$16 sps:$4 sm:$0xff]   ;;  %v4939_v6 = vld [vmem:[%s6353_s1 + $0x48] sm:$0xff]  }
 0xd44   : > { %3177 = vmatpush1.bf16.msra.mxu1 %v4890_v3  ;;  %v4951_v3 = vld [vmem:[%s6353_s1 + $0x60] sm:$0xff]  }
 0xd45   : > { %3178 = vmatprep.subr.bf16.mxu1 %v4898_v22  ;;  %v4954_v22 = vld [vmem:[%s6353_s1 + $0xa0] sm:$0xff]  }
 0xd48   : > { %3179 = vmatpush1.bf16.msra.mxu1 %v4896_v24  ;;  %v4956_v24 = vld [vmem:[%s6353_s1 + $0xe8] sm:$0xff]  }
 0xd49   : > { %3180 = vmatprep.subr.bf16.mxu1 %v4904_v45  ;;  %v4958_v45 = vld [vmem:[%s6353_s1 + $0xa8] sm:$0xff]  }
 0xd4c   : > { %3181 = vmatpush1.bf16.msra.mxu1 %v4902_v57  ;;  %v4960_v57 = vld [vmem:[%s6353_s1 + $0xf0] sm:$0xff]  }
 0xd4d   : > { %3182 = vmatprep.subr.bf16.mxu1 %v4910_v51  ;;  %v4966_v51 = vld [vmem:[%s6353_s1 + $0xb8] sm:$0xff]  }
 0xd50   : > { %3183 = vmatpush1.bf16.msra.mxu1 %v4908_v29  ;;  %v2958_v29 = vrot.slane %v2953_v28, %v6494_v46 }
 0xd51   : > { %3184 = vmatprep.subr.bf16.mxu1 %v4916_v31  ;;  %v2962_v31 = vrot.slane %v2953_v28, %v6512_v59  ;;  %v4344_v28 = vld [vmem:[%s6931_s17] ss:$0 sm:$0xff] (!%p4343_p11) }
 0xd54   : > { %3185 = vmatpush1.bf16.msra.mxu1 %v4914_v33 }
 0xd55   : > { %3186 = vmatprep.subr.bf16.mxu1 %v4922_v35 }
 0xd58   : > { %3187 = vmatpush1.bf16.msra.mxu1 %v4920_v38 }
 0xd59   : > { %3188 = vmatprep.subr.bf16.mxu1 %v4928_v40 }
 0xd5c   : > { %3189 = vmatpush1.bf16.msra.mxu1 %v4926_v41 }
 0xd5d   : > { %3190 = vmatprep.subr.bf16.mxu1 %v4934_v43 }
 0xd60   : > { %3191 = vmatpush1.bf16.msra.mxu1 %v4932_v50 }
 0xd61   : > { %4441 = vmatprep.subr.bf16.mxu1 %v4936_v54 }
 0xe15   : > { %v2876_v7 = vpop.f32.mrb[32].mxu1 }
 0xe16   : > { %v2882_v52 = vadd.f32 %v2876_v7, %v2674_v37  ;;  %v4598_v9 = vpop.f32.mrb[33].mxu1  ;;  %v4923_v37 = vld [vmem:[%s6344_s3 + $0xc0] ss:$16 sps:$4 sm:$0xff]   ;;  %s6927_s3 = scalar_lea.vmem [#allocation18], %s6291_s25 }
 0xe17   : > { %v2879_v10 = vpop.f32.mrb[34].mxu1  ;;  %3148 = vmatpush1.bf16.msra.mxu0 %v4923_v37  ;;  %v4274_v60 = vld [vmem:[%s6927_s3] ss:$0 sm:$0xff]  ;;  %v4943_v9 = vld [vmem:[%s6353_s1 + $0x50] sm:$0xff]  }
 0xe18   : > { %v2890_v11 = vadd.f32 %v4273_v8, %v2882_v52  ;;  %v4599_v12 = vpop.f32.mrb[35].mxu1  ;;  %3149 = vmatprep.subr.bf16.mxu0 %v4931_v42  ;;  %v4940_v7 = vld [vmem:[%s6353_s1 + $0xc8] sm:$0xff]   ;;  %v4944_v10 = vld [vmem:[%s6353_s1 + $0xd0] sm:$0xff]  }
 0xe19   : > { %v4941_v8 = vld [vmem:[%s6353_s1 + $0x8] sm:$0xff]   ;;  %v4946_v12 = vld [vmem:[%s6353_s1 + $0x90] sm:$0xff]  }
 0xe1a   : > { %v2891_v15 = vadd.f32 %v4987_v14, %v2890_v11  ;;  %v4942_v52 = vld [vmem:[%s6353_s1 + $0x88] sm:$0xff]   ;;  %v4945_v11 = vld [vmem:[%s6353_s1 + $0x10] sm:$0xff]   ;;  %v4947_v14 = vld [vmem:[%s6353_s1 + $0x58] sm:$0xff]  }
 0xe1b   : > { %3150 = vmatpush1.bf16.msra.mxu0 %v4929_v21 }
 0xe1c   : > { %2892 = vadd.xlane.f32.xlu0 %v2891_v15  ;;  %4419 = vmatprep.subr.bf16.mxu0 %v4935_v53 }
 0xea9   : > { %v2893_v48 = vpop.xlane.xlu0 %2892 }
 0xeaa   : > { %v2895_v0 = vmul.f32 0.0078125, %v2893_v48  ;;  %v4961_v48 = vld [vmem:[%s6353_s1 + $0x30] sm:$0xff]  }
 0xeac   : > { %v2896_v25 = vsub.f32 %v2891_v15, %v2895_v0  ;;  %v4948_v15 = vld [vmem:[%s6353_s1 + $0xd8] sm:$0xff]   ;;  %v4962_v0 = vld [vmem:[%s6353_s1 + $0xb0] sm:$0xff]  }
 0xeae   : > { %v2897_v26 = vmul.f32 %v2896_v25, %v2896_v25 }
 0xeb0   : > { %2898 = vadd.xlane.f32.xlu1 %v2897_v26  ;;  %v4964_v26 = vld [vmem:[%s6353_s1 + $0xf8] sm:$0xff]  }
 0xf3d   : > { %v2899_v49 = vpop.xlane.xlu1 %2898 }
 0xf3e   : > { %v2900_v55 = vmul.f32 0.0078125, %v2899_v49 }
 0xf40   : > { %v2901_v47 = vadd.f32 1e-05, %v2900_v55 }
 0xf42   : > { %4983 = vrsqrt.f32 %v2901_v47 }
 0xf4c   : > { %v4984_v56 = vpop.eup %4983 }
 0xf4d   : > { %v2903_v61 = vmul.f32 %v4984_v56, %v2896_v25  ;;  %v4963_v25 = vld [vmem:[%s6353_s1 + $0x78] sm:$0xff]   ;;  %v4308_v56 = vld [vmem:[%s1019_s21] ss:$0 sm:$0xff] }
 0xf4f   : > { %v2911_v63 = vmul.f32 %v4274_v60, %v2903_v61 }
 0xf51   : > { %v6708_v1 = vadd.f32 %v4275_v62, %v2911_v63 }
 0xf53   : > { %v2920_v5 = vpack.c.bf16 %v6708_v1, %v6708_v1 }
 0xf55   : > { %3168 = vmatmul.mubr.bf16.vlgmr.msra.gmra.mrb[36].mxu0 %v2920_v5  ;;  %3209 = vmatmul.mubr.bf16.vlgmr.msra.gmra.mrb[36].mxu1 %v2920_v5 }
 0xf56   : > { %4420 = vmatpush3.bf16.msra.mxu0 %v4937_v2  ;;  %4442 = vmatpush3.bf16.msra.mxu1 %v4938_v4 }
 0xf57   : > { %4421 = vmatprep.subr.bf16.mxu0 %v4939_v6  ;;  %4443 = vmatprep.subr.bf16.mxu1 %v4940_v7 }
 0xf5a   : > { %4422 = vmatpush3.bf16.msra.mxu0 %v4941_v8  ;;  %4444 = vmatpush3.bf16.msra.mxu1 %v4942_v52 }
 0xf5b   : > { %4423 = vmatprep.subr.bf16.mxu0 %v4943_v9  ;;  %4445 = vmatprep.subr.bf16.mxu1 %v4944_v10 }
 0xf5e   : > { %4424 = vmatpush3.bf16.msra.mxu0 %v4945_v11  ;;  %4446 = vmatpush3.bf16.msra.mxu1 %v4946_v12 }
 0xf5f   : > { %4425 = vmatprep.subr.bf16.mxu0 %v4947_v14  ;;  %4447 = vmatprep.subr.bf16.mxu1 %v4948_v15 }
 0xf62   : > { %4426 = vmatpush3.bf16.msra.mxu0 %v4949_v16  ;;  %4448 = vmatpush3.bf16.msra.mxu1 %v4950_v17 }
 0xf63   : > { %4427 = vmatprep.subr.bf16.mxu0 %v4951_v3  ;;  %4449 = vmatprep.subr.bf16.mxu1 %v4952_v19  ;;  %v4341_v3 = vld [vmem:[%s1027_s23] ss:$0 sm:$0xff] }
 0xf66   : > { %4428 = vmatpush3.bf16.msra.mxu0 %v4953_v20  ;;  %4450 = vmatpush3.bf16.msra.mxu1 %v4954_v22  ;;  %v4342_v20 = vld [vmem:[%s1035_s18] ss:$0 sm:$0xff] }
 0xf67   : > { %4429 = vmatprep.subr.bf16.mxu0 %v4955_v23  ;;  %4451 = vmatprep.subr.bf16.mxu1 %v4956_v24  ;;  %v5596_v24 = vmov (!%p4343_p11), 0.0  }
 0xf6a   : > { %4430 = vmatpush3.bf16.msra.mxu0 %v4957_v44  ;;  %4452 = vmatpush3.bf16.msra.mxu1 %v4958_v45  ;;  %v4989_v44 = vld [vmem:[%s6930_s2 + $0x8] sm:$0xff] (!%p4343_p11)   ;;  %v4990_v45 = vld [vmem:[%s6930_s2 + $0x10] sm:$0xff] (!%p4343_p11)  }
 0xf6b   : > { %4431 = vmatprep.subr.bf16.mxu0 %v4959_v58  ;;  %4453 = vmatprep.subr.bf16.mxu1 %v4960_v57  ;;  %v4991_v58 = vld [vmem:[%s6930_s2 + $0x18] sm:$0xff] (!%p4343_p11)  }
 0xf6e   : > { %4432 = vmatpush3.bf16.msra.mxu0 %v4961_v48  ;;  %4454 = vmatpush3.bf16.msra.mxu1 %v4962_v0  ;;  %v4992_v48 = vld [vmem:[%s6930_s2 + $0x20] sm:$0xff] (!%p4343_p11)   ;;  %v4993_v0 = vld [vmem:[%s6930_s2 + $0x28] sm:$0xff] (!%p4343_p11)  }
 0xf6f   : > { %4433 = vmatprep.subr.bf16.mxu0 %v4963_v25  ;;  %4455 = vmatprep.subr.bf16.mxu1 %v4964_v26  ;;  %v4994_v25 = vld [vmem:[%s6930_s2 + $0x30] sm:$0xff] (!%p4343_p11)  }
 0xf72   : > { %4434 = vmatpush3.bf16.msra.mxu0 %v4965_v27  ;;  %4456 = vmatpush3.bf16.msra.mxu1 %v4966_v51  ;;  %v4995_v27 = vld [vmem:[%s6930_s2 + $0x38] sm:$0xff] (!%p4343_p11)  }
 0xf73   : > { %4600 = vmatprep.subr.bf16.mxu0 (!%p4343_p11), %v5596_v24 }
0x1028   : > { %v3169_v33 = vpop.f32.mrb[36].mxu0  ;;  %v3210_v34 = vpop.f32.mrb[36].mxu1 }
0x1029   : > { %v3170_v35 = vadd.f32 %v3169_v33, %v2958_v29  ;;  %v3211_v36 = vadd.f32 %v3210_v34, %v2966_v30  ;;  %v3171_v38 = vpop.f32.mrb[37].mxu0  ;;  %v3212_v39 = vpop.f32.mrb[37].mxu1 }
0x102a   : > { %v3172_v40 = vadd.f32 %v3171_v38, %v2962_v31  ;;  %v3213_v37 = vadd.f32 %v3212_v39, %v2970_v32  ;;  %v3173_v41 = vpop.f32.mrb[38].mxu0  ;;  %v3214_v42 = vpop.f32.mrb[38].mxu1 }
0x102b   : > { %v3217_v43 = vmax.f32 %v3170_v35, 0.0  ;;  %v3219_v21 = vmax.f32 %v3211_v36, 0.0  ;;  %v3174_v46 = vpop.f32.mrb[39].mxu0  ;;  %v3215_v50 = vpop.f32.mrb[39].mxu1 }
0x102c   : > { %v3218_v18 = vmax.f32 %v3172_v40, 0.0  ;;  %v3220_v53 = vmax.f32 %v3213_v37, 0.0 }
0x102d   : > { %v3221_v13 = vpack.c.bf16 %v3217_v43, %v3217_v43  ;;  %v3223_v49 = vpack.c.bf16 %v3219_v21, %v3219_v21 }
0x102e   : > { %v3222_v59 = vpack.c.bf16 %v3218_v18, %v3218_v18  ;;  %v3224_v54 = vpack.c.bf16 %v3220_v53, %v3220_v53 }
0x1030   : > { %3520 = vmatprep.mubr.bf16.mxu0 %v3222_v59  ;;  %3560 = vmatprep.mubr.bf16.mxu1 %v3224_v54 }
0x1031   : > { %3521 = vmatmul.mubr.bf16.vlgmr.msra.gmra.mrb[40].mxu0 %v3221_v13  ;;  %3561 = vmatmul.mubr.bf16.vlgmr.msra.gmra.mrb[40].mxu1 %v3223_v49 }
0x1032   : > { %4616 = vmatprep.mubr.msk.bf16.mxu0 (!%p4343_p11), %vm5597_vm3, %v5596_v24 }
0x1104   : > { %v4435_v55 = vpop.f32.mrb[40].mxu0  ;;  %v4457_v47 = vpop.f32.mrb[40].mxu1 }
0x1105   : > { %v4436_v60 = vpop.f32.mrb[41].mxu0  ;;  %v4458_v61 = vpop.f32.mrb[41].mxu1 }
0x1106   : > { %v4437_v62 = vadd.f32 %v4436_v60, %v4435_v55  ;;  %v4459_v63 = vadd.f32 %v4458_v61, %v4457_v47  ;;  %v4438_v2 = vpop.f32.mrb[42].mxu0  ;;  %v4460_v4 = vpop.f32.mrb[42].mxu1 }
0x1107   : > { %v4439_v5 = vpop.f32.mrb[43].mxu0  ;;  %v4461_v6 = vpop.f32.mrb[43].mxu1 }
0x1108   : > { %v3523_v7 = vadd.f32 %v4437_v62, %v4308_v56 }
0x110a   : > { %v3563_v8 = vadd.f32 %v4459_v63, %v3523_v7 }
0x110c   : > { %v3568_v52 = vadd.f32 %v3563_v8, %v6708_v1  ;;  %v4988_v1 = vld [vmem:[%s6930_s2] sm:$0xff] (!%p4343_p11)  }
0x110d   : > { %4601 = vmatpush3.bf16.msra.mxu0 (!%p4343_p11), %v4988_v1 }
0x110e   : > { %3569 = vadd.xlane.f32.xlu0 %v3568_v52  ;;  %4602 = vmatprep.subr.bf16.mxu0 (!%p4343_p11), %v5596_v24 }
0x1111   : > { %4603 = vmatpush3.bf16.msra.mxu0 (!%p4343_p11), %v4989_v44 }
0x1112   : > { %4604 = vmatprep.subr.bf16.mxu0 (!%p4343_p11), %v5596_v24 }
0x1115   : > { %4605 = vmatpush3.bf16.msra.mxu0 (!%p4343_p11), %v4990_v45 }
0x1116   : > { %4606 = vmatprep.subr.bf16.mxu0 (!%p4343_p11), %v5596_v24 }
0x1119   : > { %4607 = vmatpush3.bf16.msra.mxu0 (!%p4343_p11), %v4991_v58 }
0x111a   : > { %4608 = vmatprep.subr.bf16.mxu0 (!%p4343_p11), %v5596_v24 }
0x111d   : > { %4609 = vmatpush3.bf16.msra.mxu0 (!%p4343_p11), %v4992_v48 }
0x111e   : > { %4610 = vmatprep.subr.bf16.mxu0 (!%p4343_p11), %v5596_v24 }
0x1121   : > { %4611 = vmatpush3.bf16.msra.mxu0 (!%p4343_p11), %v4993_v0 }
0x1122   : > { %4612 = vmatprep.subr.bf16.mxu0 (!%p4343_p11), %v5596_v24 }
0x1125   : > { %4613 = vmatpush3.bf16.msra.mxu0 (!%p4343_p11), %v4994_v25 }
0x1126   : > { %4614 = vmatprep.subr.bf16.mxu0 (!%p4343_p11), %v5596_v24 }
0x1129   : > { %4615 = vmatpush3.bf16.msra.mxu0 (!%p4343_p11), %v4995_v27 }
0x119b   : > { %v3570_v9 = vpop.xlane.xlu0 %3569 }
0x119c   : > { %v3571_v10 = vmul.f32 0.0078125, %v3570_v9 }
0x119e   : > { %v3572_v11 = vsub.f32 %v3568_v52, %v3571_v10 }
0x11a0   : > { %v3573_v12 = vmul.f32 %v3572_v11, %v3572_v11 }
0x11a2   : > { %3574 = vadd.xlane.f32.xlu1 %v3573_v12 }
0x122f   : > { %v3575_v14 = vpop.xlane.xlu1 %3574 }
0x1230   : > { %v3576_v15 = vmul.f32 0.0078125, %v3575_v14 }
0x1232   : > { %v3577_v16 = vadd.f32 1e-05, %v3576_v15 }
0x1234   : > { %4985 = vrsqrt.f32 %v3577_v16 }
0x123e   : > { %v4986_v17 = vpop.eup %4985 }
0x123f   : > { %v3579_v19 = vmul.f32 %v4986_v17, %v3572_v11  ;;  %3600 = sbr.rel (%p4343_p11) target bundleno = 4913 (0x1331), region = 172 }
0x1241   : > { %v3587_v22 = vmul.f32 %v4341_v3, %v3579_v19 }
0x1243   : > { %v3595_v23 = vadd.f32 %v4342_v20, %v3587_v22 }
0x1245   : > { %3596 = vst [vmem:[#allocation2] sm:$0xff] %v3595_v23 }
0x124c   : > { %v3601_v57 = vld [vmem:[#allocation2] sm:$0xff] }
0x124d   : > { %4996 = vtanh.f32 %v3601_v57 }
0x1257   : > { %v4997_v26 = vpop.eup %4996 }
0x1258   : > { %v3603_v51 = vpack.c.bf16 %v4997_v26, %v4997_v26 }
0x125a   : > { %4617 = vmatmul.mubr.bf16.vlgmr.msra.gmra.mrb[0].mxu0 %v3603_v51 }
0x132d   : > { %v3709_v29 = vpop.f32.mrb[0].mxu0 }
0x132e   : > { %v3710_v30 = vadd.f32 %v4344_v28, %v3709_v29  ;;  %v4618_v31 = vpop.f32.mrb[1].mxu0 }
0x132f   : > { %v3712_v32 = vpop.f32.mrb[2].mxu0 }
0x1330   : > { %3715 = vst [vmem:[#allocation30] sm:$0xff] %v3710_v30  ;;  %v4619_v33 = vpop.f32.mrb[3].mxu0 }
0x1331 PF: > { %s6932_s24 = sld [smem:[#allocation43_spill]]  ;;  %s5598_s25 = smov [#allocation30]  }
0x1332   : > { %s3723_s20 = sshll.u32 %s5598_s25, 4  ;;  %s3724_s20 = int_to_ptr.vmem [resolvable:$true] %s3723_s20 }
0x1333   : > { %s5474_s1 = scalar_lea.vmem %s3724_s20, 128  ;;  %p5481_p0 = scmp.lt.s32.totalorder %s3724_s20, %s3724_s20 }
0x1334   : > { %p5475_p1 = scmp.ne.s32.totalorder %s3724_s20, %s5474_s1  ;;  %p5482_p12 = scmp.lt.s32.totalorder %s5474_s1, %s5474_s1 }
0x1336   : > { %p5483_p2 = por %p5482_p12, %p5481_p0 }
0x1337   : > { %p4666_p8 = scmp.eq.s32.totalorder %s6932_s24, 1 }
0x1339   : > { %p5476_p9 = pnand %p5475_p1, %p4666_p8 }
0x133b   : > { %p5477_p10 = pneg %p5476_p9 }
0x133d   : > { %p5484_p3 = pnand %p5483_p2, %p5477_p10 }
0x133f   : > { %5487 = shalt.err (!%p5484_p3)
}
0x1340   : > { %s6933_s28 = sld [smem:[#allocation56_spill]] }
0x1346   : > { %s5488_s30 = scalar_lea.hbm %s6933_s28, 128 }
0x1347   : > { %p5489_p6 = scmp.ne.s32.totalorder %s6933_s28, %s5488_s30  ;;  %p5494_p5 = scmp.lt.u32.totalorder %s5488_s30, %s6933_s28 }
0x1349   : > { %p5490_p7 = pnand %p5489_p6, %p4666_p8 }
0x134b   : > { %p5491_p13 = pneg %p5490_p7 }
0x134d   : > { %p5496_p4 = pnand %p5494_p5, %p5491_p13 }
0x134f   : > { %5499 = shalt.err (!%p5496_p4)
}
0x1350   : > { %4657 = dma.vmem_to_hbm [thread:$0]  (%p4666_p8), %s3724_s20, 128, %s6933_s28, [#allocation5]  }
0x1351   : > { %5553 = dma.done.wait (%p4666_p8), [#allocation5], 128  }
0x1352   : > { %5555 = vsyncadd (%p4666_p8), [#allocation5], 4294967168 }
0x1353 PF: > { %s6934_s21 = sld [smem:[#allocation44_spill]]  ;;  %s6935_s0 = sld [smem:[#allocation41_spill]] }
0x1354   : > { %s6936_s30 = sld [smem:[#allocation42_spill]]  ;;  %s6937_s20 = sld [smem:[#allocation45_spill]] }
0x1359   : > { %p52_p11 = scmp.ge.s32.totalorder %s6934_s21, 4  }
0x135b   :  { %54 = sbr.rel (!%p52_p11) target bundleno = 29 (0x1d), region = 325 }
0x1362   :  { %3736 = vsyncpa [#allocation4], 1 }
0x1363   :  { %3738 = vsyncpa [#allocation4 + $0x1], 1 }
0x1364   :  { %3739 = vsyncpa [#allocation7], 1 }
0x1365   :  { %3741 = vsyncpa [#allocation7 + $0x1], 1 }
0x1366   :  { %3742 = vsyncpa [#allocation10], 1 }
0x1367   :  { %3744 = vsyncpa [#allocation10 + $0x1], 1 }
0x1368   :  { %3745 = vsyncpa [#allocation13], 1 }
0x1369   :  { %3747 = vsyncpa [#allocation13 + $0x1], 1 }
0x136a   :  { %3748 = vsyncpa [#allocation16], 1 }
0x136b   :  { %3750 = vsyncpa [#allocation16 + $0x1], 1 }
0x136c   :  { %3751 = vsyncpa [#allocation19], 1 }
0x136d   :  { %3753 = vsyncpa [#allocation19 + $0x1], 1 }
0x136e   :  { %3754 = vsyncpa [#allocation22], 1 }
0x136f   :  { %3756 = vsyncpa [#allocation22 + $0x1], 1 }
0x1370   :  { %3757 = vsyncpa [#allocation25], 1 }
0x1371   :  { %3759 = vsyncpa [#allocation25 + $0x1], 1 }
0x1372   :  { %3760 = vsyncpa [#allocation28], 1 }
0x1373   :  { %3762 = vsyncpa [#allocation28 + $0x1], 1 }
0x1374   :  { %3763 = vsyncpa [#allocation5], 1 }
0x1375   :  { %3765 = vsyncpa [#allocation5 + $0x1], 1 }

</bundles_post_ra>
